<compile_context>
chip_gen: v7x
topology: tpu7x:2x2x1
jax: 0.10.0
libtpu: 0.0.40
codegen_flags: <defaults>
</compile_context>

<pallas_src>
import functools

import numpy as np

import jax
import jax.numpy as jnp
from jax.experimental import pallas as pl
from jax.experimental.pallas import tpu as pltpu

EPS = 1e-5


def _round_up(v, m):
    return (v + m - 1) // m * m


def _bn_fold(bn):
    scale = bn["gamma"] / jnp.sqrt(bn["var"] + EPS)
    bias = bn["beta"] - bn["mean"] * scale
    return scale, bias


# ------------------------------ Pallas kernels ------------------------------

def _conv3x3_bn_kernel(xph_ref, w_ref, b_ref, o_ref, *, taps, apply_relu):
    """3x3 conv as 9 tap matmuls over polyphase planes + folded-BN bias (+ optional ReLU).

    xph_ref: (1, P, Lp, Cin)  bf16  polyphase planes, flattened & tail-padded
    w_ref  : (9, Cin, Cout)   bf16  per-tap weights with BN scale pre-folded
    b_ref  : (1, Cout)        f32   folded BN bias
    o_ref  : (1, G, Cout)     f32   output in "garbage column" frame (row pitch Wph)
    """
    G = o_ref.shape[1]
    cout = o_ref.shape[2]
    acc = jnp.zeros((G, cout), jnp.float32)
    for t, (plane, off) in enumerate(taps):
        xs = xph_ref[0, plane, pl.ds(off, G), :]          # (G, Cin) bf16, unit stride
        acc = acc + jnp.dot(xs, w_ref[t], preferred_element_type=jnp.float32)
    y = acc + b_ref[...]
    if apply_relu:
        y = jnp.maximum(y, 0.0)
    o_ref[0] = y


def conv3x3_bn(xph, taps, w_taps, bias, G, apply_relu):
    N, P, Lp, Cin = xph.shape
    KT, _, Cout = w_taps.shape
    kernel = functools.partial(_conv3x3_bn_kernel, taps=taps, apply_relu=apply_relu)
    return pl.pallas_call(
        kernel,
        out_shape=jax.ShapeDtypeStruct((N, G, Cout), jnp.float32),
        grid=(N,),
        in_specs=[
            pl.BlockSpec((1, P, Lp, Cin), lambda n: (n, 0, 0, 0)),
            pl.BlockSpec((KT, Cin, Cout), lambda n: (0, 0, 0)),
            pl.BlockSpec((1, Cout), lambda n: (0, 0)),
        ],
        out_specs=pl.BlockSpec((1, G, Cout), lambda n: (n, 0, 0)),
        compiler_params=pltpu.CompilerParams(
            dimension_semantics=("parallel",),
            vmem_limit_bytes=32 * 1024 * 1024,
        ),
    )(xph, w_taps, bias)


def _cbam_residual_kernel(y2_ref, xsc_ref, wsc_ref, bsc_ref, wfc1_ref, wfc2_ref,
                          msp_ref, o_ref):
    """Fused CBAM (channel + spatial attention) + 1x1-conv shortcut + add + ReLU.

    y2_ref : (1, HW, C)   f32   conv2+bn2 output
    xsc_ref: (1, HW, Csc) bf16  (strided) input for the shortcut 1x1 conv
    wsc_ref: (Csc, C)     bf16  shortcut weight with BN scale folded (identity if none)
    bsc_ref: (1, C)       f32   shortcut folded BN bias
    wfc1   : (C, Cr), wfc2: (Cr, C)   f32 squeeze-excitation MLP
    msp_ref: (HW, 2*HW)   f32   Toeplitz matrix of the 7x7 spatial-attention conv
    """
    y2 = y2_ref[0]                                        # (HW, C) f32

    # shortcut: 1x1 conv with folded BN, fused here to avoid an HBM round trip
    res = jnp.dot(xsc_ref[0], wsc_ref[...],
                  preferred_element_type=jnp.float32) + bsc_ref[...]

    # channel attention: avg & max pooled rows share one stacked MLP pass
    pooled = jnp.concatenate(
        [jnp.mean(y2, axis=0, keepdims=True),
         jnp.max(y2, axis=0, keepdims=True)], axis=0)     # (2, C)
    h = jnp.maximum(jnp.dot(pooled, wfc1_ref[...],
                            preferred_element_type=jnp.float32), 0.0)
    z = jnp.dot(h, wfc2_ref[...], preferred_element_type=jnp.float32)
    att = jax.nn.sigmoid(z[0:1, :] + z[1:2, :])           # (1, C)
    xca = y2 * att

    # spatial attention: 7x7 conv over [mean_C, max_C] folded into one matmul
    stats = jnp.concatenate(
        [jnp.mean(xca, axis=1, keepdims=True),
         jnp.max(xca, axis=1, keepdims=True)], axis=0)    # (2*HW, 1)
    satt = jax.nn.sigmoid(
        jnp.dot(msp_ref[...], stats, preferred_element_type=jnp.float32))  # (HW, 1)

    o_ref[0] = jnp.maximum(xca * satt + res, 0.0)


def cbam_residual(y2, xsc, wsc, bsc, wfc1, wfc2, msp):
    N, HW, C = y2.shape
    Csc = xsc.shape[2]
    Cr = wfc1.shape[1]
    return pl.pallas_call(
        _cbam_residual_kernel,
        out_shape=jax.ShapeDtypeStruct((N, HW, C), jnp.float32),
        grid=(N,),
        in_specs=[
            pl.BlockSpec((1, HW, C), lambda n: (n, 0, 0)),
            pl.BlockSpec((1, HW, Csc), lambda n: (n, 0, 0)),
            pl.BlockSpec((Csc, C), lambda n: (0, 0)),
            pl.BlockSpec((1, C), lambda n: (0, 0)),
            pl.BlockSpec((C, Cr), lambda n: (0, 0)),
            pl.BlockSpec((Cr, C), lambda n: (0, 0)),
            pl.BlockSpec((HW, 2 * HW), lambda n: (0, 0)),
        ],
        out_specs=pl.BlockSpec((1, HW, C), lambda n: (n, 0, 0)),
        compiler_params=pltpu.CompilerParams(
            dimension_semantics=("parallel",),
            vmem_limit_bytes=32 * 1024 * 1024,
        ),
    )(y2, xsc, wsc, bsc, wfc1, wfc2, msp)


# ------------------------------ JAX glue ------------------------------

def _phasify(x_nhwc, k, stride, pad):
    """Polyphase-decompose a padded NHWC image so every conv tap becomes a unit-stride
    slice of a flattened plane ("garbage column" frame; garbage stripped on host)."""
    N, H, W, C = x_nhwc.shape
    Ho = (H + 2 * pad - k) // stride + 1
    Wo = (W + 2 * pad - k) // stride + 1
    xp = jnp.pad(x_nhwc, ((0, 0), (pad, pad), (pad, pad), (0, 0)))
    Hp, Wp = H + 2 * pad, W + 2 * pad
    Hph = -(-Hp // stride)
    Wph = -(-Wp // stride)
    dmax = (k - 1) // stride
    G = Ho * Wph
    Lp = _round_up(G + dmax * Wph + dmax, 8)
    planes = []
    for pi in range(stride):
        for qj in range(stride):
            pln = xp[:, pi::stride, qj::stride, :]
            pln = jnp.pad(pln, ((0, 0), (0, Hph - pln.shape[1]),
                                (0, Wph - pln.shape[2]), (0, 0)))
            pln = pln.reshape(N, Hph * Wph, C)
            planes.append(jnp.pad(pln, ((0, 0), (0, Lp - Hph * Wph), (0, 0))))
    xph = jnp.stack(planes, axis=1)                       # (N, stride*stride, Lp, C)
    taps = tuple(((ki % stride) * stride + (kj % stride),
                  (ki // stride) * Wph + (kj // stride))
                 for ki in range(k) for kj in range(k))
    return xph, taps, Ho, Wo, Wph, G


def build_spatial_matrix(sp_w, Ho, Wo):
    """(HW, 2*HW) Toeplitz matrix for the CBAM 7x7 spatial-attention conv.
    Built on the host from concrete weights (must be called outside jit)."""
    k = int(sp_w.shape[-1])
    pad = k // 2
    w = np.asarray(sp_w, dtype=np.float32).reshape(2, k, k)
    HW = Ho * Wo
    M = np.zeros((HW, 2 * HW), np.float32)
    for oh in range(Ho):
        for ow in range(Wo):
            go = oh * Wo + ow
            for c in range(2):
                for ki in range(k):
                    for kj in range(k):
                        ih, iw = oh + ki - pad, ow + kj - pad
                        if 0 <= ih < Ho and 0 <= iw < Wo:
                            M[go, c * HW + ih * Wo + iw] = w[c, ki, kj]
    return jnp.asarray(M)


@functools.partial(jax.jit, static_argnames=("stride",))
def _residual_block_impl(x_nchw, p, msp, *, stride):
    x = jnp.transpose(x_nchw, (0, 2, 3, 1)).astype(jnp.float32)   # NHWC
    N, H, W, Cin = x.shape
    Cout = p["conv1_w"].shape[0]

    # ---- conv1 (3x3, stride) + bn1 + relu ----
    s1, b1 = _bn_fold(p["bn1"])
    w1 = (jnp.transpose(p["conv1_w"], (2, 3, 1, 0)).reshape(9, Cin, Cout)
          * s1).astype(jnp.bfloat16)
    xph1, taps1, Ho, Wo, Wph1, G1 = _phasify(x, 3, stride, 1)
    y1g = conv3x3_bn(xph1.astype(jnp.bfloat16), taps1, w1,
                     b1.reshape(1, Cout).astype(jnp.float32), G1, apply_relu=True)
    y1 = y1g.reshape(N, Ho, Wph1, Cout)[:, :, :Wo, :]     # strip garbage columns

    # ---- conv2 (3x3, stride 1) + bn2 ----
    s2, b2 = _bn_fold(p["bn2"])
    w2 = (jnp.transpose(p["conv2_w"], (2, 3, 1, 0)).reshape(9, Cout, Cout)
          * s2).astype(jnp.bfloat16)
    xph2, taps2, _, _, Wph2, G2 = _phasify(y1, 3, 1, 1)
    y2g = conv3x3_bn(xph2.astype(jnp.bfloat16), taps2, w2,
                     b2.reshape(1, Cout).astype(jnp.float32), G2, apply_relu=False)
    HW = Ho * Wo
    y2 = y2g.reshape(N, Ho, Wph2, Cout)[:, :, :Wo, :].reshape(N, HW, Cout)

    # ---- shortcut operands (1x1 conv + folded BN applied inside the fused kernel) ----
    if stride != 1 or Cin != Cout:
        xsc = x[:, ::stride, ::stride, :].reshape(N, HW, Cin).astype(jnp.bfloat16)
        ssc, bsc = _bn_fold(p["bn_sc"])
        wsc = (p["sc_w"].reshape(Cout, Cin).T * ssc).astype(jnp.bfloat16)
        bsc = bsc.reshape(1, Cout).astype(jnp.float32)
    else:
        xsc = x.reshape(N, HW, Cout).astype(jnp.bfloat16)
        wsc = jnp.eye(Cout, dtype=jnp.bfloat16)
        bsc = jnp.zeros((1, Cout), jnp.float32)

    # ---- fused CBAM channel+spatial attention + residual add + final relu ----
    Cr = p["fc1_w"].shape[0]
    wfc1 = p["fc1_w"].reshape(Cr, Cout).T.astype(jnp.float32)
    wfc2 = p["fc2_w"].reshape(Cout, Cr).T.astype(jnp.float32)
    out = cbam_residual(y2, xsc, wsc, bsc, wfc1, wfc2, msp)
    out = out.reshape(N, Ho, Wo, Cout)
    return jnp.transpose(out, (0, 3, 1, 2))               # back to NCHW


def residual_block_forward(x_nchw, params):
    stride = int(params["stride"])
    H, W = int(x_nchw.shape[2]), int(x_nchw.shape[3])
    Ho = (H + 2 - 3) // stride + 1
    Wo = (W + 2 - 3) // stride + 1
    msp = build_spatial_matrix(params["sp_w"], Ho, Wo)
    p = {k: v for k, v in params.items() if k != "stride"}
    return _residual_block_impl(x_nchw, p, msp, stride=stride)


# ------------------------------ pure-JAX reference ------------------------------

def reference_forward(x_nchw, p, match_kernel_numerics=False):
    """Pure-JAX reference. match_kernel_numerics=True mirrors the kernel's bf16
    conv operands / folded-BN weights so the comparison tolerance can stay tight."""
    x = jnp.transpose(x_nchw, (0, 2, 3, 1)).astype(jnp.float32)
    stride = p["stride"]
    Cout = p["conv1_w"].shape[0]

    def conv_bn(z, w_oihw, s, pad, bn):
        scale, bias = _bn_fold(bn)
        w = jnp.transpose(w_oihw, (2, 3, 1, 0))           # HWIO
        if match_kernel_numerics:
            y = jax.lax.conv_general_dilated(
                z.astype(jnp.bfloat16), (w * scale).astype(jnp.bfloat16),
                (s, s), ((pad, pad), (pad, pad)),
                dimension_numbers=("NHWC", "HWIO", "NHWC"),
                preferred_element_type=jnp.float32)
            return y + bias
        y = jax.lax.conv_general_dilated(
            z, w, (s, s), ((pad, pad), (pad, pad)),
            dimension_numbers=("NHWC", "HWIO", "NHWC"),
            precision=jax.lax.Precision.HIGHEST)
        return y * scale + bias

    out = jnp.maximum(conv_bn(x, p["conv1_w"], stride, 1, p["bn1"]), 0.0)
    out = conv_bn(out, p["conv2_w"], 1, 1, p["bn2"])
    if stride != 1 or x.shape[-1] != Cout:
        res = conv_bn(x, p["sc_w"], stride, 0, p["bn_sc"])
    else:
        res = x

    Cr = p["fc1_w"].shape[0]
    w1 = p["fc1_w"].reshape(Cr, Cout).T
    w2 = p["fc2_w"].reshape(Cout, Cr).T
    avg = jnp.mean(out, axis=(1, 2))
    mx = jnp.max(out, axis=(1, 2))

    def fc(v):
        h = jnp.maximum(jnp.matmul(v, w1, precision=jax.lax.Precision.HIGHEST), 0.0)
        return jnp.matmul(h, w2, precision=jax.lax.Precision.HIGHEST)

    att = jax.nn.sigmoid(fc(avg) + fc(mx))
    out = out * att[:, None, None, :]

    s = jnp.concatenate([jnp.mean(out, axis=3, keepdims=True),
                         jnp.max(out, axis=3, keepdims=True)], axis=3)
    satt = jax.nn.sigmoid(jax.lax.conv_general_dilated(
        s, jnp.transpose(p["sp_w"], (2, 3, 1, 0)), (1, 1), ((3, 3), (3, 3)),
        dimension_numbers=("NHWC", "HWIO", "NHWC"),
        precision=jax.lax.Precision.HIGHEST))
    out = jnp.maximum(out * satt + res, 0.0)
    return jnp.transpose(out, (0, 3, 1, 2))


# ------------------------------ main ------------------------------

if __name__ == "__main__":
    N, Cin, H, W = 2, 16, 16, 16
    Cout, stride, reduction = 32, 2, 16
    Cr = Cout // reduction

    key = jax.random.PRNGKey(0)
    ks = jax.random.split(key, 10)

    def bn_params(k, c):
        a, b, m, v = jax.random.split(k, 4)
        return dict(
            gamma=1.0 + 0.1 * jax.random.normal(a, (c,), jnp.float32),
            beta=0.1 * jax.random.normal(b, (c,), jnp.float32),
            mean=0.1 * jax.random.normal(m, (c,), jnp.float32),
            var=0.5 + 0.25 * jnp.abs(jax.random.normal(v, (c,), jnp.float32)),
        )

    params = dict(
        stride=stride,
        conv1_w=0.1 * jax.random.normal(ks[0], (Cout, Cin, 3, 3), jnp.float32),
        bn1=bn_params(ks[1], Cout),
        conv2_w=0.1 * jax.random.normal(ks[2], (Cout, Cout, 3, 3), jnp.float32),
        bn2=bn_params(ks[3], Cout),
        sc_w=0.1 * jax.random.normal(ks[4], (Cout, Cin, 1, 1), jnp.float32),
        bn_sc=bn_params(ks[5], Cout),
        fc1_w=0.1 * jax.random.normal(ks[6], (Cr, Cout, 1, 1), jnp.float32),
        fc2_w=0.1 * jax.random.normal(ks[7], (Cout, Cr, 1, 1), jnp.float32),
        sp_w=0.1 * jax.random.normal(ks[8], (1, 2, 7, 7), jnp.float32),
    )

    x = jax.random.normal(ks[9], (N, Cin, H, W), jnp.float32)

    out = jax.block_until_ready(residual_block_forward(x, params))
    ref_match = jax.block_until_ready(
        reference_forward(x, params, match_kernel_numerics=True))
    ref_f32 = jax.block_until_ready(
        reference_forward(x, params, match_kernel_numerics=False))

    assert out.shape == (N, Cout, H // stride, W // stride), out.shape

    # tight check vs a reference that mirrors the kernel's bf16 matmul numerics
    err_match = float(jnp.max(jnp.abs(out - ref_match)))
    if err_match > 2e-2:
        raise AssertionError(
            f"mismatch vs numerics-matched (bf16-operand) reference: {err_match}")

    # sanity check vs the full-f32 reference (bf16 operands widen the tolerance)
    err_f32 = float(jnp.max(jnp.abs(out - ref_f32)))
    tol_f32 = 2.5e-2 * float(jnp.max(jnp.abs(ref_f32))) + 1e-2
    if err_f32 > tol_f32:
        raise AssertionError(f"mismatch vs f32 reference: {err_f32} (tol {tol_f32})")

    print("KERNEL_OK")
</pallas_src>

<mosaic_0001>
module attributes {stable_mosaic.version = 11 : i64} {
  func.func @_conv3x3_bn_kernel(%arg0: i32, %arg1: memref<1x4x88x16xbf16, #tpu.memory_space<vmem>>, %arg2: memref<9x16x32xbf16, #tpu.memory_space<vmem>>, %arg3: memref<1x32xf32, #tpu.memory_space<vmem>>, %arg4: memref<1x72x32xf32, #tpu.memory_space<vmem>>) attributes {dimension_semantics = [#tpu.dimension_semantics<parallel>], iteration_bounds = array<i64: 2>, scalar_prefetch = 0 : i64, scratch_operands = 0 : i64, tpu.core_type = #tpu.core_type<tc>, window_params = [{transform_indices = @transform_0, window_bounds = array<i64: 1, 4, 88, 16>}, {pipeline_mode = #tpu.pipeline_mode<synchronous>, transform_indices = @transform_1, window_bounds = array<i64: 9, 16, 32>}, {pipeline_mode = #tpu.pipeline_mode<synchronous>, transform_indices = @transform_2, window_bounds = array<i64: 1, 32>}, {transform_indices = @transform_3, window_bounds = array<i64: 1, 72, 32>}]} {
    %cst = arith.constant 0.000000e+00 : f32
    %0 = vector.broadcast %cst : f32 to vector<72x32xf32>
    %c0 = arith.constant 0 : index
    %c0_0 = arith.constant 0 : index
    %c0_1 = arith.constant 0 : index
    %c0_2 = arith.constant 0 : index
    %1 = vector.load %arg1[%c0, %c0_0, %c0_1, %c0_2] : memref<1x4x88x16xbf16, #tpu.memory_space<vmem>>, vector<1x1x72x16xbf16>
    %2 = vector.shape_cast %1 : vector<1x1x72x16xbf16> to vector<72x16xbf16>
    %c0_3 = arith.constant 0 : index
    %c0_4 = arith.constant 0 : index
    %c0_5 = arith.constant 0 : index
    %3 = vector.load %arg2[%c0_3, %c0_4, %c0_5] : memref<9x16x32xbf16, #tpu.memory_space<vmem>>, vector<1x16x32xbf16>
    %4 = vector.shape_cast %3 : vector<1x16x32xbf16> to vector<16x32xbf16>
    %cst_6 = arith.constant dense<0.000000e+00> : vector<72x32xf32>
    %5 = tpu.matmul %2, %4, %cst_6 {dimension_numbers = #tpu.dot_dimension_numbers<[1], [0], [0], [1], [0, 0, 1, 1], [], []>} : vector<72x16xbf16>, vector<16x32xbf16>, vector<72x32xf32> -> vector<72x32xf32>
    %6 = arith.addf %0, %5 : vector<72x32xf32>
    %c0_7 = arith.constant 0 : index
    %c1 = arith.constant 1 : index
    %c0_8 = arith.constant 0 : index
    %c0_9 = arith.constant 0 : index
    %7 = vector.load %arg1[%c0_7, %c1, %c0_8, %c0_9] : memref<1x4x88x16xbf16, #tpu.memory_space<vmem>>, vector<1x1x72x16xbf16>
    %8 = vector.shape_cast %7 : vector<1x1x72x16xbf16> to vector<72x16xbf16>
    %c1_10 = arith.constant 1 : index
    %c0_11 = arith.constant 0 : index
    %c0_12 = arith.constant 0 : index
    %9 = vector.load %arg2[%c1_10, %c0_11, %c0_12] : memref<9x16x32xbf16, #tpu.memory_space<vmem>>, vector<1x16x32xbf16>
    %10 = vector.shape_cast %9 : vector<1x16x32xbf16> to vector<16x32xbf16>
    %cst_13 = arith.constant dense<0.000000e+00> : vector<72x32xf32>
    %11 = tpu.matmul %8, %10, %cst_13 {dimension_numbers = #tpu.dot_dimension_numbers<[1], [0], [0], [1], [0, 0, 1, 1], [], []>} : vector<72x16xbf16>, vector<16x32xbf16>, vector<72x32xf32> -> vector<72x32xf32>
    %12 = arith.addf %6, %11 : vector<72x32xf32>
    %c0_14 = arith.constant 0 : index
    %c0_15 = arith.constant 0 : index
    %c1_16 = arith.constant 1 : index
    %c0_17 = arith.constant 0 : index
    %13 = vector.load %arg1[%c0_14, %c0_15, %c1_16, %c0_17] : memref<1x4x88x16xbf16, #tpu.memory_space<vmem>>, vector<1x1x72x16xbf16>
    %14 = vector.shape_cast %13 : vector<1x1x72x16xbf16> to vector<72x16xbf16>
    %c2 = arith.constant 2 : index
    %c0_18 = arith.constant 0 : index
    %c0_19 = arith.constant 0 : index
    %15 = vector.load %arg2[%c2, %c0_18, %c0_19] : memref<9x16x32xbf16, #tpu.memory_space<vmem>>, vector<1x16x32xbf16>
    %16 = vector.shape_cast %15 : vector<1x16x32xbf16> to vector<16x32xbf16>
    %cst_20 = arith.constant dense<0.000000e+00> : vector<72x32xf32>
    %17 = tpu.matmul %14, %16, %cst_20 {dimension_numbers = #tpu.dot_dimension_numbers<[1], [0], [0], [1], [0, 0, 1, 1], [], []>} : vector<72x16xbf16>, vector<16x32xbf16>, vector<72x32xf32> -> vector<72x32xf32>
    %18 = arith.addf %12, %17 : vector<72x32xf32>
    %c0_21 = arith.constant 0 : index
    %c2_22 = arith.constant 2 : index
    %c0_23 = arith.constant 0 : index
    %c0_24 = arith.constant 0 : index
    %19 = vector.load %arg1[%c0_21, %c2_22, %c0_23, %c0_24] : memref<1x4x88x16xbf16, #tpu.memory_space<vmem>>, vector<1x1x72x16xbf16>
    %20 = vector.shape_cast %19 : vector<1x1x72x16xbf16> to vector<72x16xbf16>
    %c3 = arith.constant 3 : index
    %c0_25 = arith.constant 0 : index
    %c0_26 = arith.constant 0 : index
    %21 = vector.load %arg2[%c3, %c0_25, %c0_26] : memref<9x16x32xbf16, #tpu.memory_space<vmem>>, vector<1x16x32xbf16>
    %22 = vector.shape_cast %21 : vector<1x16x32xbf16> to vector<16x32xbf16>
    %cst_27 = arith.constant dense<0.000000e+00> : vector<72x32xf32>
    %23 = tpu.matmul %20, %22, %cst_27 {dimension_numbers = #tpu.dot_dimension_numbers<[1], [0], [0], [1], [0, 0, 1, 1], [], []>} : vector<72x16xbf16>, vector<16x32xbf16>, vector<72x32xf32> -> vector<72x32xf32>
    %24 = arith.addf %18, %23 : vector<72x32xf32>
    %c0_28 = arith.constant 0 : index
    %c3_29 = arith.constant 3 : index
    %c0_30 = arith.constant 0 : index
    %c0_31 = arith.constant 0 : index
    %25 = vector.load %arg1[%c0_28, %c3_29, %c0_30, %c0_31] : memref<1x4x88x16xbf16, #tpu.memory_space<vmem>>, vector<1x1x72x16xbf16>
    %26 = vector.shape_cast %25 : vector<1x1x72x16xbf16> to vector<72x16xbf16>
    %c4 = arith.constant 4 : index
    %c0_32 = arith.constant 0 : index
    %c0_33 = arith.constant 0 : index
    %27 = vector.load %arg2[%c4, %c0_32, %c0_33] : memref<9x16x32xbf16, #tpu.memory_space<vmem>>, vector<1x16x32xbf16>
    %28 = vector.shape_cast %27 : vector<1x16x32xbf16> to vector<16x32xbf16>
    %cst_34 = arith.constant dense<0.000000e+00> : vector<72x32xf32>
    %29 = tpu.matmul %26, %28, %cst_34 {dimension_numbers = #tpu.dot_dimension_numbers<[1], [0], [0], [1], [0, 0, 1, 1], [], []>} : vector<72x16xbf16>, vector<16x32xbf16>, vector<72x32xf32> -> vector<72x32xf32>
    %30 = arith.addf %24, %29 : vector<72x32xf32>
    %c0_35 = arith.constant 0 : index
    %c2_36 = arith.constant 2 : index
    %c1_37 = arith.constant 1 : index
    %c0_38 = arith.constant 0 : index
    %31 = vector.load %arg1[%c0_35, %c2_36, %c1_37, %c0_38] : memref<1x4x88x16xbf16, #tpu.memory_space<vmem>>, vector<1x1x72x16xbf16>
    %32 = vector.shape_cast %31 : vector<1x1x72x16xbf16> to vector<72x16xbf16>
    %c5 = arith.constant 5 : index
    %c0_39 = arith.constant 0 : index
    %c0_40 = arith.constant 0 : index
    %33 = vector.load %arg2[%c5, %c0_39, %c0_40] : memref<9x16x32xbf16, #tpu.memory_space<vmem>>, vector<1x16x32xbf16>
    %34 = vector.shape_cast %33 : vector<1x16x32xbf16> to vector<16x32xbf16>
    %cst_41 = arith.constant dense<0.000000e+00> : vector<72x32xf32>
    %35 = tpu.matmul %32, %34, %cst_41 {dimension_numbers = #tpu.dot_dimension_numbers<[1], [0], [0], [1], [0, 0, 1, 1], [], []>} : vector<72x16xbf16>, vector<16x32xbf16>, vector<72x32xf32> -> vector<72x32xf32>
    %36 = arith.addf %30, %35 : vector<72x32xf32>
    %c0_42 = arith.constant 0 : index
    %c0_43 = arith.constant 0 : index
    %c9 = arith.constant 9 : index
    %c0_44 = arith.constant 0 : index
    %37 = vector.load %arg1[%c0_42, %c0_43, %c9, %c0_44] : memref<1x4x88x16xbf16, #tpu.memory_space<vmem>>, vector<1x1x72x16xbf16>
    %38 = vector.shape_cast %37 : vector<1x1x72x16xbf16> to vector<72x16xbf16>
    %c6 = arith.constant 6 : index
    %c0_45 = arith.constant 0 : index
    %c0_46 = arith.constant 0 : index
    %39 = vector.load %arg2[%c6, %c0_45, %c0_46] : memref<9x16x32xbf16, #tpu.memory_space<vmem>>, vector<1x16x32xbf16>
    %40 = vector.shape_cast %39 : vector<1x16x32xbf16> to vector<16x32xbf16>
    %cst_47 = arith.constant dense<0.000000e+00> : vector<72x32xf32>
    %41 = tpu.matmul %38, %40, %cst_47 {dimension_numbers = #tpu.dot_dimension_numbers<[1], [0], [0], [1], [0, 0, 1, 1], [], []>} : vector<72x16xbf16>, vector<16x32xbf16>, vector<72x32xf32> -> vector<72x32xf32>
    %42 = arith.addf %36, %41 : vector<72x32xf32>
    %c0_48 = arith.constant 0 : index
    %c1_49 = arith.constant 1 : index
    %c9_50 = arith.constant 9 : index
    %c0_51 = arith.constant 0 : index
    %43 = vector.load %arg1[%c0_48, %c1_49, %c9_50, %c0_51] : memref<1x4x88x16xbf16, #tpu.memory_space<vmem>>, vector<1x1x72x16xbf16>
    %44 = vector.shape_cast %43 : vector<1x1x72x16xbf16> to vector<72x16xbf16>
    %c7 = arith.constant 7 : index
    %c0_52 = arith.constant 0 : index
    %c0_53 = arith.constant 0 : index
    %45 = vector.load %arg2[%c7, %c0_52, %c0_53] : memref<9x16x32xbf16, #tpu.memory_space<vmem>>, vector<1x16x32xbf16>
    %46 = vector.shape_cast %45 : vector<1x16x32xbf16> to vector<16x32xbf16>
    %cst_54 = arith.constant dense<0.000000e+00> : vector<72x32xf32>
    %47 = tpu.matmul %44, %46, %cst_54 {dimension_numbers = #tpu.dot_dimension_numbers<[1], [0], [0], [1], [0, 0, 1, 1], [], []>} : vector<72x16xbf16>, vector<16x32xbf16>, vector<72x32xf32> -> vector<72x32xf32>
    %48 = arith.addf %42, %47 : vector<72x32xf32>
    %c0_55 = arith.constant 0 : index
    %c0_56 = arith.constant 0 : index
    %c10 = arith.constant 10 : index
    %c0_57 = arith.constant 0 : index
    %49 = vector.load %arg1[%c0_55, %c0_56, %c10, %c0_57] : memref<1x4x88x16xbf16, #tpu.memory_space<vmem>>, vector<1x1x72x16xbf16>
    %50 = vector.shape_cast %49 : vector<1x1x72x16xbf16> to vector<72x16xbf16>
    %c8 = arith.constant 8 : index
    %c0_58 = arith.constant 0 : index
    %c0_59 = arith.constant 0 : index
    %51 = vector.load %arg2[%c8, %c0_58, %c0_59] : memref<9x16x32xbf16, #tpu.memory_space<vmem>>, vector<1x16x32xbf16>
    %52 = vector.shape_cast %51 : vector<1x16x32xbf16> to vector<16x32xbf16>
    %cst_60 = arith.constant dense<0.000000e+00> : vector<72x32xf32>
    %53 = tpu.matmul %50, %52, %cst_60 {dimension_numbers = #tpu.dot_dimension_numbers<[1], [0], [0], [1], [0, 0, 1, 1], [], []>} : vector<72x16xbf16>, vector<16x32xbf16>, vector<72x32xf32> -> vector<72x32xf32>
    %54 = arith.addf %48, %53 : vector<72x32xf32>
    %c0_61 = arith.constant 0 : index
    %c0_62 = arith.constant 0 : index
    %55 = vector.load %arg3[%c0_61, %c0_62] : memref<1x32xf32, #tpu.memory_space<vmem>>, vector<1x32xf32>
    %56 = vector.broadcast %55 : vector<1x32xf32> to vector<72x32xf32>
    %57 = arith.addf %54, %56 : vector<72x32xf32>
    %cst_63 = arith.constant 0.000000e+00 : f32
    %58 = vector.broadcast %cst_63 : f32 to vector<72x32xf32>
    %59 = arith.maximumf %57, %58 : vector<72x32xf32>
    %c0_64 = arith.constant 0 : index
    %c0_65 = arith.constant 0 : index
    %c0_66 = arith.constant 0 : index
    %60 = vector.load %arg4[%c0_64, %c0_65, %c0_66] : memref<1x72x32xf32, #tpu.memory_space<vmem>>, vector<1x72x32xf32>
    %61 = vector.shape_cast %60 : vector<1x72x32xf32> to vector<72x32xf32>
    %62 = vector.shape_cast %59 : vector<72x32xf32> to vector<1x72x32xf32>
    tpu.vector_store %arg4[%c0_64, %c0_65, %c0_66], %62 {strides = array<i32>} : memref<1x72x32xf32, #tpu.memory_space<vmem>>, vector<1x72x32xf32>,
    return
  }
  func.func @transform_0(%arg0: i32) -> (i32, i32, i32, i32) {
    %c0_i32 = arith.constant 0 : i32
    %c0_i32_0 = arith.constant 0 : i32
    %c0_i32_1 = arith.constant 0 : i32
    %c0_i32_2 = arith.constant 0 : i32
    return %arg0, %c0_i32, %c0_i32_0, %c0_i32_1 : i32, i32, i32, i32
  }
  func.func @transform_1(%arg0: i32) -> (i32, i32, i32) {
    %c0_i32 = arith.constant 0 : i32
    %c0_i32_0 = arith.constant 0 : i32
    %c0_i32_1 = arith.constant 0 : i32
    %c0_i32_2 = arith.constant 0 : i32
    return %c0_i32, %c0_i32_0, %c0_i32_1 : i32, i32, i32
  }
  func.func @transform_2(%arg0: i32) -> (i32, i32) {
    %c0_i32 = arith.constant 0 : i32
    %c0_i32_0 = arith.constant 0 : i32
    %c0_i32_1 = arith.constant 0 : i32
    return %c0_i32, %c0_i32_0 : i32, i32
  }
  func.func @transform_3(%arg0: i32) -> (i32, i32, i32) {
    %c0_i32 = arith.constant 0 : i32
    %c0_i32_0 = arith.constant 0 : i32
    %c0_i32_1 = arith.constant 0 : i32
    return %arg0, %c0_i32, %c0_i32_0 : i32, i32, i32
  }
}

module attributes {stable_mosaic.version = 11 : i64} {
  func.func @_conv3x3_bn_kernel(%arg0: i32, %arg1: memref<1x1x104x32xbf16, #tpu.memory_space<vmem>>, %arg2: memref<9x32x32xbf16, #tpu.memory_space<vmem>>, %arg3: memref<1x32xf32, #tpu.memory_space<vmem>>, %arg4: memref<1x80x32xf32, #tpu.memory_space<vmem>>) attributes {dimension_semantics = [#tpu.dimension_semantics<parallel>], iteration_bounds = array<i64: 2>, scalar_prefetch = 0 : i64, scratch_operands = 0 : i64, tpu.core_type = #tpu.core_type<tc>, window_params = [{transform_indices = @transform_0, window_bounds = array<i64: 1, 1, 104, 32>}, {pipeline_mode = #tpu.pipeline_mode<synchronous>, transform_indices = @transform_1, window_bounds = array<i64: 9, 32, 32>}, {pipeline_mode = #tpu.pipeline_mode<synchronous>, transform_indices = @transform_2, window_bounds = array<i64: 1, 32>}, {transform_indices = @transform_3, window_bounds = array<i64: 1, 80, 32>}]} {
    %cst = arith.constant 0.000000e+00 : f32
    %0 = vector.broadcast %cst : f32 to vector<80x32xf32>
    %c0 = arith.constant 0 : index
    %c0_0 = arith.constant 0 : index
    %c0_1 = arith.constant 0 : index
    %c0_2 = arith.constant 0 : index
    %1 = vector.load %arg1[%c0, %c0_0, %c0_1, %c0_2] : memref<1x1x104x32xbf16, #tpu.memory_space<vmem>>, vector<1x1x80x32xbf16>
    %2 = vector.shape_cast %1 : vector<1x1x80x32xbf16> to vector<80x32xbf16>
    %c0_3 = arith.constant 0 : index
    %c0_4 = arith.constant 0 : index
    %c0_5 = arith.constant 0 : index
    %3 = vector.load %arg2[%c0_3, %c0_4, %c0_5] : memref<9x32x32xbf16, #tpu.memory_space<vmem>>, vector<1x32x32xbf16>
    %4 = vector.shape_cast %3 : vector<1x32x32xbf16> to vector<32x32xbf16>
    %cst_6 = arith.constant dense<0.000000e+00> : vector<80x32xf32>
    %5 = tpu.matmul %2, %4, %cst_6 {dimension_numbers = #tpu.dot_dimension_numbers<[1], [0], [0], [1], [0, 0, 1, 1], [], []>} : vector<80x32xbf16>, vector<32x32xbf16>, vector<80x32xf32> -> vector<80x32xf32>
    %6 = arith.addf %0, %5 : vector<80x32xf32>
    %c0_7 = arith.constant 0 : index
    %c0_8 = arith.constant 0 : index
    %c1 = arith.constant 1 : index
    %c0_9 = arith.constant 0 : index
    %7 = vector.load %arg1[%c0_7, %c0_8, %c1, %c0_9] : memref<1x1x104x32xbf16, #tpu.memory_space<vmem>>, vector<1x1x80x32xbf16>
    %8 = vector.shape_cast %7 : vector<1x1x80x32xbf16> to vector<80x32xbf16>
    %c1_10 = arith.constant 1 : index
    %c0_11 = arith.constant 0 : index
    %c0_12 = arith.constant 0 : index
    %9 = vector.load %arg2[%c1_10, %c0_11, %c0_12] : memref<9x32x32xbf16, #tpu.memory_space<vmem>>, vector<1x32x32xbf16>
    %10 = vector.shape_cast %9 : vector<1x32x32xbf16> to vector<32x32xbf16>
    %cst_13 = arith.constant dense<0.000000e+00> : vector<80x32xf32>
    %11 = tpu.matmul %8, %10, %cst_13 {dimension_numbers = #tpu.dot_dimension_numbers<[1], [0], [0], [1], [0, 0, 1, 1], [], []>} : vector<80x32xbf16>, vector<32x32xbf16>, vector<80x32xf32> -> vector<80x32xf32>
    %12 = arith.addf %6, %11 : vector<80x32xf32>
    %c0_14 = arith.constant 0 : index
    %c0_15 = arith.constant 0 : index
    %c2 = arith.constant 2 : index
    %c0_16 = arith.constant 0 : index
    %13 = vector.load %arg1[%c0_14, %c0_15, %c2, %c0_16] : memref<1x1x104x32xbf16, #tpu.memory_space<vmem>>, vector<1x1x80x32xbf16>
    %14 = vector.shape_cast %13 : vector<1x1x80x32xbf16> to vector<80x32xbf16>
    %c2_17 = arith.constant 2 : index
    %c0_18 = arith.constant 0 : index
    %c0_19 = arith.constant 0 : index
    %15 = vector.load %arg2[%c2_17, %c0_18, %c0_19] : memref<9x32x32xbf16, #tpu.memory_space<vmem>>, vector<1x32x32xbf16>
    %16 = vector.shape_cast %15 : vector<1x32x32xbf16> to vector<32x32xbf16>
    %cst_20 = arith.constant dense<0.000000e+00> : vector<80x32xf32>
    %17 = tpu.matmul %14, %16, %cst_20 {dimension_numbers = #tpu.dot_dimension_numbers<[1], [0], [0], [1], [0, 0, 1, 1], [], []>} : vector<80x32xbf16>, vector<32x32xbf16>, vector<80x32xf32> -> vector<80x32xf32>
    %18 = arith.addf %12, %17 : vector<80x32xf32>
    %c0_21 = arith.constant 0 : index
    %c0_22 = arith.constant 0 : index
    %c10 = arith.constant 10 : index
    %c0_23 = arith.constant 0 : index
    %19 = vector.load %arg1[%c0_21, %c0_22, %c10, %c0_23] : memref<1x1x104x32xbf16, #tpu.memory_space<vmem>>, vector<1x1x80x32xbf16>
    %20 = vector.shape_cast %19 : vector<1x1x80x32xbf16> to vector<80x32xbf16>
    %c3 = arith.constant 3 : index
    %c0_24 = arith.constant 0 : index
    %c0_25 = arith.constant 0 : index
    %21 = vector.load %arg2[%c3, %c0_24, %c0_25] : memref<9x32x32xbf16, #tpu.memory_space<vmem>>, vector<1x32x32xbf16>
    %22 = vector.shape_cast %21 : vector<1x32x32xbf16> to vector<32x32xbf16>
    %cst_26 = arith.constant dense<0.000000e+00> : vector<80x32xf32>
    %23 = tpu.matmul %20, %22, %cst_26 {dimension_numbers = #tpu.dot_dimension_numbers<[1], [0], [0], [1], [0, 0, 1, 1], [], []>} : vector<80x32xbf16>, vector<32x32xbf16>, vector<80x32xf32> -> vector<80x32xf32>
    %24 = arith.addf %18, %23 : vector<80x32xf32>
    %c0_27 = arith.constant 0 : index
    %c0_28 = arith.constant 0 : index
    %c11 = arith.constant 11 : index
    %c0_29 = arith.constant 0 : index
    %25 = vector.load %arg1[%c0_27, %c0_28, %c11, %c0_29] : memref<1x1x104x32xbf16, #tpu.memory_space<vmem>>, vector<1x1x80x32xbf16>
    %26 = vector.shape_cast %25 : vector<1x1x80x32xbf16> to vector<80x32xbf16>
    %c4 = arith.constant 4 : index
    %c0_30 = arith.constant 0 : index
    %c0_31 = arith.constant 0 : index
    %27 = vector.load %arg2[%c4, %c0_30, %c0_31] : memref<9x32x32xbf16, #tpu.memory_space<vmem>>, vector<1x32x32xbf16>
    %28 = vector.shape_cast %27 : vector<1x32x32xbf16> to vector<32x32xbf16>
    %cst_32 = arith.constant dense<0.000000e+00> : vector<80x32xf32>
    %29 = tpu.matmul %26, %28, %cst_32 {dimension_numbers = #tpu.dot_dimension_numbers<[1], [0], [0], [1], [0, 0, 1, 1], [], []>} : vector<80x32xbf16>, vector<32x32xbf16>, vector<80x32xf32> -> vector<80x32xf32>
    %30 = arith.addf %24, %29 : vector<80x32xf32>
    %c0_33 = arith.constant 0 : index
    %c0_34 = arith.constant 0 : index
    %c12 = arith.constant 12 : index
    %c0_35 = arith.constant 0 : index
    %31 = vector.load %arg1[%c0_33, %c0_34, %c12, %c0_35] : memref<1x1x104x32xbf16, #tpu.memory_space<vmem>>, vector<1x1x80x32xbf16>
    %32 = vector.shape_cast %31 : vector<1x1x80x32xbf16> to vector<80x32xbf16>
    %c5 = arith.constant 5 : index
    %c0_36 = arith.constant 0 : index
    %c0_37 = arith.constant 0 : index
    %33 = vector.load %arg2[%c5, %c0_36, %c0_37] : memref<9x32x32xbf16, #tpu.memory_space<vmem>>, vector<1x32x32xbf16>
    %34 = vector.shape_cast %33 : vector<1x32x32xbf16> to vector<32x32xbf16>
    %cst_38 = arith.constant dense<0.000000e+00> : vector<80x32xf32>
    %35 = tpu.matmul %32, %34, %cst_38 {dimension_numbers = #tpu.dot_dimension_numbers<[1], [0], [0], [1], [0, 0, 1, 1], [], []>} : vector<80x32xbf16>, vector<32x32xbf16>, vector<80x32xf32> -> vector<80x32xf32>
    %36 = arith.addf %30, %35 : vector<80x32xf32>
    %c0_39 = arith.constant 0 : index
    %c0_40 = arith.constant 0 : index
    %c20 = arith.constant 20 : index
    %c0_41 = arith.constant 0 : index
    %37 = vector.load %arg1[%c0_39, %c0_40, %c20, %c0_41] : memref<1x1x104x32xbf16, #tpu.memory_space<vmem>>, vector<1x1x80x32xbf16>
    %38 = vector.shape_cast %37 : vector<1x1x80x32xbf16> to vector<80x32xbf16>
    %c6 = arith.constant 6 : index
    %c0_42 = arith.constant 0 : index
    %c0_43 = arith.constant 0 : index
    %39 = vector.load %arg2[%c6, %c0_42, %c0_43] : memref<9x32x32xbf16, #tpu.memory_space<vmem>>, vector<1x32x32xbf16>
    %40 = vector.shape_cast %39 : vector<1x32x32xbf16> to vector<32x32xbf16>
    %cst_44 = arith.constant dense<0.000000e+00> : vector<80x32xf32>
    %41 = tpu.matmul %38, %40, %cst_44 {dimension_numbers = #tpu.dot_dimension_numbers<[1], [0], [0], [1], [0, 0, 1, 1], [], []>} : vector<80x32xbf16>, vector<32x32xbf16>, vector<80x32xf32> -> vector<80x32xf32>
    %42 = arith.addf %36, %41 : vector<80x32xf32>
    %c0_45 = arith.constant 0 : index
    %c0_46 = arith.constant 0 : index
    %c21 = arith.constant 21 : index
    %c0_47 = arith.constant 0 : index
    %43 = vector.load %arg1[%c0_45, %c0_46, %c21, %c0_47] : memref<1x1x104x32xbf16, #tpu.memory_space<vmem>>, vector<1x1x80x32xbf16>
    %44 = vector.shape_cast %43 : vector<1x1x80x32xbf16> to vector<80x32xbf16>
    %c7 = arith.constant 7 : index
    %c0_48 = arith.constant 0 : index
    %c0_49 = arith.constant 0 : index
    %45 = vector.load %arg2[%c7, %c0_48, %c0_49] : memref<9x32x32xbf16, #tpu.memory_space<vmem>>, vector<1x32x32xbf16>
    %46 = vector.shape_cast %45 : vector<1x32x32xbf16> to vector<32x32xbf16>
    %cst_50 = arith.constant dense<0.000000e+00> : vector<80x32xf32>
    %47 = tpu.matmul %44, %46, %cst_50 {dimension_numbers = #tpu.dot_dimension_numbers<[1], [0], [0], [1], [0, 0, 1, 1], [], []>} : vector<80x32xbf16>, vector<32x32xbf16>, vector<80x32xf32> -> vector<80x32xf32>
    %48 = arith.addf %42, %47 : vector<80x32xf32>
    %c0_51 = arith.constant 0 : index
    %c0_52 = arith.constant 0 : index
    %c22 = arith.constant 22 : index
    %c0_53 = arith.constant 0 : index
    %49 = vector.load %arg1[%c0_51, %c0_52, %c22, %c0_53] : memref<1x1x104x32xbf16, #tpu.memory_space<vmem>>, vector<1x1x80x32xbf16>
    %50 = vector.shape_cast %49 : vector<1x1x80x32xbf16> to vector<80x32xbf16>
    %c8 = arith.constant 8 : index
    %c0_54 = arith.constant 0 : index
    %c0_55 = arith.constant 0 : index
    %51 = vector.load %arg2[%c8, %c0_54, %c0_55] : memref<9x32x32xbf16, #tpu.memory_space<vmem>>, vector<1x32x32xbf16>
    %52 = vector.shape_cast %51 : vector<1x32x32xbf16> to vector<32x32xbf16>
    %cst_56 = arith.constant dense<0.000000e+00> : vector<80x32xf32>
    %53 = tpu.matmul %50, %52, %cst_56 {dimension_numbers = #tpu.dot_dimension_numbers<[1], [0], [0], [1], [0, 0, 1, 1], [], []>} : vector<80x32xbf16>, vector<32x32xbf16>, vector<80x32xf32> -> vector<80x32xf32>
    %54 = arith.addf %48, %53 : vector<80x32xf32>
    %c0_57 = arith.constant 0 : index
    %c0_58 = arith.constant 0 : index
    %55 = vector.load %arg3[%c0_57, %c0_58] : memref<1x32xf32, #tpu.memory_space<vmem>>, vector<1x32xf32>
    %56 = vector.broadcast %55 : vector<1x32xf32> to vector<80x32xf32>
    %57 = arith.addf %54, %56 : vector<80x32xf32>
    %c0_59 = arith.constant 0 : index
    %c0_60 = arith.constant 0 : index
    %c0_61 = arith.constant 0 : index
    %58 = vector.load %arg4[%c0_59, %c0_60, %c0_61] : memref<1x80x32xf32, #tpu.memory_space<vmem>>, vector<1x80x32xf32>
    %59 = vector.shape_cast %58 : vector<1x80x32xf32> to vector<80x32xf32>
    %60 = vector.shape_cast %57 : vector<80x32xf32> to vector<1x80x32xf32>
    tpu.vector_store %arg4[%c0_59, %c0_60, %c0_61], %60 {strides = array<i32>} : memref<1x80x32xf32, #tpu.memory_space<vmem>>, vector<1x80x32xf32>,
    return
  }
  func.func @transform_0(%arg0: i32) -> (i32, i32, i32, i32) {
    %c0_i32 = arith.constant 0 : i32
    %c0_i32_0 = arith.constant 0 : i32
    %c0_i32_1 = arith.constant 0 : i32
    %c0_i32_2 = arith.constant 0 : i32
    return %arg0, %c0_i32, %c0_i32_0, %c0_i32_1 : i32, i32, i32, i32
  }
  func.func @transform_1(%arg0: i32) -> (i32, i32, i32) {
    %c0_i32 = arith.constant 0 : i32
    %c0_i32_0 = arith.constant 0 : i32
    %c0_i32_1 = arith.constant 0 : i32
    %c0_i32_2 = arith.constant 0 : i32
    return %c0_i32, %c0_i32_0, %c0_i32_1 : i32, i32, i32
  }
  func.func @transform_2(%arg0: i32) -> (i32, i32) {
    %c0_i32 = arith.constant 0 : i32
    %c0_i32_0 = arith.constant 0 : i32
    %c0_i32_1 = arith.constant 0 : i32
    return %c0_i32, %c0_i32_0 : i32, i32
  }
  func.func @transform_3(%arg0: i32) -> (i32, i32, i32) {
    %c0_i32 = arith.constant 0 : i32
    %c0_i32_0 = arith.constant 0 : i32
    %c0_i32_1 = arith.constant 0 : i32
    return %arg0, %c0_i32, %c0_i32_0 : i32, i32, i32
  }
}

module attributes {stable_mosaic.version = 11 : i64} {
  func.func @_cbam_residual_kernel(%arg0: i32, %arg1: memref<1x64x32xf32, #tpu.memory_space<vmem>>, %arg2: memref<1x64x16xbf16, #tpu.memory_space<vmem>>, %arg3: memref<16x32xbf16, #tpu.memory_space<vmem>>, %arg4: memref<1x32xf32, #tpu.memory_space<vmem>>, %arg5: memref<32x2xf32, #tpu.memory_space<vmem>>, %arg6: memref<2x32xf32, #tpu.memory_space<vmem>>, %arg7: memref<64x128xf32, #tpu.memory_space<vmem>>, %arg8: memref<1x64x32xf32, #tpu.memory_space<vmem>>) attributes {dimension_semantics = [#tpu.dimension_semantics<parallel>], iteration_bounds = array<i64: 2>, scalar_prefetch = 0 : i64, scratch_operands = 0 : i64, tpu.core_type = #tpu.core_type<tc>, window_params = [{transform_indices = @transform_0, window_bounds = array<i64: 1, 64, 32>}, {transform_indices = @transform_1, window_bounds = array<i64: 1, 64, 16>}, {pipeline_mode = #tpu.pipeline_mode<synchronous>, transform_indices = @transform_2, window_bounds = array<i64: 16, 32>}, {pipeline_mode = #tpu.pipeline_mode<synchronous>, transform_indices = @transform_3, window_bounds = array<i64: 1, 32>}, {pipeline_mode = #tpu.pipeline_mode<synchronous>, transform_indices = @transform_4, window_bounds = array<i64: 32, 2>}, {pipeline_mode = #tpu.pipeline_mode<synchronous>, transform_indices = @transform_5, window_bounds = array<i64: 2, 32>}, {pipeline_mode = #tpu.pipeline_mode<synchronous>, transform_indices = @transform_6, window_bounds = array<i64: 64, 128>}, {transform_indices = @transform_7, window_bounds = array<i64: 1, 64, 32>}]} {
    %c0 = arith.constant 0 : index
    %c0_0 = arith.constant 0 : index
    %c0_1 = arith.constant 0 : index
    %0 = vector.load %arg1[%c0, %c0_0, %c0_1] : memref<1x64x32xf32, #tpu.memory_space<vmem>>, vector<1x64x32xf32>
    %1 = vector.shape_cast %0 : vector<1x64x32xf32> to vector<64x32xf32>
    %c0_2 = arith.constant 0 : index
    %c0_3 = arith.constant 0 : index
    %c0_4 = arith.constant 0 : index
    %2 = vector.load %arg2[%c0_2, %c0_3, %c0_4] : memref<1x64x16xbf16, #tpu.memory_space<vmem>>, vector<1x64x16xbf16>
    %3 = vector.shape_cast %2 : vector<1x64x16xbf16> to vector<64x16xbf16>
    %c0_5 = arith.constant 0 : index
    %c0_6 = arith.constant 0 : index
    %4 = vector.load %arg3[%c0_5, %c0_6] : memref<16x32xbf16, #tpu.memory_space<vmem>>, vector<16x32xbf16>
    %cst = arith.constant dense<0.000000e+00> : vector<64x32xf32>
    %5 = tpu.matmul %3, %4, %cst {dimension_numbers = #tpu.dot_dimension_numbers<[1], [0], [0], [1], [0, 0, 1, 1], [], []>} : vector<64x16xbf16>, vector<16x32xbf16>, vector<64x32xf32> -> vector<64x32xf32>
    %c0_7 = arith.constant 0 : index
    %c0_8 = arith.constant 0 : index
    %6 = vector.load %arg4[%c0_7, %c0_8] : memref<1x32xf32, #tpu.memory_space<vmem>>, vector<1x32xf32>
    %7 = vector.broadcast %6 : vector<1x32xf32> to vector<64x32xf32>
    %8 = arith.addf %5, %7 : vector<64x32xf32>
    %cst_9 = arith.constant dense<0.000000e+00> : vector<32xf32>
    %9 = vector.multi_reduction <add>, %1, %cst_9 [0] : vector<64x32xf32> to vector<32xf32>
    %10 = vector.shape_cast %9 : vector<32xf32> to vector<1x32xf32>
    %cst_10 = arith.constant 6.400000e+01 : f32
    %11 = vector.broadcast %cst_10 : f32 to vector<1x32xf32>
    %12 = arith.divf %10, %11 : vector<1x32xf32>
    %cst_11 = arith.constant dense<0xFF800000> : vector<32xf32>
    %13 = vector.multi_reduction <maximumf>, %1, %cst_11 [0] : vector<64x32xf32> to vector<32xf32>
    %14 = vector.shape_cast %13 : vector<32xf32> to vector<1x32xf32>
    %15 = tpu.concatenate %12, %14 in 0 : vector<1x32xf32>, vector<1x32xf32> -> vector<2x32xf32>
    %c0_12 = arith.constant 0 : index
    %c0_13 = arith.constant 0 : index
    %16 = vector.load %arg5[%c0_12, %c0_13] : memref<32x2xf32, #tpu.memory_space<vmem>>, vector<32x2xf32>
    %cst_14 = arith.constant dense<0.000000e+00> : vector<2x2xf32>
    %17 = tpu.matmul %15, %16, %cst_14 {dimension_numbers = #tpu.dot_dimension_numbers<[1], [0], [0], [1], [0, 0, 1, 1], [], []>} : vector<2x32xf32>, vector<32x2xf32>, vector<2x2xf32> -> vector<2x2xf32>
    %cst_15 = arith.constant 0.000000e+00 : f32
    %18 = vector.broadcast %cst_15 : f32 to vector<2x2xf32>
    %19 = arith.maximumf %17, %18 : vector<2x2xf32>
    %c0_16 = arith.constant 0 : index
    %c0_17 = arith.constant 0 : index
    %20 = vector.load %arg6[%c0_16, %c0_17] : memref<2x32xf32, #tpu.memory_space<vmem>>, vector<2x32xf32>
    %cst_18 = arith.constant dense<0.000000e+00> : vector<2x32xf32>
    %21 = tpu.matmul %19, %20, %cst_18 {dimension_numbers = #tpu.dot_dimension_numbers<[1], [0], [0], [1], [0, 0, 1, 1], [], []>} : vector<2x2xf32>, vector<2x32xf32>, vector<2x32xf32> -> vector<2x32xf32>
    %22 = vector.extract_strided_slice %21 {offsets = [0, 0], sizes = [1, 32], strides = [1, 1]} : vector<2x32xf32> to vector<1x32xf32>
    %23 = vector.extract_strided_slice %21 {offsets = [1, 0], sizes = [1, 32], strides = [1, 1]} : vector<2x32xf32> to vector<1x32xf32>
    %24 = arith.addf %22, %23 : vector<1x32xf32>
    %25 = arith.negf %24 : vector<1x32xf32>
    %26 = math.exp %25 : vector<1x32xf32>
    %cst_19 = arith.constant 1.000000e+00 : f32
    %27 = vector.broadcast %cst_19 : f32 to vector<1x32xf32>
    %28 = arith.addf %27, %26 : vector<1x32xf32>
    %29 = arith.divf %27, %28 : vector<1x32xf32>
    %30 = vector.broadcast %29 : vector<1x32xf32> to vector<64x32xf32>
    %31 = arith.mulf %1, %30 : vector<64x32xf32>
    %cst_20 = arith.constant dense<0.000000e+00> : vector<64xf32>
    %32 = vector.multi_reduction <add>, %31, %cst_20 [1] : vector<64x32xf32> to vector<64xf32>
    %33 = vector.shape_cast %32 : vector<64xf32> to vector<64x1xf32>
    %cst_21 = arith.constant 3.200000e+01 : f32
    %34 = vector.broadcast %cst_21 : f32 to vector<64x1xf32>
    %35 = arith.divf %33, %34 : vector<64x1xf32>
    %cst_22 = arith.constant dense<0xFF800000> : vector<64xf32>
    %36 = vector.multi_reduction <maximumf>, %31, %cst_22 [1] : vector<64x32xf32> to vector<64xf32>
    %37 = vector.shape_cast %36 : vector<64xf32> to vector<64x1xf32>
    %38 = tpu.concatenate %35, %37 in 0 : vector<64x1xf32>, vector<64x1xf32> -> vector<128x1xf32>
    %c0_23 = arith.constant 0 : index
    %c0_24 = arith.constant 0 : index
    %39 = vector.load %arg7[%c0_23, %c0_24] : memref<64x128xf32, #tpu.memory_space<vmem>>, vector<64x128xf32>
    %cst_25 = arith.constant dense<0.000000e+00> : vector<64x1xf32>
    %40 = tpu.matmul %39, %38, %cst_25 {dimension_numbers = #tpu.dot_dimension_numbers<[1], [0], [0], [1], [0, 0, 1, 1], [], []>} : vector<64x128xf32>, vector<128x1xf32>, vector<64x1xf32> -> vector<64x1xf32>
    %41 = arith.negf %40 : vector<64x1xf32>
    %42 = math.exp %41 : vector<64x1xf32>
    %cst_26 = arith.constant 1.000000e+00 : f32
    %43 = vector.broadcast %cst_26 : f32 to vector<64x1xf32>
    %44 = arith.addf %43, %42 : vector<64x1xf32>
    %45 = arith.divf %43, %44 : vector<64x1xf32>
    %46 = vector.broadcast %45 : vector<64x1xf32> to vector<64x32xf32>
    %47 = arith.mulf %31, %46 : vector<64x32xf32>
    %48 = arith.addf %47, %8 : vector<64x32xf32>
    %cst_27 = arith.constant 0.000000e+00 : f32
    %49 = vector.broadcast %cst_27 : f32 to vector<64x32xf32>
    %50 = arith.maximumf %48, %49 : vector<64x32xf32>
    %c0_28 = arith.constant 0 : index
    %c0_29 = arith.constant 0 : index
    %c0_30 = arith.constant 0 : index
    %51 = vector.load %arg8[%c0_28, %c0_29, %c0_30] : memref<1x64x32xf32, #tpu.memory_space<vmem>>, vector<1x64x32xf32>
    %52 = vector.shape_cast %51 : vector<1x64x32xf32> to vector<64x32xf32>
    %53 = vector.shape_cast %50 : vector<64x32xf32> to vector<1x64x32xf32>
    tpu.vector_store %arg8[%c0_28, %c0_29, %c0_30], %53 {strides = array<i32>} : memref<1x64x32xf32, #tpu.memory_space<vmem>>, vector<1x64x32xf32>,
    return
  }
  func.func @transform_0(%arg0: i32) -> (i32, i32, i32) {
    %c0_i32 = arith.constant 0 : i32
    %c0_i32_0 = arith.constant 0 : i32
    %c0_i32_1 = arith.constant 0 : i32
    return %arg0, %c0_i32, %c0_i32_0 : i32, i32, i32
  }
  func.func @transform_1(%arg0: i32) -> (i32, i32, i32) {
    %c0_i32 = arith.constant 0 : i32
    %c0_i32_0 = arith.constant 0 : i32
    %c0_i32_1 = arith.constant 0 : i32
    return %arg0, %c0_i32, %c0_i32_0 : i32, i32, i32
  }
  func.func @transform_2(%arg0: i32) -> (i32, i32) {
    %c0_i32 = arith.constant 0 : i32
    %c0_i32_0 = arith.constant 0 : i32
    %c0_i32_1 = arith.constant 0 : i32
    return %c0_i32, %c0_i32_0 : i32, i32
  }
  func.func @transform_3(%arg0: i32) -> (i32, i32) {
    %c0_i32 = arith.constant 0 : i32
    %c0_i32_0 = arith.constant 0 : i32
    %c0_i32_1 = arith.constant 0 : i32
    return %c0_i32, %c0_i32_0 : i32, i32
  }
  func.func @transform_4(%arg0: i32) -> (i32, i32) {
    %c0_i32 = arith.constant 0 : i32
    %c0_i32_0 = arith.constant 0 : i32
    %c0_i32_1 = arith.constant 0 : i32
    return %c0_i32, %c0_i32_0 : i32, i32
  }
  func.func @transform_5(%arg0: i32) -> (i32, i32) {
    %c0_i32 = arith.constant 0 : i32
    %c0_i32_0 = arith.constant 0 : i32
    %c0_i32_1 = arith.constant 0 : i32
    return %c0_i32, %c0_i32_0 : i32, i32
  }
  func.func @transform_6(%arg0: i32) -> (i32, i32) {
    %c0_i32 = arith.constant 0 : i32
    %c0_i32_0 = arith.constant 0 : i32
    %c0_i32_1 = arith.constant 0 : i32
    return %c0_i32, %c0_i32_0 : i32, i32
  }
  func.func @transform_7(%arg0: i32) -> (i32, i32, i32) {
    %c0_i32 = arith.constant 0 : i32
    %c0_i32_0 = arith.constant 0 : i32
    %c0_i32_1 = arith.constant 0 : i32
    return %arg0, %c0_i32, %c0_i32_0 : i32, i32, i32
  }
}

</mosaic_0001>

<bundles_post_ra>
// kernel: _residual_block_impl.3
= control target key start
LH: loop header
LB: loop body
LE: loop exit
PB: predicated region body
PF: predicated region fallthrough
CT: control target
= control target key end

     0   :  { %s2145_s12 = smov 0   ;;  %s2541_s0 = inlined_call_operand.vmem [shape: bf16[2,4,88,16], index: 0, kind: input, shape index: {}]   ;;  %s2542_s1 = inlined_call_operand.vmem [shape: bf16[9,16,32], index: 1, kind: input, shape index: {}]   ;;  %s2543_s2 = inlined_call_operand.vmem [shape: f32[1,32], index: 2, kind: input, shape index: {}]   ;;  %s2544_s3 = inlined_call_operand.vmem [shape: f32[2,72,32], index: 3, kind: output, shape index: {}]  }
   0x1 LB: > { %s1631_s13 = sadd.s32 4294967295, %s2121_s12   ;;  %p1635_p0 = scmp.ge.s32.totalorder %s2121_s12, 1  ;;  %s2121_s12 = sphi %s2145_s12, %s13_s12  }
   0x2   : > { %p137_p1 = scmp.lt.s32.totalorder %s2121_s12, 3 }
   0x4   : > { %p138_p2 = pnand %p1635_p0, %p137_p1 }
   0x5   : > { %v2065_v0 = vld [vmem:[%s2542_s1 + $0x8] sm:$0xff] (!%p138_p2)   ;;  %v2123_v1 = vmov (!%p138_p2), 0.0   ;;  %p161_p3 = scmp.lt.s32.totalorder (!%p138_p2), %s1631_s13, 1  ;;  %vm2124_vm0 = vmmov (!%p138_p2), 0   ;;  %v2068_v2 = vld [vmem:[%s2542_s1 + $0x10] sm:$0xff] (!%p138_p2)   ;;  %vm225_vm1 = vcmask (!%p138_p2), 130048  }
   0x6   : > { %141 = sbr.rel (%p138_p2) target bundleno = 413 (0x19d), region = 32  ;;  %1853 = vmatprep.subr.bf16.mxu0 (!%p138_p2), %v2123_v1  ;;  %2051 = vmatprep.subr.bf16.mxu1 (!%p138_p2), %v2123_v1  ;;  %v2069_v3 = vld [vmem:[%s2542_s1] sm:$0xff] (!%p138_p2)   ;;  %v2074_v12 = vld [vmem:[%s2542_s1 + $0x18] sm:$0xff] (!%p138_p2)   ;;  %vm467_vm2 = vsmask.f32 (!%p138_p2), 7424  ;;  %vm1429_vm3 = vcmask (!%p138_p2), 1046528  }
   0x7   : > { %1854 = vmatpush3.bf16.msra.mxu0 (!%p138_p2), %v2065_v0  ;;  %2052 = vmatpush3.bf16.msra.mxu1 (!%p138_p2), %v2065_v0  ;;  %v2078_v22 = vld [vmem:[%s2542_s1 + $0x20] sm:$0xff] (!%p138_p2)   ;;  %vm1566_vm4 = vcmask (!%p138_p2), 261120  }
   0x8   : > { %1855 = vmatprep.mubr.msk.bf16.mxu0 (!%p138_p2), %vm2124_vm0, %v2123_v1  ;;  %1867 = vmatprep.mubr.msk.bf16.mxu1 (!%p138_p2), %vm2124_vm0, %v2123_v1 }
   0x9   : > { %1897 = vmatprep.subr.bf16.mxu0 (!%p138_p2), %v2123_v1  ;;  %1875 = vmatprep.subr.bf16.mxu1 (!%p138_p2), %v2123_v1 }
   0xd   : > { %s2546_s13 = smov (!%p161_p3, %s1631_s13), 1 }
   0xe   : > { %s2053_s16 = smul.u32 176, %s2546_s13 }
   0xf   : > { %s2054_s9 = smul.u32 72, %s2546_s13 }
  0x10   : > { %s2173_s21 = scalar_lea.vmem %s2541_s0, %s2053_s16 }
  0x11   : > { %v2066_v4 = vld [vmem:[%s2173_s21 + $0x2c] sm:$0xff]   ;;  %v2067_v5 = vld [vmem:[%s2173_s21 + $0x44] sm:$0xff]   ;;  %v2070_v6 = vld [vmem:[%s2173_s21 + $0x34] sm:$0xff]   ;;  %s2507_s13 = scalar_lea.vmem %s2544_s3, %s2054_s9 }
  0x12   : > { %1856 = vmatmul.mubr.msk.bf16.vlgmr.msra.gmra.mrb[0].mxu0 %vm225_vm1, %v2066_v4  ;;  %1868 = vmatmul.mubr.msk.bf16.vlgmr.msra.gmra.mrb[0].mxu1 %vm225_vm1, %v2067_v5  ;;  %v2071_v7 = vld [vmem:[%s2173_s21 + $0x4c] ss:$0 sps:$4 sm:$0xff]   ;;  %v2076_v8 = vld [vmem:[%s2173_s21] sm:$0xff]   ;;  %v2080_v17 = vld [vmem:[%s2173_s21 + $0x10] sm:$0xff]  }
  0x13   : > { %1898 = vmatpush3.bf16.msra.mxu0 %v2068_v2  ;;  %1876 = vmatpush3.bf16.msra.mxu1 %v2069_v3  ;;  %v2077_v9 = vld [vmem:[%s2173_s21 + $0x8] sm:$0xff]   ;;  %v471_v10 = vshll.u32 %v2076_v8, 16  ;;  %v2072_v11 = vld [vmem:[%s2173_s21 + $0x3c] sm:$0xff]   ;;  %v469_v14 = vshrl.u32 %v2076_v8, 16  ;;  %v484_v24 = vshll.u32 %v2080_v17, 16  ;;  %v488_v28 = vshrl.u32 %v2080_v17, 16 }
  0x14   : > { %1859 = vmatprep.mubr.msk.bf16.mxu0 %vm2124_vm0, %v2123_v1  ;;  %1871 = vmatprep.mubr.msk.bf16.mxu1 %vm2124_vm0, %v2123_v1  ;;  %v2073_v13 = vld [vmem:[%s2173_s21] sm:$0xff]   ;;  %v476_v16 = vshll.u32 %v2077_v9, 16  ;;  %v2205_v18 = vld [vmem:[%s2173_s21 + $0x18] sm:$0xff]   ;;  %v2075_v21 = vld [vmem:[%s2173_s21 + $0x8] sm:$0xff]   ;;  %v480_v23 = vshrl.u32 %v2077_v9, 16 }
  0x15   : > { %1919 = vmatprep.subr.bf16.mxu1 %v2123_v1  ;;  %1941 = vmatprep.subr.bf16.mxu0 %v2123_v1  ;;  %v473_v15 = vrot.slane %v471_v10, 1  ;;  %v492_v25 = vshll.u32 %v2205_v18, 16  ;;  %v2221_v27 = vld [vmem:[%s2173_s21 + $0x20] sm:$0x1f]   ;;  %v486_v29 = vrot.slane %v484_v24, 1  ;;  %v496_v30 = vshrl.u32 %v2205_v18, 16 }
  0x16   : > { %v478_v20 = vrot.slane %v476_v16, 1  ;;  %v2097_v31 = vld [vmem:[%s2173_s21 + $0x58] sm:$0xff]   ;;  %v2098_v32 = vld [vmem:[%s2173_s21 + $0x60] sm:$0xff]   ;;  %v500_v35 = vshll.u32 %v2221_v27, 16  ;;  %v2100_v39 = vld [vmem:[%s2173_s21 + $0x68] sm:$0xff]  }
  0x17   : > { %v474_v19 = vor.u32 %v473_v15, %v469_v14  ;;  %v2228_v34 = vrot.slane %v492_v25, 1  ;;  %v924_v36 = vshrl.u32 %v2097_v31, 16  ;;  %v926_v37 = vshll.u32 %v2097_v31, 16  ;;  %v2237_v41 = vld [vmem:[%s2173_s21 + $0xc] sm:$0xff]   ;;  %v1064_v42 = vld [vmem:[%s2173_s21 + $0x4] sm:$0xf] }
  0x18   : > { %v482_v33 = vor.u32 %v480_v23, %v478_v20  ;;  %v931_v38 = vshll.u32 %v2098_v32, 16  ;;  %v935_v40 = vshrl.u32 %v2098_v32, 16  ;;  %v2242_v43 = vld [vmem:[%s2173_s21 + $0x8] sm:$0xf]  ;;  %v2079_v44 = vld [vmem:[%s2173_s21 + $0x10] sm:$0xff]   ;;  %v939_v47 = vshll.u32 %v2100_v39, 16 }
  0x19   : > { %v479_v26 = vsel %vm467_vm2, %v474_v19, %v478_v20  ;;  %v928_v45 = vrot.slane %v926_v37, 1  ;;  %v1753_v48 = vcombine.low %v1064_v42, %v2242_v43  ;;  %v1110_v50 = vshll.u32 %v2237_v41, 16  ;;  %v2104_v51 = vld [vmem:[%s2173_s21 + $0x70] sm:$0xff]   ;;  %v2264_v5 = vld [vmem:[%s2173_s21 + $0x78] sm:$0x1f]  }
  0x1a   : > { %1860 = vmatmul.mubr.msk.bf16.gmra.mrb[4].mxu0 %vm225_vm1, %v2070_v6  ;;  %1872 = vmatmul.mubr.msk.bf16.gmra.mrb[4].mxu1 %vm225_vm1, %v2071_v7  ;;  %v933_v46 = vrot.slane %v931_v38, 1  ;;  %v487_v49 = vsel %vm467_vm2, %v482_v33, %v486_v29  ;;  %v941_v54 = vrot.slane %v939_v47, 1  ;;  %v943_v58 = vshrl.u32 %v2100_v39, 16  ;;  %v2257_v63 = vld [vmem:[%s2173_s21 + $0x14] sm:$0xff]   ;;  %v2281_v19 = vld [vmem:[%s2173_s21 + $0x24] sm:$0x1f]  }
  0x1b   : > { %1863 = vmatprep.mubr.msk.bf16.mxu0 %vm2124_vm0, %v2123_v1  ;;  %1877 = vmatprep.mubr.msk.bf16.mxu1 %vm2124_vm0, %v2123_v1  ;;  %v929_v52 = vor.u32 %v928_v45, %v924_v36  ;;  %v1103_v55 = vshrl.u32 %v1753_v48, 16  ;;  %v1105_v56 = vshll.u32 %v1753_v48, 16  ;;  %v1112_v57 = vrot.slane %v1110_v50, 1  ;;  %v2081_v9 = vld [vmem:[%s2173_s21 + $0x18] sm:$0xff]   ;;  %v2109_v20 = vld [vmem:[%s2173_s21 + $0x30] sm:$0xff]   ;;  %v2113_v47 = vld [vmem:[%s2173_s21 + $0x48] sm:$0xff]  }
  0x1c   : > { %v937_v53 = vor.u32 %v935_v40, %v933_v46  ;;  %v947_v59 = vshll.u32 %v2104_v51, 16  ;;  %v490_v60 = vor.u32 %v488_v28, %v486_v29  ;;  %v1114_v0 = vshrl.u32 %v2237_v41, 16  ;;  %v2110_v25 = vld [vmem:[%s2173_s21 + $0x38] sm:$0xff]   ;;  %v2111_v40 = vld [vmem:[%s2173_s21 + $0x40] sm:$0xff]  }
  0x1d   : > { %v2251_v61 = vsel %vm467_vm2, %v929_v52, %v933_v46  ;;  %v1107_v2 = vrot.slane %v1105_v56, 1  ;;  %v945_v3 = vor.u32 %v943_v58, %v941_v54  ;;  %v1118_v7 = vshll.u32 %v2257_v63, 16 }
  0x1e   : > { %v2254_v62 = vsel %vm467_vm2, %v937_v53, %v941_v54  ;;  %v949_v4 = vrot.slane %v947_v59, 1  ;;  %v1116_v6 = vor.u32 %v1114_v0, %v1112_v57  ;;  %v951_v8 = vshrl.u32 %v2104_v51, 16  ;;  %v2323_v53 = vld [vmem:[%s2173_s21 + $0x50] sm:$0x1f]   ;;  %v2083_v54 = vld [vmem:[%s2173_s21 + $0x20] ss:$0 sps:$4 sm:$0xff]  }
  0x1f   : > { %v1108_v10 = vor.u32 %v1107_v2, %v1103_v55  ;;  %v1122_v14 = vshrl.u32 %v2257_v63, 16  ;;  %v495_v15 = vsel %vm467_vm2, %v490_v60, %v2228_v34  ;;  %v1120_v16 = vrot.slane %v1118_v7, 1 }
  0x20   : > { %v953_v17 = vor.u32 %v951_v8, %v949_v4  ;;  %v1134_v29 = vshll.u32 %v2281_v19, 16  ;;  %v1282_v33 = vshrl.u32 %v2109_v20, 16  ;;  %v498_v36 = vor.u32 %v496_v30, %v2228_v34  ;;  %v2085_v8 = vld [vmem:[%s2173_s21 + $0x58] sm:$0xff]  }
  0x21   : > { %v1124_v28 = vor.u32 %v1122_v14, %v1120_v16  ;;  %v1284_v38 = vshll.u32 %v2109_v20, 16  ;;  %v1289_v39 = vshll.u32 %v2110_v25, 16  ;;  %v502_v42 = vrot.slane %v500_v35, 1  ;;  %v2089_v14 = vld [vmem:[%s2542_s1 + $0x30] sm:$0xff]  }
  0x22   : > { %1864 = vmatmul.mubr.msk.bf16.gmra.mrb[8].mxu0 %vm225_vm1, %v2072_v11  ;;  %1878 = vmatmul.mubr.msk.bf16.vlgmr.msra.gmra.mrb[8].mxu1 %vm225_vm1, %v2073_v13  ;;  %v2271_v11 = vsel %vm467_vm2, %v945_v3, %v949_v4  ;;  %v2275_v13 = vld [vmem:[%s2173_s21 + $0x1c] sm:$0xff]   ;;  %v2304_v37 = vrot.slane %v1134_v29, 1  ;;  %v1293_v30 = vshrl.u32 %v2110_v25, 16  ;;  %v1297_v46 = vshll.u32 %v2111_v40, 16  ;;  %v2092_v20 = vld [vmem:[%s2173_s21 + $0x70] sm:$0xff]  }
  0x23   : > { %1899 = vmatprep.mubr.msk.bf16.mxu0 %vm2124_vm0, %v2123_v1  ;;  %1920 = vmatpush3.bf16.msra.mxu1 %v2074_v12  ;;  %v955_v12 = vshll.u32 %v2264_v5, 16  ;;  %v1126_v23 = vshll.u32 %v2275_v13, 16  ;;  %v1130_v24 = vshrl.u32 %v2275_v13, 16  ;;  %v1286_v34 = vrot.slane %v1284_v38, 1  ;;  %v2096_v25 = vld [vmem:[%s2173_s21 + $0xa4] ss:$0 sps:$4 sm:$0xff]  }
  0x24   : > { %1881 = vmatprep.mubr.msk.bf16.mxu1 %vm2124_vm0, %v2123_v1  ;;  %1963 = vmatprep.subr.bf16.mxu1 %v2123_v1  ;;  %v1291_v45 = vrot.slane %v1289_v39, 1  ;;  %v1299_v51 = vrot.slane %v1297_v46, 1  ;;  %v1305_v52 = vshll.u32 %v2113_v47, 16  ;;  %v503_v55 = vsel %vm467_vm2, %v498_v36, %v502_v42  ;;  %v2103_v29 = vld [vmem:[%s2542_s1 + $0x40] sm:$0xff]  }
  0x25   : > { %v1128_v32 = vrot.slane %v1126_v23, 1  ;;  %v1287_v50 = vor.u32 %v1286_v34, %v1282_v33  ;;  %v1309_v56 = vshrl.u32 %v2113_v47, 16  ;;  %v1313_v0 = vshll.u32 %v2323_v53, 16  ;;  %v2095_v23 = vld [vmem:[%s2173_s21 + $0x9c] sm:$0xff]  }
  0x26   : > { %v1295_v35 = vor.u32 %v1293_v30, %v1291_v45  ;;  %v1307_v60 = vrot.slane %v1305_v52, 1  ;;  %v504_v2 = vshrl.u32 %v2221_v27, 16  ;;  %v1435_v33 = vrot.slane %v2275_v13, 1 }
  0x27   : > { %v1132_v18 = vor.u32 %v1130_v24, %v1128_v32  ;;  %v2094_v24 = vld [vmem:[%s2173_s21 + $0x78] ss:$0 sps:$4 sm:$0xff]   ;;  %v1317_v36 = vshrl.u32 %v2323_v53, 16 }
  0x28   : > { %v2331_v58 = vsel %vm467_vm2, %v1295_v35, %v1299_v51  ;;  %v1311_v4 = vor.u32 %v1309_v56, %v1307_v60  ;;  %v506_v27 = vor.u32 %v504_v2, %v502_v42 }
  0x29   : > { %v2320_v48 = vsel %vm467_vm2, %v1132_v18, %v2304_v37 }
  0x2a   : > { %1900 = vmatmul.mubr.msk.bf16.vlgmr.msra.gmra.mrb[12].mxu0 %vm225_vm1, %v479_v26  ;;  %1882 = vmatmul.mubr.msk.bf16.gmra.mrb[12].mxu1 %vm225_vm1, %v2075_v21  ;;  %v2285_v21 = vsel %vm467_vm2, %v1108_v10, %v1112_v57  ;;  %v2293_v26 = vsel %vm467_vm2, %v1116_v6, %v1120_v16  ;;  %v2328_v57 = vsel %vm467_vm2, %v1287_v50, %v1291_v45  ;;  %v2342_v6 = vrot.slane %v1313_v0, 1  ;;  %v2088_v10 = vld [vmem:[%s2173_s21 + $0x84] sm:$0xff]  }
  0x2b   : > { %1942 = vmatpush3.bf16.msra.mxu0 %v2078_v22  ;;  %1885 = vmatprep.mubr.msk.bf16.mxu1 %vm2124_vm0, %v2123_v1  ;;  %v2287_v22 = vrot.slane %v955_v12, 1  ;;  %v2087_v12 = vld [vmem:[%s2173_s21 + $0x60] sm:$0xff]   ;;  %v2090_v16 = vld [vmem:[%s2173_s21 + $0x68] sm:$0xff]  }
  0x2c   : > { %1903 = vmatprep.mubr.msk.bf16.mxu0 %vm2124_vm0, %v2123_v1  ;;  %1985 = vmatprep.subr.bf16.mxu0 %v2123_v1  ;;  %v2348_v7 = vsel %vm467_vm2, %v1311_v4, %v2342_v6  ;;  %v1319_v13 = vor.u32 %v1317_v36, %v2342_v6 }
  0x2d   : > { %v2298_v31 = vsel %vm467_vm2, %v953_v17, %v2287_v22  ;;  %v2093_v17 = vld [vmem:[%s2173_s21 + $0x94] sm:$0xff]  }
  0x32   : > { %1904 = vmatmul.mubr.msk.bf16.gmra.mrb[16].mxu0 %vm225_vm1, %v487_v49  ;;  %1886 = vmatmul.mubr.msk.bf16.gmra.mrb[16].mxu1 %vm225_vm1, %v2079_v44  ;;  %v2313_v44 = vsel %vm467_vm2, %v1124_v28, %v1128_v32  ;;  %v1301_v49 = vshrl.u32 %v2111_v40, 16  ;;  %v2099_v28 = vld [vmem:[%s2542_s1 + $0x38] sm:$0xff]  }
  0x33   : > { %1907 = vmatprep.mubr.msk.bf16.mxu0 %vm2124_vm0, %v2123_v1  ;;  %1889 = vmatprep.mubr.msk.bf16.mxu1 %vm2124_vm0, %v2123_v1 }
  0x34   : > { %v1303_v59 = vor.u32 %v1301_v49, %v1299_v51 }
  0x36   : > { %v2337_v3 = vsel %vm467_vm2, %v1303_v59, %v1307_v60 }
  0x3a   : > { %1908 = vmatmul.mubr.msk.bf16.gmra.mrb[20].mxu0 %vm225_vm1, %v495_v15  ;;  %1890 = vmatmul.mubr.msk.bf16.gmra.mrb[20].mxu1 %vm225_vm1, %v2081_v9  ;;  %v2086_v9 = vld [vmem:[%s2542_s1 + $0x28] sm:$0xff]  }
  0x3b   : > { %1911 = vmatprep.mubr.msk.bf16.mxu0 %vm2124_vm0, %v2123_v1  ;;  %1893 = vmatprep.mubr.msk.bf16.mxu1 %vm2124_vm0, %v2123_v1  ;;  %v2091_v15 = vld [vmem:[%s2173_s21 + $0x8c] sm:$0xff]  }
  0x42   : > { %1912 = vmatmul.mubr.msk.bf16.gmra.mrb[24].mxu0 %vm225_vm1, %v503_v55  ;;  %1894 = vmatmul.mubr.msk.bf16.gmra.mrb[24].mxu1 %vm225_vm1, %v2083_v54 }
  0x43   : > { %1915 = vmatprep.mubr.msk.bf16.mxu0 %vm2124_vm0, %v2123_v1  ;;  %1921 = vmatprep.mubr.msk.bf16.mxu1 %vm2124_vm0, %v2123_v1 }
  0x4a   : > { %1916 = vmatmul.mubr.msk.bf16.gmra.mrb[28].mxu0 %vm225_vm1, %v506_v27  ;;  %1922 = vmatmul.mubr.msk.bf16.vlgmr.msra.gmra.mrb[28].mxu1 %vm225_vm1, %v2085_v8 }
  0x4b   : > { %1943 = vmatprep.mubr.msk.bf16.mxu0 %vm2124_vm0, %v2123_v1  ;;  %1964 = vmatpush3.bf16.msra.mxu1 %v2086_v9 }
  0x4c   : > { %1925 = vmatprep.mubr.msk.bf16.mxu1 %vm2124_vm0, %v2123_v1  ;;  %2007 = vmatprep.subr.bf16.mxu1 %v2123_v1 }
  0x52   : > { %1944 = vmatmul.mubr.msk.bf16.vlgmr.msra.gmra.mrb[32].mxu0 %vm225_vm1, %v2088_v10  ;;  %1926 = vmatmul.mubr.msk.bf16.gmra.mrb[32].mxu1 %vm225_vm1, %v2087_v12 }
  0x53   : > { %1986 = vmatpush3.bf16.msra.mxu0 %v2089_v14  ;;  %1929 = vmatprep.mubr.msk.bf16.mxu1 %vm2124_vm0, %v2123_v1 }
  0x54   : > { %1947 = vmatprep.mubr.msk.bf16.mxu0 %vm2124_vm0, %v2123_v1  ;;  %2029 = vmatprep.subr.bf16.mxu0 %v2123_v1 }
  0x5a   : > { %1948 = vmatmul.mubr.msk.bf16.gmra.mrb[36].mxu0 %vm225_vm1, %v2091_v15  ;;  %1930 = vmatmul.mubr.msk.bf16.gmra.mrb[36].mxu1 %vm225_vm1, %v2090_v16 }
  0x5b   : > { %1951 = vmatprep.mubr.msk.bf16.mxu0 %vm2124_vm0, %v2123_v1  ;;  %1933 = vmatprep.mubr.msk.bf16.mxu1 %vm2124_vm0, %v2123_v1 }
  0x62   : > { %1952 = vmatmul.mubr.msk.bf16.gmra.mrb[40].mxu0 %vm225_vm1, %v2093_v17  ;;  %1934 = vmatmul.mubr.msk.bf16.gmra.mrb[40].mxu1 %vm225_vm1, %v2092_v20 }
  0x63   : > { %1955 = vmatprep.mubr.msk.bf16.mxu0 %vm2124_vm0, %v2123_v1  ;;  %1937 = vmatprep.mubr.msk.bf16.mxu1 %vm2124_vm0, %v2123_v1 }
  0x6a   : > { %1956 = vmatmul.mubr.msk.bf16.gmra.mrb[44].mxu0 %vm225_vm1, %v2095_v23  ;;  %1938 = vmatmul.mubr.msk.bf16.gmra.mrb[44].mxu1 %vm225_vm1, %v2094_v24 }
  0x6b   : > { %1959 = vmatprep.mubr.msk.bf16.mxu0 %vm2124_vm0, %v2123_v1  ;;  %1965 = vmatprep.mubr.msk.bf16.mxu1 %vm2124_vm0, %v2123_v1 }
  0x72   : > { %1960 = vmatmul.mubr.msk.bf16.gmra.mrb[48].mxu0 %vm225_vm1, %v2096_v25  ;;  %1966 = vmatmul.mubr.msk.bf16.vlgmr.msra.gmra.mrb[48].mxu1 %vm225_vm1, %v2251_v61  ;;  %v959_v61 = vshrl.u32 %v2264_v5, 16 }
  0x73   : > { %1987 = vmatprep.mubr.msk.bf16.mxu0 %vm2124_vm0, %v2123_v1  ;;  %2008 = vmatpush3.bf16.msra.mxu1 %v2099_v28 }
  0x74   : > { %1969 = vmatprep.mubr.msk.bf16.mxu1 %vm2124_vm0, %v2123_v1 }
  0x7a   : > { %1988 = vmatmul.mubr.msk.bf16.vlgmr.msra.gmra.mrb[52].mxu0 %vm225_vm1, %v2285_v21  ;;  %1970 = vmatmul.mubr.msk.bf16.gmra.mrb[52].mxu1 %vm225_vm1, %v2254_v62  ;;  %v961_v62 = vor.u32 %v959_v61, %v2287_v22  ;;  %v1422_v21 = vld [vmem:[%s2173_s21 + $0x4] sm:$0xe] }
  0x7b   : > { %2030 = vmatpush3.bf16.msra.mxu0 %v2103_v29  ;;  %1973 = vmatprep.mubr.msk.bf16.mxu1 %vm2124_vm0, %v2123_v1 }
  0x7c   : > { %1991 = vmatprep.mubr.msk.bf16.mxu0 %vm2124_vm0, %v2123_v1 }
  0x82   : > { %1992 = vmatmul.mubr.msk.bf16.gmra.mrb[56].mxu0 %vm225_vm1, %v2293_v26  ;;  %1974 = vmatmul.mubr.msk.bf16.gmra.mrb[56].mxu1 %vm225_vm1, %v2271_v11  ;;  %v1138_v11 = vshrl.u32 %v2281_v19, 16  ;;  %v1789_v26 = vcombine.low %v1422_v21, %v2242_v43  ;;  %v1433_v43 = vrot.slane %v2257_v63, 1 }
  0x83   : > { %1995 = vmatprep.mubr.msk.bf16.mxu0 %vm2124_vm0, %v2123_v1  ;;  %1977 = vmatprep.mubr.msk.bf16.mxu1 %vm2124_vm0, %v2123_v1 }
  0x84   : > { %v1140_v5 = vor.u32 %v1138_v11, %v2304_v37  ;;  %v1430_v22 = vrot.slane %v1789_v26, 1  ;;  %v1436_v63 = vsel %vm1429_vm3, %v1433_v43, %v1435_v33  ;;  %v1437_v37 = vrot.slane %v2281_v19, 1 }
  0x86   : > { %v1438_v38 = vsel %vm1429_vm3, %v1435_v33, %v1437_v37 }
  0x8a   : > { %1996 = vmatmul.mubr.msk.bf16.gmra.mrb[60].mxu0 %vm225_vm1, %v2313_v44  ;;  %1978 = vmatmul.mubr.msk.bf16.gmra.mrb[60].mxu1 %vm225_vm1, %v2298_v31  ;;  %v1431_v31 = vrot.slane %v2237_v41, 1 }
  0x8b   : > { %1999 = vmatprep.mubr.msk.bf16.mxu0 %vm2124_vm0, %v2123_v1  ;;  %1981 = vmatprep.mubr.msk.bf16.mxu1 %vm2124_vm0, %v2123_v1 }
  0x8c   : > { %v1432_v32 = vsel %vm1429_vm3, %v1430_v22, %v1431_v31  ;;  %v1434_v41 = vsel %vm1429_vm3, %v1431_v31, %v1433_v43 }
  0x92   : > { %2000 = vmatmul.mubr.msk.bf16.gmra.mrb[64].mxu0 %vm225_vm1, %v2320_v48  ;;  %1982 = vmatmul.mubr.msk.bf16.gmra.mrb[64].mxu1 %vm225_vm1, %v961_v62 }
  0x93   : > { %2003 = vmatprep.mubr.msk.bf16.mxu0 %vm2124_vm0, %v2123_v1  ;;  %2009 = vmatprep.mubr.msk.bf16.mxu1 %vm2124_vm0, %v2123_v1 }
  0x9a   : > { %2004 = vmatmul.mubr.msk.bf16.gmra.mrb[68].mxu0 %vm225_vm1, %v1140_v5  ;;  %2010 = vmatmul.mubr.msk.bf16.vlgmr.msra.gmra.mrb[68].mxu1 %vm225_vm1, %v2328_v57 }
  0x9b   : > { %2031 = vmatprep.mubr.msk.bf16.mxu0 %vm2124_vm0, %v2123_v1  ;;  %2013 = vmatprep.mubr.msk.bf16.mxu1 %vm2124_vm0, %v2123_v1 }
  0xa2   : > { %2032 = vmatmul.mubr.msk.bf16.vlgmr.msra.gmra.mrb[72].mxu0 %vm225_vm1, %v1432_v32  ;;  %2014 = vmatmul.mubr.msk.bf16.gmra.mrb[72].mxu1 %vm225_vm1, %v2331_v58 }
  0xa3   : > { %2035 = vmatprep.mubr.msk.bf16.mxu0 %vm2124_vm0, %v2123_v1  ;;  %2017 = vmatprep.mubr.msk.bf16.mxu1 %vm2124_vm0, %v2123_v1 }
  0xaa   : > { %2036 = vmatmul.mubr.msk.bf16.gmra.mrb[76].mxu0 %vm225_vm1, %v1434_v41  ;;  %2018 = vmatmul.mubr.msk.bf16.gmra.mrb[76].mxu1 %vm225_vm1, %v2337_v3 }
  0xab   : > { %2039 = vmatprep.mubr.msk.bf16.mxu0 %vm2124_vm0, %v2123_v1  ;;  %2021 = vmatprep.mubr.msk.bf16.mxu1 %vm2124_vm0, %v2123_v1 }
  0xb2   : > { %2040 = vmatmul.mubr.msk.bf16.gmra.mrb[80].mxu0 %vm225_vm1, %v1436_v63  ;;  %2022 = vmatmul.mubr.msk.bf16.gmra.mrb[80].mxu1 %vm225_vm1, %v2348_v7 }
  0xb3   : > { %2043 = vmatprep.mubr.msk.bf16.mxu0 %vm2124_vm0, %v2123_v1  ;;  %2025 = vmatprep.mubr.msk.bf16.mxu1 %vm2124_vm0, %v2123_v1 }
  0xba   : > { %2044 = vmatmul.mubr.msk.bf16.gmra.mrb[84].mxu0 %vm225_vm1, %v1438_v38  ;;  %2026 = vmatmul.mubr.msk.bf16.gmra.mrb[84].mxu1 %vm225_vm1, %v1319_v13 }
  0xbb   : > { %2047 = vmatprep.mubr.msk.bf16.mxu0 %vm2124_vm0, %v2123_v1 }
  0xc2   : > { %2048 = vmatmul.mubr.msk.bf16.gmra.mrb[88].mxu0 %vm225_vm1, %v1437_v37 }
  0xe5   : > { %v275_v39 = vpop.f32.mrb[0].mxu0  ;;  %v299_v42 = vpop.f32.mrb[0].mxu1 }
  0xe6   : > { %v1857_v40 = vpop.f32.mrb[1].mxu0  ;;  %v1869_v44 = vpop.f32.mrb[1].mxu1 }
  0xe7   : > { %v278_v19 = vpop.f32.mrb[2].mxu0  ;;  %v302_v30 = vpop.f32.mrb[2].mxu1 }
  0xe8   : > { %v1858_v18 = vpop.f32.mrb[3].mxu0  ;;  %v1870_v34 = vpop.f32.mrb[3].mxu1 }
  0xed   : > { %v283_v45 = vpop.f32.mrb[4].mxu0  ;;  %v307_v47 = vpop.f32.mrb[4].mxu1 }
  0xee   : > { %v1861_v46 = vpop.f32.mrb[5].mxu0  ;;  %v1873_v49 = vpop.f32.mrb[5].mxu1 }
  0xef   : > { %v286_v48 = vpop.f32.mrb[6].mxu0  ;;  %v310_v35 = vpop.f32.mrb[6].mxu1 }
  0xf0   : > { %v1862_v50 = vpop.f32.mrb[7].mxu0  ;;  %v1874_v51 = vpop.f32.mrb[7].mxu1 }
  0xf5   : > { %v291_v52 = vpop.f32.mrb[8].mxu0  ;;  %v391_v1 = vpop.f32.mrb[8].mxu1 }
  0xf6   : > { %v1865_v53 = vpop.f32.mrb[9].mxu0  ;;  %v392_v54 = vadd.f32 %v391_v1, %v275_v39  ;;  %v1879_v55 = vpop.f32.mrb[9].mxu1 }
  0xf7   : > { %v294_v56 = vpop.f32.mrb[10].mxu0  ;;  %v394_v57 = vpop.f32.mrb[10].mxu1 }
  0xf8   : > { %v1866_v58 = vpop.f32.mrb[11].mxu0  ;;  %v395_v59 = vadd.f32 %v394_v57, %v278_v19  ;;  %v1880_v60 = vpop.f32.mrb[11].mxu1 }
  0xfd   : > { %v562_v0 = vpop.f32.mrb[12].mxu0  ;;  %v399_v2 = vpop.f32.mrb[12].mxu1 }
  0xfe   : > { %v600_v3 = vadd.f32 %v562_v0, %v392_v54  ;;  %v1901_v4 = vpop.f32.mrb[13].mxu0  ;;  %v400_v6 = vadd.f32 %v399_v2, %v283_v45  ;;  %v1883_v7 = vpop.f32.mrb[13].mxu1 }
  0xff   : > { %v565_v27 = vpop.f32.mrb[14].mxu0  ;;  %v402_v8 = vpop.f32.mrb[14].mxu1 }
 0x100   : > { %v601_v9 = vadd.f32 %v565_v27, %v395_v59  ;;  %v1902_v10 = vpop.f32.mrb[15].mxu0  ;;  %v403_v12 = vadd.f32 %v402_v8, %v286_v48  ;;  %v1884_v14 = vpop.f32.mrb[15].mxu1 }
 0x105   : > { %v570_v15 = vpop.f32.mrb[16].mxu0  ;;  %v407_v16 = vpop.f32.mrb[16].mxu1 }
 0x106   : > { %v602_v17 = vadd.f32 %v570_v15, %v400_v6  ;;  %v1905_v20 = vpop.f32.mrb[17].mxu0  ;;  %v408_v23 = vadd.f32 %v407_v16, %v291_v52  ;;  %v1887_v24 = vpop.f32.mrb[17].mxu1 }
 0x107   : > { %v573_v25 = vpop.f32.mrb[18].mxu0  ;;  %v410_v28 = vpop.f32.mrb[18].mxu1 }
 0x108   : > { %v603_v29 = vadd.f32 %v573_v25, %v403_v12  ;;  %v1906_v61 = vpop.f32.mrb[19].mxu0  ;;  %v411_v62 = vadd.f32 %v410_v28, %v294_v56  ;;  %v1888_v11 = vpop.f32.mrb[19].mxu1 }
 0x10d   : > { %v578_v21 = vpop.f32.mrb[20].mxu0  ;;  %v415_v5 = vpop.f32.mrb[20].mxu1 }
 0x10e   : > { %v604_v26 = vadd.f32 %v578_v21, %v408_v23  ;;  %v1909_v22 = vpop.f32.mrb[21].mxu0  ;;  %v416_v31 = vadd.f32 %v415_v5, %v299_v42  ;;  %v1891_v32 = vpop.f32.mrb[21].mxu1 }
 0x10f   : > { %v581_v43 = vpop.f32.mrb[22].mxu0  ;;  %v418_v41 = vpop.f32.mrb[22].mxu1 }
 0x110   : > { %v605_v33 = vadd.f32 %v581_v43, %v411_v62  ;;  %v1910_v63 = vpop.f32.mrb[23].mxu0  ;;  %v419_v36 = vadd.f32 %v418_v41, %v302_v30  ;;  %v1892_v37 = vpop.f32.mrb[23].mxu1 }
 0x115   : > { %v586_v13 = vpop.f32.mrb[24].mxu0  ;;  %v423_v38 = vpop.f32.mrb[24].mxu1 }
 0x116   : > { %v606_v39 = vadd.f32 %v586_v13, %v416_v31  ;;  %v1913_v40 = vpop.f32.mrb[25].mxu0  ;;  %v424_v19 = vadd.f32 %v423_v38, %v307_v47  ;;  %v1895_v18 = vpop.f32.mrb[25].mxu1 }
 0x117   : > { %v589_v44 = vpop.f32.mrb[26].mxu0  ;;  %v426_v46 = vpop.f32.mrb[26].mxu1 }
 0x118   : > { %v607_v34 = vadd.f32 %v589_v44, %v419_v36  ;;  %v1914_v45 = vpop.f32.mrb[27].mxu0  ;;  %v1896_v48 = vpop.f32.mrb[27].mxu1 }
 0x11d   : > { %v594_v49 = vpop.f32.mrb[28].mxu0  ;;  %v700_v50 = vpop.f32.mrb[28].mxu1 }
 0x11e   : > { %v608_v42 = vadd.f32 %v594_v49, %v424_v19  ;;  %v1917_v35 = vpop.f32.mrb[29].mxu0  ;;  %v738_v51 = vadd.f32 %v700_v50, %v600_v3  ;;  %v1923_v52 = vpop.f32.mrb[29].mxu1 }
 0x11f   : > { %v597_v1 = vpop.f32.mrb[30].mxu0  ;;  %v703_v30 = vpop.f32.mrb[30].mxu1 }
 0x120   : > { %v1918_v53 = vpop.f32.mrb[31].mxu0  ;;  %v739_v54 = vadd.f32 %v703_v30, %v601_v9  ;;  %v1924_v55 = vpop.f32.mrb[31].mxu1 }
 0x125   : > { %v838_v56 = vpop.f32.mrb[32].mxu0  ;;  %v708_v57 = vpop.f32.mrb[32].mxu1 }
 0x126   : > { %v876_v47 = vadd.f32 %v838_v56, %v738_v51  ;;  %v1945_v58 = vpop.f32.mrb[33].mxu0  ;;  %v740_v59 = vadd.f32 %v708_v57, %v602_v17  ;;  %v1927_v60 = vpop.f32.mrb[33].mxu1 }
 0x127   : > { %v841_v0 = vpop.f32.mrb[34].mxu0  ;;  %v711_v2 = vpop.f32.mrb[34].mxu1 }
 0x128   : > { %v877_v4 = vadd.f32 %v841_v0, %v739_v54  ;;  %v1946_v6 = vpop.f32.mrb[35].mxu0  ;;  %v741_v7 = vadd.f32 %v711_v2, %v603_v29  ;;  %v1928_v27 = vpop.f32.mrb[35].mxu1 }
 0x12d   : > { %v846_v8 = vpop.f32.mrb[36].mxu0  ;;  %v716_v3 = vpop.f32.mrb[36].mxu1 }
 0x12e   : > { %v878_v10 = vadd.f32 %v846_v8, %v740_v59  ;;  %v1949_v12 = vpop.f32.mrb[37].mxu0  ;;  %v742_v14 = vadd.f32 %v716_v3, %v604_v26  ;;  %v1931_v15 = vpop.f32.mrb[37].mxu1 }
 0x12f   : > { %v849_v9 = vpop.f32.mrb[38].mxu0  ;;  %v719_v16 = vpop.f32.mrb[38].mxu1 }
 0x130   : > { %v879_v20 = vadd.f32 %v849_v9, %v741_v7  ;;  %v1950_v23 = vpop.f32.mrb[39].mxu0  ;;  %v743_v24 = vadd.f32 %v719_v16, %v605_v33  ;;  %v1932_v25 = vpop.f32.mrb[39].mxu1 }
 0x135   : > { %v854_v17 = vpop.f32.mrb[40].mxu0  ;;  %v724_v28 = vpop.f32.mrb[40].mxu1 }
 0x136   : > { %v880_v61 = vadd.f32 %v854_v17, %v742_v14  ;;  %v1953_v62 = vpop.f32.mrb[41].mxu0  ;;  %v744_v11 = vadd.f32 %v724_v28, %v606_v39  ;;  %v1935_v21 = vpop.f32.mrb[41].mxu1 }
 0x137   : > { %v857_v29 = vpop.f32.mrb[42].mxu0  ;;  %v727_v5 = vpop.f32.mrb[42].mxu1 }
 0x138   : > { %v881_v22 = vadd.f32 %v857_v29, %v743_v24  ;;  %v1954_v31 = vpop.f32.mrb[43].mxu0  ;;  %v745_v32 = vadd.f32 %v727_v5, %v607_v34  ;;  %v1936_v43 = vpop.f32.mrb[43].mxu1 }
 0x13d   : > { %v862_v26 = vpop.f32.mrb[44].mxu0  ;;  %v732_v41 = vpop.f32.mrb[44].mxu1 }
 0x13e   : > { %v882_v63 = vadd.f32 %v862_v26, %v744_v11  ;;  %v1957_v36 = vpop.f32.mrb[45].mxu0  ;;  %v746_v37 = vadd.f32 %v732_v41, %v608_v42  ;;  %v1939_v33 = vpop.f32.mrb[45].mxu1 }
 0x13f   : > { %v865_v13 = vpop.f32.mrb[46].mxu0  ;;  %v735_v19 = vpop.f32.mrb[46].mxu1 }
 0x140   : > { %v883_v38 = vadd.f32 %v865_v13, %v745_v32  ;;  %v1958_v40 = vpop.f32.mrb[47].mxu0  ;;  %v1940_v44 = vpop.f32.mrb[47].mxu1 }
 0x145   : > { %v870_v18 = vpop.f32.mrb[48].mxu0  ;;  %v1017_v45 = vpop.f32.mrb[48].mxu1 }
 0x146   : > { %v884_v39 = vadd.f32 %v870_v18, %v746_v37  ;;  %v1961_v46 = vpop.f32.mrb[49].mxu0  ;;  %v1055_v48 = vadd.f32 %v1017_v45, %v876_v47  ;;  %v1967_v49 = vpop.f32.mrb[49].mxu1 }
 0x147   : > { %v873_v50 = vpop.f32.mrb[50].mxu0  ;;  %v1020_v34 = vpop.f32.mrb[50].mxu1 }
 0x148   : > { %v1962_v35 = vpop.f32.mrb[51].mxu0  ;;  %v1056_v51 = vadd.f32 %v1020_v34, %v877_v4  ;;  %v1968_v52 = vpop.f32.mrb[51].mxu1  ;;  %v2501_v50 = vld [vmem:[%s2543_s2] ss:$0 sm:$0xff] }
 0x14d   : > { %v1196_v1 = vpop.f32.mrb[52].mxu0  ;;  %v1025_v30 = vpop.f32.mrb[52].mxu1 }
 0x14e   : > { %v1234_v42 = vadd.f32 %v1196_v1, %v1055_v48  ;;  %v1989_v53 = vpop.f32.mrb[53].mxu0  ;;  %v1057_v54 = vadd.f32 %v1025_v30, %v878_v10  ;;  %v1971_v55 = vpop.f32.mrb[53].mxu1 }
 0x14f   : > { %v1199_v56 = vpop.f32.mrb[54].mxu0  ;;  %v1028_v57 = vpop.f32.mrb[54].mxu1 }
 0x150   : > { %v1235_v58 = vadd.f32 %v1199_v56, %v1056_v51  ;;  %v1990_v59 = vpop.f32.mrb[55].mxu0  ;;  %v1058_v60 = vadd.f32 %v1028_v57, %v879_v20  ;;  %v1972_v0 = vpop.f32.mrb[55].mxu1 }
 0x155   : > { %v1204_v2 = vpop.f32.mrb[56].mxu0  ;;  %v1033_v47 = vpop.f32.mrb[56].mxu1 }
 0x156   : > { %v1236_v6 = vadd.f32 %v1204_v2, %v1057_v54  ;;  %v1993_v7 = vpop.f32.mrb[57].mxu0  ;;  %v1059_v27 = vadd.f32 %v1033_v47, %v880_v61  ;;  %v1975_v8 = vpop.f32.mrb[57].mxu1 }
 0x157   : > { %v1207_v4 = vpop.f32.mrb[58].mxu0  ;;  %v1036_v3 = vpop.f32.mrb[58].mxu1 }
 0x158   : > { %v1237_v12 = vadd.f32 %v1207_v4, %v1058_v60  ;;  %v1994_v14 = vpop.f32.mrb[59].mxu0  ;;  %v1060_v15 = vadd.f32 %v1036_v3, %v881_v22  ;;  %v1976_v9 = vpop.f32.mrb[59].mxu1 }
 0x15d   : > { %v1212_v10 = vpop.f32.mrb[60].mxu0  ;;  %v1041_v16 = vpop.f32.mrb[60].mxu1 }
 0x15e   : > { %v1238_v23 = vadd.f32 %v1212_v10, %v1059_v27  ;;  %v1997_v24 = vpop.f32.mrb[61].mxu0  ;;  %v1061_v25 = vadd.f32 %v1041_v16, %v882_v63  ;;  %v1979_v17 = vpop.f32.mrb[61].mxu1 }
 0x15f   : > { %v1215_v20 = vpop.f32.mrb[62].mxu0  ;;  %v1044_v28 = vpop.f32.mrb[62].mxu1 }
 0x160   : > { %v1239_v62 = vadd.f32 %v1215_v20, %v1060_v15  ;;  %v1998_v11 = vpop.f32.mrb[63].mxu0  ;;  %v1062_v21 = vadd.f32 %v1044_v28, %v883_v38  ;;  %v1980_v29 = vpop.f32.mrb[63].mxu1 }
 0x165   : > { %v1220_v61 = vpop.f32.mrb[64].mxu0  ;;  %v1049_v5 = vpop.f32.mrb[64].mxu1 }
 0x166   : > { %v2491_v31 = vadd.f32 %v1220_v61, %v1061_v25  ;;  %v2001_v32 = vpop.f32.mrb[65].mxu0  ;;  %v1063_v43 = vadd.f32 %v1049_v5, %v884_v39  ;;  %v1983_v26 = vpop.f32.mrb[65].mxu1 }
 0x167   : > { %v1223_v22 = vpop.f32.mrb[66].mxu0  ;;  %v1052_v63 = vpop.f32.mrb[66].mxu1 }
 0x168   : > { %v2493_v41 = vadd.f32 %v1223_v22, %v1062_v21  ;;  %v2002_v36 = vpop.f32.mrb[67].mxu0  ;;  %v1984_v37 = vpop.f32.mrb[67].mxu1 }
 0x16d   : > { %v1228_v13 = vpop.f32.mrb[68].mxu0  ;;  %v1375_v40 = vpop.f32.mrb[68].mxu1 }
 0x16e   : > { %v2495_v33 = vadd.f32 %v1228_v13, %v1063_v43  ;;  %v2005_v38 = vpop.f32.mrb[69].mxu0  ;;  %v1413_v19 = vadd.f32 %v1375_v40, %v1234_v42  ;;  %v2011_v44 = vpop.f32.mrb[69].mxu1 }
 0x16f   : > { %v1231_v18 = vpop.f32.mrb[70].mxu0  ;;  %v1378_v45 = vpop.f32.mrb[70].mxu1 }
 0x170   : > { %v2006_v46 = vpop.f32.mrb[71].mxu0  ;;  %v1414_v48 = vadd.f32 %v1378_v45, %v1235_v58  ;;  %v2012_v39 = vpop.f32.mrb[71].mxu1 }
 0x175   : > { %v1494_v49 = vpop.f32.mrb[72].mxu0  ;;  %v1383_v34 = vpop.f32.mrb[72].mxu1 }
 0x176   : > { %v1532_v35 = vadd.f32 %v1494_v49, %v1413_v19  ;;  %v2033_v51 = vpop.f32.mrb[73].mxu0  ;;  %v1415_v52 = vadd.f32 %v1383_v34, %v1236_v6  ;;  %v2015_v1 = vpop.f32.mrb[73].mxu1 }
 0x177   : > { %v1497_v30 = vpop.f32.mrb[74].mxu0  ;;  %v1386_v53 = vpop.f32.mrb[74].mxu1 }
 0x178   : > { %v1548_v42 = vadd.f32 %v2501_v50, %v1532_v35  ;;  %v1533_v54 = vadd.f32 %v1497_v30, %v1414_v48  ;;  %v2034_v55 = vpop.f32.mrb[75].mxu0  ;;  %v1416_v56 = vadd.f32 %v1386_v53, %v1237_v12  ;;  %v2016_v57 = vpop.f32.mrb[75].mxu1 }
 0x17a   : > { %v1557_v58 = vmax.f32 %v1548_v42, 0.0  ;;  %v1549_v59 = vadd.f32 %v2501_v50, %v1533_v54 }
 0x17c   : > { %1567 = vst.msk [vmem:[%s2507_s13] sm:$0xff] %vm1566_vm4, %v1557_v58  ;;  %v1558_v60 = vmax.f32 %v1549_v59, 0.0 }
 0x17d   : > { %v1502_v0 = vpop.f32.mrb[76].mxu0  ;;  %v1391_v2 = vpop.f32.mrb[76].mxu1 }
 0x17e   : > { %1568 = vst.msk [vmem:[%s2507_s13 + $0x8] sm:$0xff] %vm1566_vm4, %v1558_v60  ;;  %v1534_v47 = vadd.f32 %v1502_v0, %v1415_v52  ;;  %v2037_v6 = vpop.f32.mrb[77].mxu0  ;;  %v1417_v7 = vadd.f32 %v1391_v2, %v1238_v23  ;;  %v2019_v27 = vpop.f32.mrb[77].mxu1 }
 0x17f   : > { %v1505_v8 = vpop.f32.mrb[78].mxu0  ;;  %v1394_v3 = vpop.f32.mrb[78].mxu1 }
 0x180   : > { %v1550_v4 = vadd.f32 %v2501_v50, %v1534_v47  ;;  %v1535_v12 = vadd.f32 %v1505_v8, %v1416_v56  ;;  %v2038_v14 = vpop.f32.mrb[79].mxu0  ;;  %v1418_v15 = vadd.f32 %v1394_v3, %v1239_v62  ;;  %v2020_v9 = vpop.f32.mrb[79].mxu1 }
 0x182   : > { %v1559_v10 = vmax.f32 %v1550_v4, 0.0  ;;  %v1551_v16 = vadd.f32 %v2501_v50, %v1535_v12 }
 0x184   : > { %1569 = vst.msk [vmem:[%s2507_s13 + $0x10] sm:$0xff] %vm1566_vm4, %v1559_v10  ;;  %v1560_v24 = vmax.f32 %v1551_v16, 0.0 }
 0x185   : > { %v1510_v25 = vpop.f32.mrb[80].mxu0  ;;  %v1399_v23 = vpop.f32.mrb[80].mxu1 }
 0x186   : > { %1570 = vst.msk [vmem:[%s2507_s13 + $0x18] sm:$0xff] %vm1566_vm4, %v1560_v24  ;;  %v1536_v17 = vadd.f32 %v1510_v25, %v1417_v7  ;;  %v2041_v20 = vpop.f32.mrb[81].mxu0  ;;  %v1419_v28 = vadd.f32 %v1399_v23, %v2491_v31  ;;  %v2023_v11 = vpop.f32.mrb[81].mxu1 }
 0x187   : > { %v1513_v21 = vpop.f32.mrb[82].mxu0  ;;  %v1402_v29 = vpop.f32.mrb[82].mxu1 }
 0x188   : > { %v1552_v62 = vadd.f32 %v2501_v50, %v1536_v17  ;;  %v1537_v61 = vadd.f32 %v1513_v21, %v1418_v15  ;;  %v2042_v5 = vpop.f32.mrb[83].mxu0  ;;  %v1420_v32 = vadd.f32 %v1402_v29, %v2493_v41  ;;  %v2024_v43 = vpop.f32.mrb[83].mxu1 }
 0x18a   : > { %v1561_v22 = vmax.f32 %v1552_v62, 0.0  ;;  %v1553_v26 = vadd.f32 %v2501_v50, %v1537_v61 }
 0x18c   : > { %1571 = vst.msk [vmem:[%s2507_s13 + $0x20] sm:$0xff] %vm1566_vm4, %v1561_v22  ;;  %v1562_v36 = vmax.f32 %v1553_v26, 0.0 }
 0x18d   : > { %v1518_v63 = vpop.f32.mrb[84].mxu0  ;;  %v1407_v31 = vpop.f32.mrb[84].mxu1 }
 0x18e   : > { %1572 = vst.msk [vmem:[%s2507_s13 + $0x28] sm:$0xff] %vm1566_vm4, %v1562_v36  ;;  %v1538_v37 = vadd.f32 %v1518_v63, %v1419_v28  ;;  %v2045_v13 = vpop.f32.mrb[85].mxu0  ;;  %v1421_v40 = vadd.f32 %v1407_v31, %v2495_v33  ;;  %v2027_v19 = vpop.f32.mrb[85].mxu1 }
 0x18f   : > { %v1521_v38 = vpop.f32.mrb[86].mxu0  ;;  %v1410_v45 = vpop.f32.mrb[86].mxu1 }
 0x190   : > { %v1554_v41 = vadd.f32 %v2501_v50, %v1538_v37  ;;  %v1539_v44 = vadd.f32 %v1521_v38, %v1420_v32  ;;  %v2046_v18 = vpop.f32.mrb[87].mxu0  ;;  %v2028_v46 = vpop.f32.mrb[87].mxu1 }
 0x192   : > { %v1563_v48 = vmax.f32 %v1554_v41, 0.0  ;;  %v1555_v39 = vadd.f32 %v2501_v50, %v1539_v44 }
 0x194   : > { %1573 = vst.msk [vmem:[%s2507_s13 + $0x30] sm:$0xff] %vm1566_vm4, %v1563_v48  ;;  %v1564_v49 = vmax.f32 %v1555_v39, 0.0 }
 0x195   : > { %v1526_v34 = vpop.f32.mrb[88].mxu0 }
 0x196   : > { %1574 = vst.msk [vmem:[%s2507_s13 + $0x38] sm:$0xff] %vm1566_vm4, %v1564_v49  ;;  %v1540_v35 = vadd.f32 %v1526_v34, %v1421_v40  ;;  %v2049_v33 = vpop.f32.mrb[89].mxu0 }
 0x197   : > { %v1529_v51 = vpop.f32.mrb[90].mxu0 }
 0x198   : > { %v1556_v52 = vadd.f32 %v2501_v50, %v1540_v35  ;;  %v2050_v1 = vpop.f32.mrb[91].mxu0 }
 0x19a   : > { %v1565_v30 = vmax.f32 %v1556_v52, 0.0 }
 0x19c   : > { %1575 = vst.msk [vmem:[%s2507_s13 + $0x40] sm:$0xff] %vm1566_vm4, %v1565_v30 }
 0x19d PF: > { %s13_s12 = sadd.s32 1, %s2121_s12  }
 0x19e   : > { %p10_p4 = scmp.ge.s32.totalorder %s13_s12, 4  }
 0x1a0   :  { %12 = sbr.rel (!%p10_p4) target bundleno = 1 (0x1), region = 73 }

// kernel: _residual_block_impl.4
= control target key start
LH: loop header
LB: loop body
LE: loop exit
PB: predicated region body
PF: predicated region fallthrough
CT: control target
= control target key end

     0   :  { %s2106_s12 = smov 0   ;;  %s2558_s0 = inlined_call_operand.vmem [shape: bf16[2,1,104,32], index: 0, kind: input, shape index: {}]   ;;  %s2559_s1 = inlined_call_operand.vmem [shape: bf16[9,32,32], index: 1, kind: input, shape index: {}]   ;;  %s2560_s2 = inlined_call_operand.vmem [shape: f32[1,32], index: 2, kind: input, shape index: {}]   ;;  %s2561_s3 = inlined_call_operand.vmem [shape: f32[2,80,32], index: 3, kind: output, shape index: {}]  }
   0x1 LB: > { %s1612_s13 = sadd.s32 4294967295, %s2082_s12   ;;  %p1616_p0 = scmp.ge.s32.totalorder %s2082_s12, 1  ;;  %s2082_s12 = sphi %s2106_s12, %s13_s12  }
   0x2   : > { %p137_p1 = scmp.lt.s32.totalorder %s2082_s12, 3 }
   0x4   : > { %p138_p2 = pnand %p1616_p0, %p137_p1 }
   0x5   : > { %v2035_v0 = vld [vmem:[%s2559_s1 + $0x10] sm:$0xff] (!%p138_p2)   ;;  %v2084_v1 = vmov (!%p138_p2), 0.0   ;;  %v2036_v2 = vld [vmem:[%s2559_s1 + $0x18] sm:$0xff] (!%p138_p2)   ;;  %p161_p3 = scmp.lt.s32.totalorder (!%p138_p2), %s1612_s13, 1  ;;  %vm2085_vm0 = vmmov (!%p138_p2), 0   ;;  %vm277_vm2 = vcmask (!%p138_p2), 261120  }
   0x6   : > { %141 = sbr.rel (%p138_p2) target bundleno = 422 (0x1a6), region = 32  ;;  %1803 = vmatprep.subr.bf16.mxu0 (!%p138_p2), %v2084_v1  ;;  %2019 = vmatprep.subr.bf16.mxu1 (!%p138_p2), %v2084_v1  ;;  %vm220_vm1 = vsmask.f32 (!%p138_p2), 7424  ;;  %v2041_v21 = vld [vmem:[%s2559_s1 + $0x20] sm:$0xff] (!%p138_p2)   ;;  %v2045_v33 = vld [vmem:[%s2559_s1 + $0x28] sm:$0xff] (!%p138_p2)   ;;  %v2047_v48 = vld [vmem:[%s2559_s1 + $0x30] sm:$0xff] (!%p138_p2)  }
   0x7   : > { %1804 = vmatpush3.bf16.msra.mxu0 (!%p138_p2), %v2035_v0  ;;  %2021 = vmatpush3.bf16.msra.mxu1 (!%p138_p2), %v2035_v0  ;;  %v2042_v27 = vld [vmem:[%s2559_s1] sm:$0xff] (!%p138_p2)   ;;  %v2046_v36 = vld [vmem:[%s2559_s1 + $0x8] sm:$0xff] (!%p138_p2)   ;;  %vm470_vm3 = vcmask (!%p138_p2), 1046528   ;;  %v2050_v52 = vld [vmem:[%s2559_s1 + $0x38] sm:$0xff] (!%p138_p2)   ;;  %vm766_vm4 = vsmask.f32 (!%p138_p2), 6400 }
   0x8   : > { %1805 = vmatprep.subr.bf16.mxu0 (!%p138_p2), %v2084_v1  ;;  %2020 = vmatprep.subr.bf16.mxu1 (!%p138_p2), %v2084_v1  ;;  %v2049_v54 = vld [vmem:[%s2559_s1 + $0x40] sm:$0xff] (!%p138_p2)   ;;  %v2051_v56 = vld [vmem:[%s2559_s1 + $0x48] sm:$0xff] (!%p138_p2)   ;;  %vm939_vm5 = vcmask (!%p138_p2), 1045504   ;;  %vm1235_vm6 = vsmask.f32 (!%p138_p2), 5376  ;;  %vm1408_vm7 = vcmask (!%p138_p2), 1044480  }
   0x9   : > { %1807 = vmatprep.mubr.msk.bf16.mxu0 (!%p138_p2), %vm2085_vm0, %v2084_v1  ;;  %1819 = vmatprep.mubr.msk.bf16.mxu1 (!%p138_p2), %vm2085_vm0, %v2084_v1 }
   0xb   : > { %1806 = vmatpush3.bf16.msra.mxu0 (!%p138_p2), %v2036_v2  ;;  %2022 = vmatpush3.bf16.msra.mxu1 (!%p138_p2), %v2036_v2 }
   0xc   : > { %1851 = vmatprep.subr.bf16.mxu0 (!%p138_p2), %v2084_v1  ;;  %1827 = vmatprep.subr.bf16.mxu1 (!%p138_p2), %v2084_v1 }
   0xd   : > { %s2563_s13 = smov (!%p161_p3, %s1612_s13), 1 }
   0xe   : > { %s2023_s18 = smul.u32 52, %s2563_s13 }
  0x10   : > { %s2136_s21 = scalar_lea.vmem %s2558_s0, %s2023_s18 }
  0x11   : > { %v172_v3 = vld [vmem:[%s2136_s21] sm:$0xf]  ;;  %v2140_v4 = vld [vmem:[%s2136_s21 + $0x4] sm:$0xf]  ;;  %v2146_v6 = vld [vmem:[%s2136_s21 + $0x8] sm:$0xff]  }
  0x12   : > { %v2143_v5 = vcombine.low %v172_v3, %v2140_v4  ;;  %v229_v9 = vshll.u32 %v2146_v6, 16  ;;  %v2152_v10 = vld [vmem:[%s2136_s21 + $0x18] sm:$0xff]   ;;  %v2155_v11 = vld [vmem:[%s2136_s21 + $0x20] sm:$0xff]   ;;  %v2158_v12 = vld [vmem:[%s2136_s21 + $0x10] sm:$0xff]   ;;  %v233_v22 = vshrl.u32 %v2146_v6, 16  ;;  %v472_v51 = vrot.slane %v2146_v6, 1 }
  0x13   : > { %v245_v15 = vshll.u32 %v2152_v10, 16  ;;  %v249_v16 = vshrl.u32 %v2152_v10, 16  ;;  %v253_v17 = vshll.u32 %v2155_v11, 16  ;;  %v2164_v18 = vld [vmem:[%s2136_s21 + $0x28] ss:$0 sps:$4 sm:$0x11]  }
  0x14   : > { %v222_v7 = vshrl.u32 %v2143_v5, 16  ;;  %v224_v8 = vshll.u32 %v2143_v5, 16  ;;  %v231_v14 = vrot.slane %v229_v9, 1  ;;  %v237_v23 = vshll.u32 %v2158_v12, 16  ;;  %v461_v41 = vld [vmem:[%s2136_s21] sm:$0xe] }
  0x15   : > { %v247_v20 = vrot.slane %v245_v15, 1  ;;  %v255_v24 = vrot.slane %v253_v17, 1  ;;  %v257_v28 = vshrl.u32 %v2155_v11, 16  ;;  %v261_v29 = vshll.u32 %v2164_v18, 16  ;;  %v2203_v42 = vld [vmem:[%s2136_s21 + $0x24] sm:$0xff]   ;;  %v2274_v2 = vld [vmem:[%s2136_s21 + $0xc] sm:$0xff]  }
  0x16   : > { %v226_v13 = vrot.slane %v224_v8, 1  ;;  %v235_v31 = vor.u32 %v233_v22, %v231_v14  ;;  %v239_v32 = vrot.slane %v237_v23, 1  ;;  %v241_v38 = vshrl.u32 %v2158_v12, 16  ;;  %v2061_v43 = vld [vmem:[%s2136_s21 + $0x2c] ss:$0 sps:$4 sm:$0x11]  }
  0x17   : > { %v251_v26 = vor.u32 %v249_v16, %v247_v20  ;;  %v259_v34 = vor.u32 %v257_v28, %v255_v24  ;;  %v263_v35 = vrot.slane %v261_v29, 1  ;;  %v1647_v45 = vcombine.low %v461_v41, %v2140_v4  ;;  %v592_v61 = vld [vmem:[%s2136_s21 + $0x4] sm:$0xe]  ;;  %v2269_v62 = vld [vmem:[%s2136_s21 + $0x8] sm:$0xf]  ;;  %v2054_v17 = vld [vmem:[%s2559_s1 + $0x50] sm:$0xff]  }
  0x18   : > { %v227_v19 = vor.u32 %v226_v13, %v222_v7  ;;  %v240_v37 = vsel %vm220_vm1, %v235_v31, %v239_v32  ;;  %v243_v40 = vor.u32 %v241_v38, %v239_v32  ;;  %v643_v46 = vrot.slane %v2203_v42, 1  ;;  %v2059_v23 = vld [vmem:[%s2559_s1 + $0x58] sm:$0xff]  }
  0x19   : > { %v256_v30 = vsel %vm220_vm1, %v251_v26, %v255_v24  ;;  %v264_v39 = vsel %vm220_vm1, %v259_v34, %v263_v35  ;;  %v645_v47 = vrot.slane %v2061_v43, 1  ;;  %v471_v50 = vrot.slane %v1647_v45, 1  ;;  %v2314_v29 = vld [vmem:[%s2136_s21 + $0x1c] sm:$0xff]  }
  0x1a   : > { %v232_v25 = vsel %vm220_vm1, %v227_v19, %v231_v14  ;;  %1820 = vmatmul.mubr.msk.bf16.vlgmr.msra.gmra.mrb[0].mxu1 %vm277_vm2, %v256_v30  ;;  %v248_v44 = vsel %vm220_vm1, %v243_v40, %v247_v20  ;;  %v474_v55 = vrot.slane %v2158_v12, 1  ;;  %v476_v58 = vrot.slane %v2152_v10, 1 }
  0x1b   : > { %1808 = vmatmul.mubr.msk.bf16.vlgmr.msra.gmra.mrb[0].mxu0 %vm277_vm2, %v232_v25  ;;  %1828 = vmatpush3.bf16.msra.mxu1 %v2042_v27  ;;  %v2218_v49 = vsel %vm470_vm3, %v643_v46, %v645_v47  ;;  %v473_v53 = vsel %vm470_vm3, %v471_v50, %v472_v51  ;;  %v478_v60 = vrot.slane %v2155_v11, 1  ;;  %v1659_v0 = vcombine.low %v592_v61, %v2269_v62  ;;  %v2056_v25 = vld [vmem:[%s2559_s1 + $0x60] sm:$0xff]   ;;  %v2343_v47 = vld [vmem:[%s2136_s21 + $0x2c] ss:$0 sps:$4 sm:$0x33]  }
  0x1c   : > { %1852 = vmatpush3.bf16.msra.mxu0 %v2041_v21  ;;  %1811 = vmatprep.mubr.msk.bf16.mxu0 %vm2085_vm0, %v2084_v1  ;;  %v475_v57 = vsel %vm470_vm3, %v472_v51, %v474_v55  ;;  %v477_v59 = vsel %vm470_vm3, %v474_v55, %v476_v58  ;;  %v480_v3 = vrot.slane %v2164_v18, 1  ;;  %v779_v7 = vshll.u32 %v2274_v2, 16  ;;  %v2293_v18 = vld [vmem:[%s2136_s21 + $0x14] sm:$0xff]  }
  0x1d   : > { %1853 = vmatprep.subr.bf16.mxu0 %v2084_v1  ;;  %1823 = vmatprep.mubr.msk.bf16.mxu1 %vm2085_vm0, %v2084_v1  ;;  %v479_v63 = vsel %vm470_vm3, %v476_v58, %v478_v60  ;;  %v768_v4 = vshrl.u32 %v1659_v0, 16  ;;  %v636_v8 = vrot.slane %v1659_v0, 1  ;;  %v637_v9 = vrot.slane %v2274_v2, 1  ;;  %v1061_v58 = vld [vmem:[%s2136_s21 + $0x8] sm:$0xc] }
  0x1e   : > { %1829 = vmatprep.subr.bf16.mxu1 %v2084_v1  ;;  %v781_v15 = vrot.slane %v779_v7, 2  ;;  %v785_v20 = vshrl.u32 %v2293_v18, 16  ;;  %v788_v21 = vshll.u32 %v2293_v18, 16  ;;  %v639_v22 = vrot.slane %v2293_v18, 1 }
  0x1f   : > { %1830 = vmatpush3.bf16.msra.mxu1 %v2046_v36  ;;  %v638_v16 = vsel %vm470_vm3, %v636_v8, %v637_v9  ;;  %v794_v31 = vshrl.u32 %v2314_v29, 16  ;;  %v797_v32 = vshll.u32 %v2314_v29, 16  ;;  %v641_v34 = vrot.slane %v2314_v29, 1  ;;  %v2067_v8 = vld [vmem:[%s2559_s1 + $0x80] sm:$0xff]  }
  0x20   : > { %1854 = vmatpush3.bf16.msra.mxu0 %v2045_v33  ;;  %1875 = vmatprep.subr.bf16.mxu1 %v2084_v1  ;;  %v787_v26 = vrot.slane %v785_v20, 1  ;;  %v790_v27 = vrot.slane %v788_v21, 2  ;;  %v640_v28 = vsel %vm470_vm3, %v637_v9, %v639_v22  ;;  %v2060_v33 = vld [vmem:[%s2559_s1 + $0x68] sm:$0xff]   ;;  %v803_v40 = vshrl.u32 %v2203_v42, 16  ;;  %v2397_v9 = vld [vmem:[%s2136_s21 + $0x18] sm:$0xff]  }
  0x21   : > { %1899 = vmatprep.subr.bf16.mxu0 %v2084_v1  ;;  %v796_v36 = vrot.slane %v794_v31, 1  ;;  %v642_v38 = vsel %vm470_vm3, %v639_v22, %v641_v34  ;;  %v806_v41 = vshll.u32 %v2203_v42, 16  ;;  %v812_v51 = vshrl.u32 %v2343_v47, 16  ;;  %v2427_v20 = vld [vmem:[%s2136_s21 + $0x28] sm:$0xff]  }
  0x22   : > { %1824 = vmatmul.mubr.msk.bf16.gmra.mrb[4].mxu1 %vm277_vm2, %v264_v39  ;;  %v791_v30 = vor.u32 %v790_v27, %v787_v26  ;;  %v941_v61 = vrot.slane %v2274_v2, 2  ;;  %v1112_v22 = vrot.slane %v2427_v20, 2 }
  0x23   : > { %1812 = vmatmul.mubr.msk.bf16.gmra.mrb[4].mxu0 %vm277_vm2, %v240_v37  ;;  %1831 = vmatprep.mubr.msk.bf16.mxu1 %vm2085_vm0, %v2084_v1  ;;  %v799_v37 = vrot.slane %v797_v32, 2  ;;  %v808_v45 = vrot.slane %v806_v41, 2 }
  0x24   : > { %1815 = vmatprep.mubr.msk.bf16.mxu0 %vm2085_vm0, %v2084_v1 }
  0x25   : > { %v800_v39 = vor.u32 %v799_v37, %v796_v36 }
  0x27   : > { %v801_v43 = vsel %vm766_vm4, %v791_v30, %v800_v39 }
  0x2a   : > { %1832 = vmatmul.mubr.msk.bf16.vlgmr.msra.gmra.mrb[8].mxu1 %vm277_vm2, %v2143_v5  ;;  %v771_v5 = vshll.u32 %v1659_v0, 16  ;;  %v2374_v0 = vld [vmem:[%s2136_s21 + $0x10] sm:$0xff]  }
  0x2b   : > { %1816 = vmatmul.mubr.msk.bf16.gmra.mrb[8].mxu0 %vm277_vm2, %v248_v44  ;;  %1876 = vmatpush3.bf16.msra.mxu1 %v2047_v48  ;;  %v805_v44 = vrot.slane %v803_v40, 1  ;;  %v644_v48 = vsel %vm470_vm3, %v641_v34, %v643_v46  ;;  %v1248_v26 = vshll.u32 %v2374_v0, 16 }
  0x2c   : > { %1855 = vmatprep.mubr.msk.bf16.mxu0 %vm2085_vm0, %v2084_v1  ;;  %1835 = vmatprep.mubr.msk.bf16.mxu1 %vm2085_vm0, %v2084_v1  ;;  %v773_v13 = vrot.slane %v771_v5, 2  ;;  %v943_v5 = vrot.slane %v2293_v18, 2 }
  0x2d   : > { %1877 = vmatprep.subr.bf16.mxu1 %v2084_v1  ;;  %v809_v50 = vor.u32 %v808_v45, %v805_v44 }
  0x2f   : > { %1878 = vmatpush3.bf16.msra.mxu1 %v2050_v52  ;;  %v815_v52 = vshll.u32 %v2343_v47, 16  ;;  %v810_v46 = vsel %vm766_vm4, %v800_v39, %v809_v50  ;;  %v1257_v39 = vshll.u32 %v2397_v9, 16 }
  0x30   : > { %1923 = vmatprep.subr.bf16.mxu1 %v2084_v1 }
  0x31   : > { %v817_v55 = vrot.slane %v815_v52, 2  ;;  %v1259_v45 = vrot.slane %v1257_v39, 3 }
  0x32   : > { %1836 = vmatmul.mubr.msk.bf16.gmra.mrb[12].mxu1 %vm277_vm2, %v2146_v6  ;;  %v776_v6 = vshrl.u32 %v2274_v2, 16 }
  0x33   : > { %1856 = vmatmul.mubr.msk.bf16.vlgmr.msra.gmra.mrb[12].mxu0 %vm277_vm2, %v473_v53  ;;  %1839 = vmatprep.mubr.msk.bf16.mxu1 %vm2085_vm0, %v2084_v1  ;;  %v930_v53 = vld [vmem:[%s2136_s21 + $0x4] sm:$0xc] }
  0x34   : > { %1900 = vmatpush3.bf16.msra.mxu0 %v2049_v54  ;;  %1859 = vmatprep.mubr.msk.bf16.mxu0 %vm2085_vm0, %v2084_v1  ;;  %v778_v14 = vrot.slane %v776_v6, 1  ;;  %v814_v54 = vrot.slane %v812_v51, 1  ;;  %v2070_v6 = vld [vmem:[%s2559_s1 + $0x78] sm:$0xff]  }
  0x35   : > { %1901 = vmatprep.subr.bf16.mxu0 %v2084_v1 }
  0x36   : > { %v782_v19 = vor.u32 %v781_v15, %v778_v14  ;;  %v945_v14 = vrot.slane %v2314_v29, 2 }
  0x38   : > { %1902 = vmatpush3.bf16.msra.mxu0 %v2051_v56  ;;  %v792_v35 = vsel %vm766_vm4, %v782_v19, %v791_v30  ;;  %v1688_v56 = vcombine.low %v930_v53, %v2269_v62 }
  0x39   : > { %1947 = vmatprep.subr.bf16.mxu0 %v2084_v1 }
  0x3a   : > { %1840 = vmatmul.mubr.msk.bf16.gmra.mrb[16].mxu1 %vm277_vm2, %v2158_v12  ;;  %v770_v12 = vrot.slane %v768_v4, 1  ;;  %v1106_v4 = vrot.slane %v2374_v0, 2 }
  0x3b   : > { %1860 = vmatmul.mubr.msk.bf16.gmra.mrb[16].mxu0 %vm277_vm2, %v475_v57  ;;  %1843 = vmatprep.mubr.msk.bf16.mxu1 %vm2085_vm0, %v2084_v1  ;;  %v818_v57 = vor.u32 %v817_v55, %v814_v54 }
  0x3c   : > { %1863 = vmatprep.mubr.msk.bf16.mxu0 %vm2085_vm0, %v2084_v1 }
  0x3d   : > { %v819_v62 = vsel %vm766_vm4, %v809_v50, %v818_v57 }
  0x42   : > { %1844 = vmatmul.mubr.msk.bf16.gmra.mrb[20].mxu1 %vm277_vm2, %v2152_v10  ;;  %v481_v10 = vsel %vm470_vm3, %v478_v60, %v480_v3  ;;  %v940_v60 = vrot.slane %v1688_v56, 2  ;;  %v1412_v56 = vrot.slane %v2397_v9, 3 }
  0x43   : > { %1864 = vmatmul.mubr.msk.bf16.gmra.mrb[20].mxu0 %vm277_vm2, %v477_v59  ;;  %1847 = vmatprep.mubr.msk.bf16.mxu1 %vm2085_vm0, %v2084_v1  ;;  %v2366_v59 = vld [vmem:[%s2136_s21 + $0xc] sm:$0xf] }
  0x44   : > { %1867 = vmatprep.mubr.msk.bf16.mxu0 %vm2085_vm0, %v2084_v1  ;;  %v942_v3 = vsel %vm939_vm5, %v940_v60, %v941_v61 }
  0x4a   : > { %1848 = vmatmul.mubr.msk.bf16.gmra.mrb[24].mxu1 %vm277_vm2, %v2155_v11  ;;  %v774_v11 = vor.u32 %v773_v13, %v770_v12  ;;  %v1108_v12 = vrot.slane %v2397_v9, 2  ;;  %v2071_v13 = vld [vmem:[%s2559_s1 + $0x88] sm:$0xff]  }
  0x4b   : > { %1868 = vmatmul.mubr.msk.bf16.gmra.mrb[24].mxu0 %vm277_vm2, %v479_v63  ;;  %1879 = vmatprep.mubr.msk.bf16.mxu1 %vm2085_vm0, %v2084_v1  ;;  %v1700_v63 = vcombine.low %v1061_v58, %v2366_v59  ;;  %v1272_v58 = vshrl.u32 %v2427_v20, 16 }
  0x4c   : > { %1871 = vmatprep.mubr.msk.bf16.mxu0 %vm2085_vm0, %v2084_v1  ;;  %v783_v24 = vsel %vm766_vm4, %v774_v11, %v782_v19  ;;  %v1109_v15 = vsel %vm939_vm5, %v1106_v4, %v1108_v12  ;;  %v947_v11 = vrot.slane %v2203_v42, 2 }
  0x4d   : > { %v1105_v2 = vrot.slane %v1700_v63, 2  ;;  %v1237_v42 = vshrl.u32 %v1700_v63, 16 }
  0x4e   : > { %v948_v21 = vsel %vm939_vm5, %v945_v14, %v947_v11 }
  0x4f   : > { %v1107_v7 = vsel %vm939_vm5, %v1105_v2, %v1106_v4  ;;  %v1239_v30 = vrot.slane %v1237_v42, 2 }
  0x52   : > { %1880 = vmatmul.mubr.msk.bf16.vlgmr.msra.gmra.mrb[28].mxu1 %vm277_vm2, %v638_v16  ;;  %v2414_v16 = vld [vmem:[%s2136_s21 + $0x20] sm:$0xff]  }
  0x53   : > { %1872 = vmatmul.mubr.msk.bf16.gmra.mrb[28].mxu0 %vm277_vm2, %v481_v10  ;;  %1924 = vmatpush3.bf16.msra.mxu1 %v2054_v17  ;;  %v944_v10 = vsel %vm939_vm5, %v941_v61, %v943_v5  ;;  %v946_v17 = vsel %vm939_vm5, %v943_v5, %v945_v14  ;;  %v1110_v18 = vrot.slane %v2414_v16, 2  ;;  %v1263_v51 = vshrl.u32 %v2414_v16, 16 }
  0x54   : > { %1903 = vmatprep.mubr.msk.bf16.mxu0 %vm2085_vm0, %v2084_v1  ;;  %1883 = vmatprep.mubr.msk.bf16.mxu1 %vm2085_vm0, %v2084_v1  ;;  %v1266_v52 = vshll.u32 %v2414_v16, 16 }
  0x55   : > { %1925 = vmatprep.subr.bf16.mxu1 %v2084_v1  ;;  %v1111_v19 = vsel %vm939_vm5, %v1108_v12, %v1110_v18  ;;  %v1113_v27 = vsel %vm939_vm5, %v1110_v18, %v1112_v22  ;;  %v1265_v54 = vrot.slane %v1263_v51, 2 }
  0x56   : > { %v1268_v55 = vrot.slane %v1266_v52, 3 }
  0x57   : > { %1926 = vmatpush3.bf16.msra.mxu1 %v2059_v23  ;;  %v949_v23 = vrot.slane %v2343_v47, 2 }
  0x58   : > { %1971 = vmatprep.subr.bf16.mxu1 %v2084_v1  ;;  %v1269_v57 = vor.u32 %v1268_v55, %v1265_v54 }
  0x59   : > { %v950_v29 = vsel %vm939_vm5, %v947_v11, %v949_v23 }
  0x5a   : > { %1884 = vmatmul.mubr.msk.bf16.gmra.mrb[32].mxu1 %vm277_vm2, %v640_v28  ;;  %v2073_v28 = vld [vmem:[%s2136_s21 + $0x30] ss:$0 sps:$4 sm:$0x33]  }
  0x5b   : > { %1904 = vmatmul.mubr.msk.bf16.vlgmr.msra.gmra.mrb[32].mxu0 %vm277_vm2, %v783_v24  ;;  %1887 = vmatprep.mubr.msk.bf16.mxu1 %vm2085_vm0, %v2084_v1  ;;  %v1240_v24 = vshll.u32 %v1700_v63, 16  ;;  %v1114_v34 = vrot.slane %v2073_v28, 2 }
  0x5c   : > { %1948 = vmatpush3.bf16.msra.mxu0 %v2056_v25  ;;  %1907 = vmatprep.mubr.msk.bf16.mxu0 %vm2085_vm0, %v2084_v1  ;;  %v1245_v25 = vshrl.u32 %v2374_v0, 16 }
  0x5d   : > { %1949 = vmatprep.subr.bf16.mxu0 %v2084_v1  ;;  %v1242_v31 = vrot.slane %v1240_v24, 3  ;;  %v1115_v40 = vsel %vm939_vm5, %v1112_v22, %v1114_v34 }
  0x5e   : > { %v1247_v32 = vrot.slane %v1245_v25, 2 }
  0x5f   : > { %v1243_v36 = vor.u32 %v1242_v31, %v1239_v30 }
  0x60   : > { %1950 = vmatpush3.bf16.msra.mxu0 %v2060_v33  ;;  %v1250_v33 = vrot.slane %v1248_v26, 3 }
  0x61   : > { %1995 = vmatprep.subr.bf16.mxu0 %v2084_v1 }
  0x62   : > { %1888 = vmatmul.mubr.msk.bf16.gmra.mrb[36].mxu1 %vm277_vm2, %v642_v38  ;;  %v1251_v37 = vor.u32 %v1250_v33, %v1247_v32  ;;  %v1254_v38 = vshrl.u32 %v2397_v9, 16  ;;  %v1416_v9 = vrot.slane %v2427_v20, 3 }
  0x63   : > { %1908 = vmatmul.mubr.msk.bf16.gmra.mrb[36].mxu0 %vm277_vm2, %v792_v35  ;;  %1891 = vmatprep.mubr.msk.bf16.mxu1 %vm2085_vm0, %v2084_v1  ;;  %v1399_v35 = vld [vmem:[%s2136_s21 + $0x8] sm:$0x8] }
  0x64   : > { %1911 = vmatprep.mubr.msk.bf16.mxu0 %vm2085_vm0, %v2084_v1  ;;  %v1729_v41 = vcombine.low %v1399_v35, %v2366_v59  ;;  %v1256_v44 = vrot.slane %v1254_v38, 2  ;;  %v1275_v59 = vshll.u32 %v2427_v20, 16 }
  0x66   : > { %v1409_v47 = vrot.slane %v1729_v41, 3  ;;  %v1260_v50 = vor.u32 %v1259_v45, %v1256_v44  ;;  %v1277_v63 = vrot.slane %v1275_v59, 3 }
  0x68   : > { %v1270_v61 = vsel %vm1235_vm6, %v1260_v50, %v1269_v57 }
  0x6a   : > { %1892 = vmatmul.mubr.msk.bf16.gmra.mrb[40].mxu1 %vm277_vm2, %v644_v48  ;;  %v1410_v48 = vrot.slane %v2374_v0, 3  ;;  %v2075_v0 = vld [vmem:[%s2136_s21 + $0x30] ss:$0 sps:$4 sm:$0x77]   ;;  %s2024_s21 = smul.u32 80, %s2563_s13 }
  0x6b   : > { %1912 = vmatmul.mubr.msk.bf16.gmra.mrb[40].mxu0 %vm277_vm2, %v801_v43  ;;  %1895 = vmatprep.mubr.msk.bf16.mxu1 %vm2085_vm0, %v2084_v1  ;;  %v1252_v43 = vsel %vm1235_vm6, %v1243_v36, %v1251_v37  ;;  %v1281_v2 = vshrl.u32 %v2075_v0, 16  ;;  %v1284_v4 = vshll.u32 %v2075_v0, 16  ;;  %v1418_v14 = vrot.slane %v2075_v0, 3 }
  0x6c   : > { %1915 = vmatprep.mubr.msk.bf16.mxu0 %vm2085_vm0, %v2084_v1  ;;  %v1411_v53 = vsel %vm1408_vm7, %v1409_v47, %v1410_v48  ;;  %v1413_v60 = vsel %vm1408_vm7, %v1410_v48, %v1412_v56  ;;  %s2519_s7 = scalar_lea.vmem %s2561_s3, %s2024_s21 }
  0x72   : > { %1896 = vmatmul.mubr.msk.bf16.gmra.mrb[44].mxu1 %vm277_vm2, %v2218_v49  ;;  %v2064_v49 = vld [vmem:[%s2559_s1 + $0x70] sm:$0xff]  }
  0x73   : > { %1916 = vmatmul.mubr.msk.bf16.gmra.mrb[44].mxu0 %vm277_vm2, %v810_v46  ;;  %1927 = vmatprep.mubr.msk.bf16.mxu1 %vm2085_vm0, %v2084_v1  ;;  %v1261_v46 = vsel %vm1235_vm6, %v1251_v37, %v1260_v50 }
  0x74   : > { %1919 = vmatprep.mubr.msk.bf16.mxu0 %vm2085_vm0, %v2084_v1 }
  0x7a   : > { %1928 = vmatmul.mubr.msk.bf16.vlgmr.msra.gmra.mrb[48].mxu1 %vm277_vm2, %v942_v3  ;;  %v1414_v3 = vrot.slane %v2414_v16, 3 }
  0x7b   : > { %1920 = vmatmul.mubr.msk.bf16.gmra.mrb[48].mxu0 %vm277_vm2, %v819_v62  ;;  %1972 = vmatpush3.bf16.msra.mxu1 %v2064_v49  ;;  %v1274_v62 = vrot.slane %v1272_v58, 2 }
  0x7c   : > { %1951 = vmatprep.mubr.msk.bf16.mxu0 %vm2085_vm0, %v2084_v1  ;;  %1931 = vmatprep.mubr.msk.bf16.mxu1 %vm2085_vm0, %v2084_v1  ;;  %v1415_v5 = vsel %vm1408_vm7, %v1412_v56, %v1414_v3  ;;  %v1417_v12 = vsel %vm1408_vm7, %v1414_v3, %v1416_v9 }
  0x7d   : > { %1973 = vmatprep.subr.bf16.mxu1 %v2084_v1  ;;  %v1278_v49 = vor.u32 %v1277_v63, %v1274_v62 }
  0x7f   : > { %1974 = vmatpush3.bf16.msra.mxu1 %v2070_v6  ;;  %v1279_v6 = vsel %vm1235_vm6, %v1269_v57, %v1278_v49 }
  0x82   : > { %1932 = vmatmul.mubr.msk.bf16.gmra.mrb[52].mxu1 %vm277_vm2, %v944_v10 }
  0x83   : > { %1952 = vmatmul.mubr.msk.bf16.vlgmr.msra.gmra.mrb[52].mxu0 %vm277_vm2, %v1107_v7  ;;  %1935 = vmatprep.mubr.msk.bf16.mxu1 %vm2085_vm0, %v2084_v1  ;;  %v1283_v7 = vrot.slane %v1281_v2, 2 }
  0x84   : > { %1996 = vmatpush3.bf16.msra.mxu0 %v2067_v8  ;;  %1955 = vmatprep.mubr.msk.bf16.mxu0 %vm2085_vm0, %v2084_v1  ;;  %v1286_v8 = vrot.slane %v1284_v4, 3 }
  0x85   : > { %1997 = vmatprep.subr.bf16.mxu0 %v2084_v1 }
  0x86   : > { %v1287_v10 = vor.u32 %v1286_v8, %v1283_v7 }
  0x88   : > { %1998 = vmatpush3.bf16.msra.mxu0 %v2071_v13  ;;  %v1288_v13 = vsel %vm1235_vm6, %v1278_v49, %v1287_v10 }
  0x8a   : > { %1936 = vmatmul.mubr.msk.bf16.gmra.mrb[56].mxu1 %vm277_vm2, %v946_v17 }
  0x8b   : > { %1956 = vmatmul.mubr.msk.bf16.gmra.mrb[56].mxu0 %vm277_vm2, %v1109_v15  ;;  %1939 = vmatprep.mubr.msk.bf16.mxu1 %vm2085_vm0, %v2084_v1  ;;  %v1419_v15 = vsel %vm1408_vm7, %v1416_v9, %v1418_v14 }
  0x8c   : > { %1959 = vmatprep.mubr.msk.bf16.mxu0 %vm2085_vm0, %v2084_v1 }
  0x92   : > { %1940 = vmatmul.mubr.msk.bf16.gmra.mrb[60].mxu1 %vm277_vm2, %v948_v21 }
  0x93   : > { %1960 = vmatmul.mubr.msk.bf16.gmra.mrb[60].mxu0 %vm277_vm2, %v1111_v19  ;;  %1943 = vmatprep.mubr.msk.bf16.mxu1 %vm2085_vm0, %v2084_v1 }
  0x94   : > { %1963 = vmatprep.mubr.msk.bf16.mxu0 %vm2085_vm0, %v2084_v1 }
  0x9a   : > { %1944 = vmatmul.mubr.msk.bf16.gmra.mrb[64].mxu1 %vm277_vm2, %v950_v29 }
  0x9b   : > { %1964 = vmatmul.mubr.msk.bf16.gmra.mrb[64].mxu0 %vm277_vm2, %v1113_v27  ;;  %1975 = vmatprep.mubr.msk.bf16.mxu1 %vm2085_vm0, %v2084_v1 }
  0x9c   : > { %1967 = vmatprep.mubr.msk.bf16.mxu0 %vm2085_vm0, %v2084_v1 }
  0xa2   : > { %1976 = vmatmul.mubr.msk.bf16.vlgmr.msra.gmra.mrb[68].mxu1 %vm277_vm2, %v1252_v43 }
  0xa3   : > { %1968 = vmatmul.mubr.msk.bf16.gmra.mrb[68].mxu0 %vm277_vm2, %v1115_v40  ;;  %1979 = vmatprep.mubr.msk.bf16.mxu1 %vm2085_vm0, %v2084_v1 }
  0xa4   : > { %1999 = vmatprep.mubr.msk.bf16.mxu0 %vm2085_vm0, %v2084_v1 }
  0xaa   : > { %1980 = vmatmul.mubr.msk.bf16.gmra.mrb[72].mxu1 %vm277_vm2, %v1261_v46 }
  0xab   : > { %2000 = vmatmul.mubr.msk.bf16.vlgmr.msra.gmra.mrb[72].mxu0 %vm277_vm2, %v1411_v53  ;;  %1983 = vmatprep.mubr.msk.bf16.mxu1 %vm2085_vm0, %v2084_v1 }
  0xac   : > { %2003 = vmatprep.mubr.msk.bf16.mxu0 %vm2085_vm0, %v2084_v1 }
  0xb2   : > { %1984 = vmatmul.mubr.msk.bf16.gmra.mrb[76].mxu1 %vm277_vm2, %v1270_v61 }
  0xb3   : > { %2004 = vmatmul.mubr.msk.bf16.gmra.mrb[76].mxu0 %vm277_vm2, %v1413_v60  ;;  %1987 = vmatprep.mubr.msk.bf16.mxu1 %vm2085_vm0, %v2084_v1 }
  0xb4   : > { %2007 = vmatprep.mubr.msk.bf16.mxu0 %vm2085_vm0, %v2084_v1 }
  0xba   : > { %1988 = vmatmul.mubr.msk.bf16.gmra.mrb[80].mxu1 %vm277_vm2, %v1279_v6 }
  0xbb   : > { %2008 = vmatmul.mubr.msk.bf16.gmra.mrb[80].mxu0 %vm277_vm2, %v1415_v5  ;;  %1991 = vmatprep.mubr.msk.bf16.mxu1 %vm2085_vm0, %v2084_v1 }
  0xbc   : > { %2011 = vmatprep.mubr.msk.bf16.mxu0 %vm2085_vm0, %v2084_v1 }
  0xc2   : > { %1992 = vmatmul.mubr.msk.bf16.gmra.mrb[84].mxu1 %vm277_vm2, %v1288_v13 }
  0xc3   : > { %2012 = vmatmul.mubr.msk.bf16.gmra.mrb[84].mxu0 %vm277_vm2, %v1417_v12 }
  0xc4   : > { %2015 = vmatprep.mubr.msk.bf16.mxu0 %vm2085_vm0, %v2084_v1 }
  0xcb   : > { %2016 = vmatmul.mubr.msk.bf16.gmra.mrb[88].mxu0 %vm277_vm2, %v1419_v15 }
  0xed   : > { %v351_v11 = vpop.f32.mrb[0].mxu1 }
  0xee   : > { %v327_v16 = vpop.f32.mrb[0].mxu0  ;;  %v1821_v20 = vpop.f32.mrb[1].mxu1 }
  0xef   : > { %v1809_v17 = vpop.f32.mrb[1].mxu0  ;;  %v354_v21 = vpop.f32.mrb[2].mxu1 }
  0xf0   : > { %v330_v18 = vpop.f32.mrb[2].mxu0  ;;  %v1822_v22 = vpop.f32.mrb[3].mxu1 }
  0xf1   : > { %v1810_v19 = vpop.f32.mrb[3].mxu0 }
  0xf5   : > { %v359_v25 = vpop.f32.mrb[4].mxu1 }
  0xf6   : > { %v335_v23 = vpop.f32.mrb[4].mxu0  ;;  %v1825_v26 = vpop.f32.mrb[5].mxu1 }
  0xf7   : > { %v1813_v42 = vpop.f32.mrb[5].mxu0  ;;  %v362_v27 = vpop.f32.mrb[6].mxu1 }
  0xf8   : > { %v338_v24 = vpop.f32.mrb[6].mxu0  ;;  %v1826_v28 = vpop.f32.mrb[7].mxu1 }
  0xf9   : > { %v1814_v1 = vpop.f32.mrb[7].mxu0 }
  0xfd   : > { %v422_v31 = vpop.f32.mrb[8].mxu1 }
  0xfe   : > { %v343_v29 = vpop.f32.mrb[8].mxu0  ;;  %v423_v33 = vadd.f32 %v422_v31, %v327_v16  ;;  %v1833_v34 = vpop.f32.mrb[9].mxu1 }
  0xff   : > { %v1817_v30 = vpop.f32.mrb[9].mxu0  ;;  %v425_v36 = vpop.f32.mrb[10].mxu1 }
 0x100   : > { %v346_v32 = vpop.f32.mrb[10].mxu0  ;;  %v426_v37 = vadd.f32 %v425_v36, %v330_v18  ;;  %v1834_v38 = vpop.f32.mrb[11].mxu1 }
 0x101   : > { %v1818_v35 = vpop.f32.mrb[11].mxu0 }
 0x105   : > { %v430_v43 = vpop.f32.mrb[12].mxu1 }
 0x106   : > { %v543_v39 = vpop.f32.mrb[12].mxu0  ;;  %v431_v45 = vadd.f32 %v430_v43, %v335_v23  ;;  %v1837_v47 = vpop.f32.mrb[13].mxu1 }
 0x107   : > { %v582_v40 = vadd.f32 %v543_v39, %v423_v33  ;;  %v1857_v41 = vpop.f32.mrb[13].mxu0  ;;  %v433_v51 = vpop.f32.mrb[14].mxu1 }
 0x108   : > { %v546_v44 = vpop.f32.mrb[14].mxu0  ;;  %v434_v52 = vadd.f32 %v433_v51, %v338_v24  ;;  %v1838_v53 = vpop.f32.mrb[15].mxu1 }
 0x109   : > { %v583_v48 = vadd.f32 %v546_v44, %v426_v37  ;;  %v1858_v50 = vpop.f32.mrb[15].mxu0 }
 0x10d   : > { %v438_v56 = vpop.f32.mrb[16].mxu1 }
 0x10e   : > { %v551_v46 = vpop.f32.mrb[16].mxu0  ;;  %v439_v58 = vadd.f32 %v438_v56, %v343_v29  ;;  %v1841_v59 = vpop.f32.mrb[17].mxu1 }
 0x10f   : > { %v584_v54 = vadd.f32 %v551_v46, %v431_v45  ;;  %v1861_v55 = vpop.f32.mrb[17].mxu0  ;;  %v441_v62 = vpop.f32.mrb[18].mxu1 }
 0x110   : > { %v554_v57 = vpop.f32.mrb[18].mxu0  ;;  %v442_v63 = vadd.f32 %v441_v62, %v346_v32  ;;  %v1842_v0 = vpop.f32.mrb[19].mxu1 }
 0x111   : > { %v585_v60 = vadd.f32 %v554_v57, %v434_v52  ;;  %v1862_v61 = vpop.f32.mrb[19].mxu0 }
 0x115   : > { %v446_v4 = vpop.f32.mrb[20].mxu1 }
 0x116   : > { %v559_v3 = vpop.f32.mrb[20].mxu0  ;;  %v447_v6 = vadd.f32 %v446_v4, %v351_v11  ;;  %v1845_v7 = vpop.f32.mrb[21].mxu1 }
 0x117   : > { %v586_v49 = vadd.f32 %v559_v3, %v439_v58  ;;  %v1865_v2 = vpop.f32.mrb[21].mxu0  ;;  %v449_v10 = vpop.f32.mrb[22].mxu1 }
 0x118   : > { %v562_v5 = vpop.f32.mrb[22].mxu0  ;;  %v450_v12 = vadd.f32 %v449_v10, %v354_v21  ;;  %v1846_v13 = vpop.f32.mrb[23].mxu1 }
 0x119   : > { %v587_v8 = vadd.f32 %v562_v5, %v442_v63  ;;  %v1866_v9 = vpop.f32.mrb[23].mxu0 }
 0x11d   : > { %v454_v17 = vpop.f32.mrb[24].mxu1 }
 0x11e   : > { %v567_v14 = vpop.f32.mrb[24].mxu0  ;;  %v455_v19 = vadd.f32 %v454_v17, %v359_v25  ;;  %v1849_v20 = vpop.f32.mrb[25].mxu1 }
 0x11f   : > { %v588_v15 = vadd.f32 %v567_v14, %v447_v6  ;;  %v1869_v16 = vpop.f32.mrb[25].mxu0  ;;  %v457_v42 = vpop.f32.mrb[26].mxu1 }
 0x120   : > { %v570_v18 = vpop.f32.mrb[26].mxu0  ;;  %v458_v24 = vadd.f32 %v457_v42, %v362_v27  ;;  %v1850_v1 = vpop.f32.mrb[27].mxu1 }
 0x121   : > { %v589_v22 = vadd.f32 %v570_v18, %v450_v12  ;;  %v1870_v23 = vpop.f32.mrb[27].mxu0 }
 0x125   : > { %v708_v29 = vpop.f32.mrb[28].mxu1 }
 0x126   : > { %v575_v26 = vpop.f32.mrb[28].mxu0  ;;  %v747_v31 = vadd.f32 %v708_v29, %v582_v40  ;;  %v1881_v21 = vpop.f32.mrb[29].mxu1 }
 0x127   : > { %v590_v11 = vadd.f32 %v575_v26, %v455_v19  ;;  %v1873_v28 = vpop.f32.mrb[29].mxu0  ;;  %v711_v34 = vpop.f32.mrb[30].mxu1 }
 0x128   : > { %v578_v30 = vpop.f32.mrb[30].mxu0  ;;  %v748_v35 = vadd.f32 %v711_v34, %v583_v48  ;;  %v1882_v36 = vpop.f32.mrb[31].mxu1 }
 0x129   : > { %v591_v32 = vadd.f32 %v578_v30, %v458_v24  ;;  %v1874_v33 = vpop.f32.mrb[31].mxu0 }
 0x12d   : > { %v716_v39 = vpop.f32.mrb[32].mxu1 }
 0x12e   : > { %v881_v37 = vpop.f32.mrb[32].mxu0  ;;  %v749_v43 = vadd.f32 %v716_v39, %v584_v54  ;;  %v1885_v27 = vpop.f32.mrb[33].mxu1 }
 0x12f   : > { %v920_v25 = vadd.f32 %v881_v37, %v747_v31  ;;  %v1905_v38 = vpop.f32.mrb[33].mxu0  ;;  %v719_v47 = vpop.f32.mrb[34].mxu1 }
 0x130   : > { %v884_v41 = vpop.f32.mrb[34].mxu0  ;;  %v750_v50 = vadd.f32 %v719_v47, %v585_v60  ;;  %v1886_v51 = vpop.f32.mrb[35].mxu1 }
 0x131   : > { %v921_v44 = vadd.f32 %v884_v41, %v748_v35  ;;  %v1906_v45 = vpop.f32.mrb[35].mxu0 }
 0x135   : > { %v724_v46 = vpop.f32.mrb[36].mxu1 }
 0x136   : > { %v889_v52 = vpop.f32.mrb[36].mxu0  ;;  %v751_v56 = vadd.f32 %v724_v46, %v586_v49  ;;  %v1889_v48 = vpop.f32.mrb[37].mxu1 }
 0x137   : > { %v922_v40 = vadd.f32 %v889_v52, %v749_v43  ;;  %v1909_v53 = vpop.f32.mrb[37].mxu0  ;;  %v727_v59 = vpop.f32.mrb[38].mxu1 }
 0x138   : > { %v892_v55 = vpop.f32.mrb[38].mxu0  ;;  %v752_v61 = vadd.f32 %v727_v59, %v587_v8  ;;  %v1890_v62 = vpop.f32.mrb[39].mxu1 }
 0x139   : > { %v923_v57 = vadd.f32 %v892_v55, %v750_v50  ;;  %v1910_v58 = vpop.f32.mrb[39].mxu0 }
 0x13d   : > { %v732_v3 = vpop.f32.mrb[40].mxu1 }
 0x13e   : > { %v897_v63 = vpop.f32.mrb[40].mxu0  ;;  %v753_v4 = vadd.f32 %v732_v3, %v588_v15  ;;  %v1893_v60 = vpop.f32.mrb[41].mxu1 }
 0x13f   : > { %v924_v54 = vadd.f32 %v897_v63, %v751_v56  ;;  %v1913_v0 = vpop.f32.mrb[41].mxu0  ;;  %v735_v7 = vpop.f32.mrb[42].mxu1 }
 0x140   : > { %v900_v2 = vpop.f32.mrb[42].mxu0  ;;  %v754_v9 = vadd.f32 %v735_v7, %v589_v22  ;;  %v1894_v10 = vpop.f32.mrb[43].mxu1 }
 0x141   : > { %v925_v5 = vadd.f32 %v900_v2, %v752_v61  ;;  %v1914_v6 = vpop.f32.mrb[43].mxu0 }
 0x145   : > { %v740_v14 = vpop.f32.mrb[44].mxu1 }
 0x146   : > { %v905_v12 = vpop.f32.mrb[44].mxu0  ;;  %v755_v17 = vadd.f32 %v740_v14, %v590_v11  ;;  %v1897_v8 = vpop.f32.mrb[45].mxu1 }
 0x147   : > { %v926_v49 = vadd.f32 %v905_v12, %v753_v4  ;;  %v1917_v13 = vpop.f32.mrb[45].mxu0  ;;  %v743_v20 = vpop.f32.mrb[46].mxu1 }
 0x148   : > { %v908_v16 = vpop.f32.mrb[46].mxu0  ;;  %v756_v23 = vadd.f32 %v743_v20, %v591_v32  ;;  %v1898_v42 = vpop.f32.mrb[47].mxu1 }
 0x149   : > { %v927_v18 = vadd.f32 %v908_v16, %v754_v9  ;;  %v1918_v19 = vpop.f32.mrb[47].mxu0 }
 0x14d   : > { %v1012_v26 = vpop.f32.mrb[48].mxu1 }
 0x14e   : > { %v913_v24 = vpop.f32.mrb[48].mxu0  ;;  %v1051_v29 = vadd.f32 %v1012_v26, %v920_v25  ;;  %v1929_v22 = vpop.f32.mrb[49].mxu1 }
 0x14f   : > { %v928_v15 = vadd.f32 %v913_v24, %v755_v17  ;;  %v1921_v1 = vpop.f32.mrb[49].mxu0  ;;  %v1015_v21 = vpop.f32.mrb[50].mxu1 }
 0x150   : > { %v916_v28 = vpop.f32.mrb[50].mxu0  ;;  %v1052_v33 = vadd.f32 %v1015_v21, %v921_v44  ;;  %v1930_v34 = vpop.f32.mrb[51].mxu1 }
 0x151   : > { %v929_v30 = vadd.f32 %v916_v28, %v756_v23  ;;  %v1922_v31 = vpop.f32.mrb[51].mxu0 }
 0x155   : > { %v1020_v37 = vpop.f32.mrb[52].mxu1 }
 0x156   : > { %v1177_v35 = vpop.f32.mrb[52].mxu0  ;;  %v1053_v39 = vadd.f32 %v1020_v37, %v922_v40  ;;  %v1933_v32 = vpop.f32.mrb[53].mxu1 }
 0x157   : > { %v1216_v11 = vadd.f32 %v1177_v35, %v1051_v29  ;;  %v1953_v36 = vpop.f32.mrb[53].mxu0  ;;  %v1023_v27 = vpop.f32.mrb[54].mxu1 }
 0x158   : > { %v1180_v38 = vpop.f32.mrb[54].mxu0  ;;  %v1054_v45 = vadd.f32 %v1023_v27, %v923_v57  ;;  %v1934_v47 = vpop.f32.mrb[55].mxu1 }
 0x159   : > { %v1217_v41 = vadd.f32 %v1180_v38, %v1052_v33  ;;  %v1954_v43 = vpop.f32.mrb[55].mxu0 }
 0x15d   : > { %v1028_v52 = vpop.f32.mrb[56].mxu1 }
 0x15e   : > { %v1185_v50 = vpop.f32.mrb[56].mxu0  ;;  %v1055_v46 = vadd.f32 %v1028_v52, %v924_v54  ;;  %v1937_v44 = vpop.f32.mrb[57].mxu1 }
 0x15f   : > { %v1218_v25 = vadd.f32 %v1185_v50, %v1053_v39  ;;  %v1957_v51 = vpop.f32.mrb[57].mxu0  ;;  %v1031_v48 = vpop.f32.mrb[58].mxu1 }
 0x160   : > { %v1188_v53 = vpop.f32.mrb[58].mxu0  ;;  %v1056_v58 = vadd.f32 %v1031_v48, %v925_v5  ;;  %v1938_v59 = vpop.f32.mrb[59].mxu1 }
 0x161   : > { %v1219_v55 = vadd.f32 %v1188_v53, %v1054_v45  ;;  %v1958_v56 = vpop.f32.mrb[59].mxu0 }
 0x165   : > { %v1036_v63 = vpop.f32.mrb[60].mxu1 }
 0x166   : > { %v1193_v61 = vpop.f32.mrb[60].mxu0  ;;  %v1057_v3 = vadd.f32 %v1036_v63, %v926_v49  ;;  %v1941_v57 = vpop.f32.mrb[61].mxu1 }
 0x167   : > { %v1220_v40 = vadd.f32 %v1193_v61, %v1055_v46  ;;  %v1961_v62 = vpop.f32.mrb[61].mxu0  ;;  %v1039_v60 = vpop.f32.mrb[62].mxu1 }
 0x168   : > { %v1196_v0 = vpop.f32.mrb[62].mxu0  ;;  %v1058_v6 = vadd.f32 %v1039_v60, %v927_v18  ;;  %v1942_v7 = vpop.f32.mrb[63].mxu1 }
 0x169   : > { %v1221_v2 = vadd.f32 %v1196_v0, %v1056_v58  ;;  %v1962_v4 = vpop.f32.mrb[63].mxu0 }
 0x16d   : > { %v1044_v12 = vpop.f32.mrb[64].mxu1 }
 0x16e   : > { %v1201_v9 = vpop.f32.mrb[64].mxu0  ;;  %v1059_v5 = vadd.f32 %v1044_v12, %v928_v15  ;;  %v1945_v14 = vpop.f32.mrb[65].mxu1 }
 0x16f   : > { %v2502_v54 = vadd.f32 %v1201_v9, %v1057_v3  ;;  %v1965_v10 = vpop.f32.mrb[65].mxu0  ;;  %v1047_v8 = vpop.f32.mrb[66].mxu1 }
 0x170   : > { %v1204_v13 = vpop.f32.mrb[66].mxu0  ;;  %v1060_v49 = vadd.f32 %v1047_v8, %v929_v30  ;;  %v1946_v19 = vpop.f32.mrb[67].mxu1  ;;  %v2514_v30 = vld [vmem:[%s2560_s2] ss:$0 sm:$0xff] }
 0x171   : > { %v2504_v16 = vadd.f32 %v1204_v13, %v1058_v6  ;;  %v1966_v17 = vpop.f32.mrb[67].mxu0 }
 0x175   : > { %v1350_v42 = vpop.f32.mrb[68].mxu1 }
 0x176   : > { %v1209_v20 = vpop.f32.mrb[68].mxu0  ;;  %v1389_v1 = vadd.f32 %v1350_v42, %v1216_v11  ;;  %v1977_v26 = vpop.f32.mrb[69].mxu1 }
 0x177   : > { %v2506_v23 = vadd.f32 %v1209_v20, %v1059_v5  ;;  %v1969_v18 = vpop.f32.mrb[69].mxu0  ;;  %v1353_v15 = vpop.f32.mrb[70].mxu1 }
 0x178   : > { %v1212_v24 = vpop.f32.mrb[70].mxu0  ;;  %v1390_v22 = vadd.f32 %v1353_v15, %v1217_v41  ;;  %v1978_v31 = vpop.f32.mrb[71].mxu1 }
 0x179   : > { %v2508_v28 = vadd.f32 %v1212_v24, %v1060_v49  ;;  %v1970_v29 = vpop.f32.mrb[71].mxu0 }
 0x17d   : > { %v1358_v35 = vpop.f32.mrb[72].mxu1 }
 0x17e   : > { %v1481_v21 = vpop.f32.mrb[72].mxu0  ;;  %v1391_v36 = vadd.f32 %v1358_v35, %v1218_v25  ;;  %v1981_v38 = vpop.f32.mrb[73].mxu1 }
 0x17f   : > { %v1520_v33 = vadd.f32 %v1481_v21, %v1389_v1  ;;  %v2001_v34 = vpop.f32.mrb[73].mxu0  ;;  %v1361_v41 = vpop.f32.mrb[74].mxu1 }
 0x180   : > { %v1484_v11 = vpop.f32.mrb[74].mxu0  ;;  %v1392_v43 = vadd.f32 %v1361_v41, %v1219_v55  ;;  %v1982_v45 = vpop.f32.mrb[75].mxu1 }
 0x181   : > { %v1537_v37 = vadd.f32 %v2514_v30, %v1520_v33  ;;  %v1521_v39 = vadd.f32 %v1484_v11, %v1390_v22  ;;  %v2002_v32 = vpop.f32.mrb[75].mxu0 }
 0x183   : > { %1547 = vst.msk [vmem:[%s2519_s7] sm:$0xff] %vm277_vm2, %v1537_v37  ;;  %v1538_v27 = vadd.f32 %v2514_v30, %v1521_v39 }
 0x185   : > { %1548 = vst.msk [vmem:[%s2519_s7 + $0x8] sm:$0xff] %vm277_vm2, %v1538_v27  ;;  %v1366_v25 = vpop.f32.mrb[76].mxu1 }
 0x186   : > { %v1489_v47 = vpop.f32.mrb[76].mxu0  ;;  %v1393_v53 = vadd.f32 %v1366_v25, %v1220_v40  ;;  %v1985_v44 = vpop.f32.mrb[77].mxu1 }
 0x187   : > { %v1522_v50 = vadd.f32 %v1489_v47, %v1391_v36  ;;  %v2005_v51 = vpop.f32.mrb[77].mxu0  ;;  %v1369_v58 = vpop.f32.mrb[78].mxu1 }
 0x188   : > { %v1492_v52 = vpop.f32.mrb[78].mxu0  ;;  %v1394_v55 = vadd.f32 %v1369_v58, %v1221_v2  ;;  %v1986_v61 = vpop.f32.mrb[79].mxu1 }
 0x189   : > { %v1539_v46 = vadd.f32 %v2514_v30, %v1522_v50  ;;  %v1523_v56 = vadd.f32 %v1492_v52, %v1392_v43  ;;  %v2006_v48 = vpop.f32.mrb[79].mxu0 }
 0x18b   : > { %1549 = vst.msk [vmem:[%s2519_s7 + $0x10] sm:$0xff] %vm277_vm2, %v1539_v46  ;;  %v1540_v59 = vadd.f32 %v2514_v30, %v1523_v56 }
 0x18d   : > { %1550 = vst.msk [vmem:[%s2519_s7 + $0x18] sm:$0xff] %vm277_vm2, %v1540_v59  ;;  %v1374_v40 = vpop.f32.mrb[80].mxu1 }
 0x18e   : > { %v1497_v62 = vpop.f32.mrb[80].mxu0  ;;  %v1395_v57 = vadd.f32 %v1374_v40, %v2502_v54  ;;  %v1989_v60 = vpop.f32.mrb[81].mxu1 }
 0x18f   : > { %v1524_v63 = vadd.f32 %v1497_v62, %v1393_v53  ;;  %v2009_v0 = vpop.f32.mrb[81].mxu0  ;;  %v1377_v9 = vpop.f32.mrb[82].mxu1 }
 0x190   : > { %v1500_v3 = vpop.f32.mrb[82].mxu0  ;;  %v1396_v2 = vadd.f32 %v1377_v9, %v2504_v16  ;;  %v1990_v12 = vpop.f32.mrb[83].mxu1 }
 0x191   : > { %v1541_v4 = vadd.f32 %v2514_v30, %v1524_v63  ;;  %v1525_v6 = vadd.f32 %v1500_v3, %v1394_v55  ;;  %v2010_v7 = vpop.f32.mrb[83].mxu0 }
 0x193   : > { %1551 = vst.msk [vmem:[%s2519_s7 + $0x20] sm:$0xff] %vm277_vm2, %v1541_v4  ;;  %v1542_v10 = vadd.f32 %v2514_v30, %v1525_v6 }
 0x195   : > { %1552 = vst.msk [vmem:[%s2519_s7 + $0x28] sm:$0xff] %vm277_vm2, %v1542_v10  ;;  %v1382_v14 = vpop.f32.mrb[84].mxu1 }
 0x196   : > { %v1505_v13 = vpop.f32.mrb[84].mxu0  ;;  %v1397_v8 = vadd.f32 %v1382_v14, %v2506_v23  ;;  %v1993_v19 = vpop.f32.mrb[85].mxu1 }
 0x197   : > { %v1526_v5 = vadd.f32 %v1505_v13, %v1395_v57  ;;  %v2013_v54 = vpop.f32.mrb[85].mxu0  ;;  %v1385_v16 = vpop.f32.mrb[86].mxu1 }
 0x198   : > { %v1508_v17 = vpop.f32.mrb[86].mxu0  ;;  %v1398_v42 = vadd.f32 %v1385_v16, %v2508_v28  ;;  %v1994_v1 = vpop.f32.mrb[87].mxu1 }
 0x199   : > { %v1543_v49 = vadd.f32 %v2514_v30, %v1526_v5  ;;  %v1527_v20 = vadd.f32 %v1508_v17, %v1396_v2  ;;  %v2014_v18 = vpop.f32.mrb[87].mxu0 }
 0x19b   : > { %1553 = vst.msk [vmem:[%s2519_s7 + $0x30] sm:$0xff] %vm277_vm2, %v1543_v49  ;;  %v1544_v24 = vadd.f32 %v2514_v30, %v1527_v20 }
 0x19d   : > { %1554 = vst.msk [vmem:[%s2519_s7 + $0x38] sm:$0xff] %vm277_vm2, %v1544_v24 }
 0x19e   : > { %v1513_v26 = vpop.f32.mrb[88].mxu0 }
 0x19f   : > { %v1528_v29 = vadd.f32 %v1513_v26, %v1397_v8  ;;  %v2017_v23 = vpop.f32.mrb[89].mxu0 }
 0x1a0   : > { %v1516_v15 = vpop.f32.mrb[90].mxu0 }
 0x1a1   : > { %v1545_v22 = vadd.f32 %v2514_v30, %v1528_v29  ;;  %v1529_v31 = vadd.f32 %v1516_v15, %v1398_v42  ;;  %v2018_v21 = vpop.f32.mrb[91].mxu0 }
 0x1a3   : > { %1555 = vst.msk [vmem:[%s2519_s7 + $0x40] sm:$0xff] %vm277_vm2, %v1545_v22  ;;  %v1546_v33 = vadd.f32 %v2514_v30, %v1529_v31 }
 0x1a5   : > { %1556 = vst.msk [vmem:[%s2519_s7 + $0x48] sm:$0xff] %vm277_vm2, %v1546_v33 }
 0x1a6 PF: > { %s13_s12 = sadd.s32 1, %s2082_s12  }
 0x1a7   : > { %p10_p4 = scmp.ge.s32.totalorder %s13_s12, 4  }
 0x1a9   :  { %12 = sbr.rel (!%p10_p4) target bundleno = 1 (0x1), region = 70 }

// kernel: _residual_block_impl.5
= control target key start
LH: loop header
LB: loop body
LE: loop exit
PB: predicated region body
PF: predicated region fallthrough
CT: control target
= control target key end

     0   :  { %12 = vsyncpa [#allocation3], 0  ;;  %s1730_s0 = inlined_call_operand.vmem [shape: f32[2,64,32], index: 0, kind: input, shape index: {}]   ;;  %s1731_s1 = inlined_call_operand.vmem [shape: bf16[2,64,16], index: 1, kind: input, shape index: {}]   ;;  %s1732_s2 = inlined_call_operand.vmem [shape: bf16[16,32], index: 2, kind: input, shape index: {}]   ;;  %s1733_s3 = inlined_call_operand.vmem [shape: f32[1,32], index: 3, kind: input, shape index: {}]   ;;  %s1734_s4 = inlined_call_operand.vmem [shape: f32[32,2], index: 4, kind: input, shape index: {}]   ;;  %s1735_s5 = inlined_call_operand.vmem [shape: f32[2,32], index: 5, kind: input, shape index: {}]   ;;  %s1736_s6 = inlined_call_operand.vmem [shape: f32[64,128], index: 6, kind: input, shape index: {}]   ;;  %s1737_s7 = inlined_call_operand.hbm [shape: f32[2,64,32], index: 7, kind: output, shape index: {}]  }
   0x1   :  { %14 = vsyncpa [#allocation3 + $0x1], 0  ;;  %s1413_s24 = smov 0   ;;  %s1415_s25 = smov 0  }
   0x2   :  { %s1417_s26 = smov 0   ;;  %s1419_s27 = smov 0  }
   0x3 LB: > { %s1434_s28 = sadd.s32 4294967295, %s1364_s27   ;;  %s1031_s29 = sadd.s32 4294967294, %s1364_s27   ;;  %s1364_s27 = sphi %s1419_s27, %s1743_s27   ;;  %s1360_s26 = sphi %s1417_s26, %s1742_s26   ;;  %s1356_s25 = sphi %s1415_s25, %s1741_s25   ;;  %s1352_s24 = sphi %s1413_s24, %s1740_s24  }
   0x4   : > { %s1438_s30 = sadd.s32 1, %s1364_s27   ;;  %s184_s8 = sadd.s32 1, %s1360_s26 }
   0x5   : > { %s181_s9 = ssub.s32 %s1364_s27, %s1438_s30  ;;  %p194_p0 = scmp.ne.s32.totalorder %s1360_s26, %s1356_s25 }
   0x6   : > { %p182_p1 = scmp.eq.s32.totalorder %s181_s9, 0  ;;  %p195_p2 = scmp.eq.s32.totalorder %s1434_s28, 1 }
   0x7   : > { %p200_p3 = scmp.ne.s32.totalorder %s1356_s25, %s1352_s24  ;;  %p201_p4 = scmp.eq.s32.totalorder %s1031_s29, 1 }
   0x8   : > { %s1449_s10 = scalar_select %p182_p1, %s1360_s26, %s184_s8  }
   0x9   : > { %p1451_p5 = por %p195_p2, %p194_p0  ;;  %p1455_p6 = por %p201_p4, %p200_p3 }
   0xa   : > { %p1034_p7 = scmp.ge.s32.totalorder %s1364_s27, 1  ;;  %p250_p8 = scmp.lt.s32.totalorder %s1364_s27, 3 }
   0xc   : > { %p251_p9 = pnand %p1034_p7, %p250_p8 }
   0xd   : > { %v1261_v0 = vld [vmem:[%s1732_s2] sm:$0xff] (!%p251_p9)   ;;  %p287_p10 = scmp.lt.s32.totalorder (!%p251_p9), %s1434_s28, 1  ;;  %v475_v2 = vld [vmem:[%s1734_s4 + $0x8] sm:$0xff] (!%p251_p9)  ;;  %v1366_v3 = vmov (!%p251_p9), 0.0|0.0   ;;  %vm349_vm0 = vcmask (!%p251_p9), 130048   ;;  %v476_v4 = vld [vmem:[%s1734_s4 + $0x10] sm:$0xff] (!%p251_p9) }
   0xe   : > { %254 = sbr.rel (%p251_p9) target bundleno = 1111 (0x457), region = 48  ;;  %1106 = vmatprep.subr.bf16.mxu1 (!%p251_p9), %v1261_v0  ;;  %v474_v1 = vld [vmem:[%s1734_s4] sm:$0xff] (!%p251_p9)  ;;  %v477_v5 = vld [vmem:[%s1734_s4 + $0x18] sm:$0xff] (!%p251_p9)  ;;  %vm427_vm1 = vcmask (!%p251_p9), 261120   ;;  %v1367_v36 = vmov (!%p251_p9), 0.0   ;;  %vm1368_vm2 = vmmov (!%p251_p9), 0  }
   0xf   : > { %1107 = vmatpush3.bf16.msra.mxu1 (!%p251_p9), %v1261_v0  ;;  %v1177_v7 = vpack.c.bf16 (!%p251_p9), %v475_v2, %v474_v1  ;;  %v1180_v10 = vpack.c.bf16 (!%p251_p9), %v477_v5, %v476_v4  ;;  %vm472_vm3 = vcmask (!%p251_p9), 1040384   ;;  %v552_v1 = vld [vmem:[%s1735_s5] sm:$0x3] (!%p251_p9)  ;;  %vm557_vm4 = vcmask (!%p251_p9), 1041408   ;;  %s1069_s13 = sshll.u32 (!%p251_p9), %s1434_s28, 10  ;;  %s1370_s19 = smov (!%p251_p9), [#allocation2]  }
  0x10   : > { %1176 = vmatprep.subr.bf16.mxu1 (!%p251_p9), %v1366_v3  ;;  %vm553_vm5 = vcmask (!%p251_p9), 15360  }
  0x15   : > { %s288_s15 = scalar_select %p287_p10, %s1434_s28, 1 }
  0x17   : > { %s1067_s20 = sshll.u32 %s288_s15, 6  ;;  %s1068_s21 = sshll.u32 %s288_s15, 5 }
  0x18   : > { %s296_s29 = scalar_lea.vmem %s1731_s1, %s1068_s21  ;;  %s291_s15 = scalar_lea.vmem %s1730_s0, %s1067_s20 }
  0x19   : > { %v1262_v6 = vld [vmem:[%s296_s29] sm:$0xff]   ;;  %v1263_v8 = vld [vmem:[%s296_s29 + $0x8] sm:$0xff]   ;;  %v1264_v9 = vld [vmem:[%s296_s29 + $0x10] sm:$0xff]   ;;  %s1306_s20 = sshll.u32 %s1370_s19, 4  ;;  %s1307_s20 = int_to_ptr.vmem [resolvable:$false] %s1306_s20 }
  0x1a   : > { %1108 = vmatprep.mubr.msk.bf16.mxu1 %vm349_vm0, %v1262_v6  ;;  %v1487_v11 = vld [vmem:[%s291_s15] sm:$0xff]  ;;  %v1489_v12 = vld [vmem:[%s291_s15 + $0x8] sm:$0xff]  ;;  %v1491_v13 = vld [vmem:[%s291_s15 + $0x10] sm:$0xff]  ;;  %s1308_s21 = scalar_lea.vmem %s1307_s20, 2048 }
  0x1b   : > { %1109 = vmatmul.mubr.msk.bf16.vlgmr.msra.gmra.mrb[0].mxu1 %vm349_vm0, %v1263_v8  ;;  %v1493_v14 = vld [vmem:[%s291_s15 + $0x18] sm:$0xff]  ;;  %v1495_v15 = vld [vmem:[%s291_s15 + $0x20] sm:$0xff]  ;;  %v428_v16 = vsel %vm427_vm1, %v1487_v11, 0.0  ;;  %v429_v17 = vsel %vm427_vm1, %v1489_v12, 0.0  ;;  %v431_v18 = vsel %vm427_vm1, %v1491_v13, 0.0  ;;  %v1503_v19 = vld [vmem:[%s291_s15 + $0x30] sm:$0xff] }
  0x1c   : > { %1178 = vmatpush3.bf16.msra.mxu1 %v1177_v7  ;;  %1112 = vmatprep.mubr.msk.bf16.mxu1 %vm349_vm0, %v1264_v9  ;;  %v1505_v20 = vld [vmem:[%s291_s15 + $0x38] sm:$0xff]  ;;  %v430_v21 = vadd.f32 %v429_v17, %v428_v16  ;;  %v433_v23 = vsel %vm427_vm1, %v1493_v14, 0.0  ;;  %v435_v24 = vsel %vm427_vm1, %v1495_v15, 0.0  ;;  %v451_v25 = vsel %vm427_vm1, %v1487_v11, -inf  ;;  %v1515_v27 = vld [vmem:[%s291_s15 + $0x28] sm:$0xff]  ;;  %s1681_s15 = scalar_lea.hbm %s1737_s7, %s1069_s13 }
  0x1d   : > { %1179 = vmatprep.subr.bf16.mxu1 %v1366_v3  ;;  %v1265_v22 = vld [vmem:[%s296_s29 + $0x18] sm:$0xff]   ;;  %v452_v26 = vsel %vm427_vm1, %v1489_v12, -inf  ;;  %v453_v29 = vsel %vm427_vm1, %v1491_v13, -inf  ;;  %v454_v30 = vsel %vm427_vm1, %v1493_v14, -inf  ;;  %v455_v31 = vsel %vm427_vm1, %v1495_v15, -inf  ;;  %s284_s29 = sand.u32 1, %s1356_s25  }
  0x1e   : > { %v432_v28 = vadd.f32 %v431_v18, %v430_v21  ;;  %v456_v32 = vmax.f32 %v451_v25, %v455_v31  ;;  %v457_v33 = vsel %vm427_vm1, %v1515_v27, -inf  ;;  %v459_v34 = vsel %vm427_vm1, %v1503_v19, -inf  ;;  %s1035_s8 = sshll.u32 %s284_s29, 6  ;;  %s1689_s18 = scalar_lea.sflag [#allocation3], %s284_s29 }
  0x1f   : > { %v461_v35 = vsel %vm427_vm1, %v1505_v20, -inf  ;;  %v458_v38 = vmax.f32 %v452_v26, %v457_v33  ;;  %v460_v39 = vmax.f32 %v453_v29, %v459_v34  ;;  %v437_v41 = vsel %vm427_vm1, %v1515_v27, 0.0  ;;  %s1650_s9 = scalar_lea.vmem [#allocation2], %s1035_s8 }
  0x20   : > { %1181 = vmatpush3.bf16.msra.mxu1 %v1180_v10  ;;  %v434_v37 = vadd.f32 %v433_v23, %v432_v28  ;;  %v462_v40 = vmax.f32 %v454_v30, %v461_v35  ;;  %v439_v45 = vsel %vm427_vm1, %v1503_v19, 0.0  ;;  %v441_v48 = vsel %vm427_vm1, %v1505_v20, 0.0  ;;  %s957_s14 = sshll.u32 %s1650_s9, 4  ;;  %s1683_s14 = int_to_ptr.vmem [resolvable:$true] %s957_s14 }
  0x21   : > { %1127 = vmatprep.subr.mxu1 %v1367_v36  ;;  %v463_v43 = vmax.f32 %v456_v32, %v458_v38  ;;  %v641_v28 = vlaneseq  ;;  %s1302_s28 = scalar_lea.vmem %s1683_s14, 1024  ;;  %p1309_p0 = scmp.lt.s32.totalorder %s1683_s14, %s1307_s20 }
  0x22   : > { %v436_v42 = vadd.f32 %v435_v24, %v434_v37  ;;  %v464_v44 = vmax.f32 %v460_v39, %v462_v40  ;;  %p1303_p11 = scmp.ne.s32.totalorder %s1683_s14, %s1302_s28  ;;  %p1310_p1 = scmp.lt.s32.totalorder %s1308_s21, %s1302_s28 }
  0x23   : > { %1113 = vmatmul.mubr.msk.bf16.gmra.mrb[4].mxu1 %vm349_vm0, %v1265_v22  ;;  %v642_v29 = vshrl.u32 %v641_v28, 7 }
  0x24   : > { %1124 = vmatprep.mubr.msk.f32.mxu1 %vm1368_vm2, %v1367_v36  ;;  %v438_v46 = vadd.f32 %v437_v41, %v436_v42  ;;  %v465_v47 = vmax.f32 %v463_v43, %v464_v44  ;;  %p1304_p12 = pnand %p1303_p11, %p1451_p5  ;;  %p1311_p2 = por %p1310_p1, %p1309_p0 }
  0x25   : > { %v643_v30 = vsub.s32 0, %v642_v29 }
  0x26   : > { %v440_v49 = vadd.f32 %v439_v45, %v438_v46  ;;  %v466_v50 = vrot.slane %v465_v47, 4  ;;  %p1305_p13 = pneg %p1304_p12 }
  0x28   : > { %v442_v51 = vadd.f32 %v441_v48, %v440_v49  ;;  %v467_v52 = vmax.f32 %v465_v47, %v466_v50  ;;  %v710_v49 = vld [vmem:[%s1736_s6] sm:$0xff]  ;;  %p1312_p3 = pnand %p1311_p2, %p1305_p13 }
  0x29   : > { %1164 = vmatprep.mubr.f32.mxu0 %v710_v49 }
  0x2a   : > { %v443_v53 = vrot.slane %v442_v51, 4  ;;  %v468_v54 = vrot.slane %v467_v52, 2 }
  0x2c   : > { %v444_v55 = vadd.f32 %v443_v53, %v442_v51  ;;  %v469_v56 = vmax.f32 %v467_v52, %v468_v54 }
  0x2e   : > { %v445_v57 = vrot.slane %v444_v55, 2  ;;  %v470_v59 = vrot.slane %v469_v56, 1 }
  0x30   : > { %v446_v58 = vadd.f32 %v445_v57, %v444_v55  ;;  %v471_v62 = vmax.f32 %v469_v56, %v470_v59 }
  0x32   : > { %v447_v60 = vrot.slane %v446_v58, 1 }
  0x34   : > { %v448_v61 = vadd.f32 %v447_v60, %v446_v58 }
  0x36   : > { %v450_v63 = vmul.f32 0.015625, %v448_v61 }
  0x38   : > { %v473_v0 = vsel %vm472_vm3, %v450_v63, %v471_v62 }
  0x39   : > { %1125 = vmatmul.mubr.msk.f32.vlgmr.msra.gmra.mrb[8].mxu1 %vm427_vm1, %v473_v0 }
  0x3a   : > { %1129 = vmatprep.mubr.msk.f32.mxu1 %vm1368_vm2, %v1367_v36  ;;  %1128 = vmatpush3.msk.msra.mxu1 %vm557_vm4, %v552_v1 }
  0xee   : > { %v1542_v2 = vpop.f32.mrb[0].mxu1 }
  0xef   : > { %v1544_v3 = vpop.f32.mrb[1].mxu1 }
  0xf0   : > { %v1546_v4 = vpop.f32.mrb[2].mxu1 }
  0xf1   : > { %v1548_v5 = vpop.f32.mrb[3].mxu1 }
  0xf6   : > { %v1550_v6 = vpop.f32.mrb[4].mxu1 }
  0xf7   : > { %v1552_v7 = vpop.f32.mrb[5].mxu1 }
  0xf8   : > { %v1554_v8 = vpop.f32.mrb[6].mxu1 }
  0xf9   : > { %v1556_v9 = vpop.f32.mrb[7].mxu1 }
 0x10c   : > { %v547_v10 = vpop.f32.mrb[8].mxu1 }
 0x10d   : > { %v551_v16 = vmax.f32 %v547_v10, 0.0  ;;  %v1126_v17 = vpop.f32.mrb[9].mxu1 }
 0x10f   : > { %1130 = vmatmul.mubr.msk.f32.vlgmr.msra.gmra.mrb[10].mxu1 %vm553_vm5, %v551_v16 }
 0x1e2   : > { %v627_v18 = vpop.f32.mrb[10].mxu1 }
 0x1e3   : > { %v632_v21 = vrot.slane %v627_v18, 1  ;;  %v1131_v22 = vpop.f32.mrb[11].mxu1 }
 0x1e5   : > { %v634_v23 = vadd.f32 %v632_v21, %v627_v18 }
 0x1e7   : > { %v1053_v24 = vmul.f32 -1.442695, %v634_v23 }
 0x1e9   : > { %1266 = vpow2.f32 %v1053_v24 }
 0x1f3   : > { %v1267_v25 = vpop.eup %1266 }
 0x1f4   : > { %v638_v26 = vadd.f32 1.0, %v1267_v25 }
 0x1f6   : > { %1268 = vrcp.f32 %v638_v26 }
 0x200   : > { %v1269_v31 = vpop.eup %1268 }
 0x201   : > { %v644_v32 = vrot.slane %v1269_v31, %v643_v30 }
 0x203   : > { %v1559_v33 = vmul.f32 %v644_v32, %v1491_v13  ;;  %v1562_v34 = vmul.f32 %v644_v32, %v1487_v11  ;;  %v1569_v37 = vmul.f32 %v644_v32, %v1493_v14  ;;  %v1572_v38 = vmul.f32 %v644_v32, %v1489_v12 }
 0x204   : > { %v1579_v39 = vmul.f32 %v644_v32, %v1515_v27  ;;  %v1582_v40 = vmul.f32 %v644_v32, %v1495_v15  ;;  %v1589_v41 = vmul.f32 %v644_v32, %v1505_v20  ;;  %v1592_v42 = vmul.f32 %v644_v32, %v1503_v19 }
 0x205   : > { %v659_v35 = vsel %vm427_vm1, %v1559_v33, 0.0  ;;  %v653_v36 = vsel %vm427_vm1, %v1562_v34, 0.0  ;;  %v662_v13 = vsel %vm427_vm1, %v1569_v37, 0.0  ;;  %v656_v11 = vsel %vm427_vm1, %v1572_v38, 0.0 }
 0x206   : > { %660 = vadd.xlane.f32.xlu1 %v659_v35  ;;  %654 = vadd.xlane.f32.xlu0 %v653_v36  ;;  %v668_v12 = vsel %vm427_vm1, %v1579_v39, 0.0  ;;  %v665_v14 = vsel %vm427_vm1, %v1582_v40, 0.0  ;;  %v674_v15 = vsel %vm427_vm1, %v1589_v41, 0.0  ;;  %v671_v27 = vsel %vm427_vm1, %v1592_v42, 0.0  ;;  %v711_v36 = vld [vmem:[%s1736_s6 + $0x8] sm:$0xff] }
 0x207   : > { %v689_v43 = vsel %vm427_vm1, %v1572_v38, -inf  ;;  %v686_v20 = vsel %vm427_vm1, %v1562_v34, -inf  ;;  %v695_v19 = vsel %vm427_vm1, %v1569_v37, -inf  ;;  %v692_v44 = vsel %vm427_vm1, %v1559_v33, -inf }
 0x208   : > { %v701_v45 = vsel %vm427_vm1, %v1579_v39, -inf  ;;  %v698_v46 = vsel %vm427_vm1, %v1582_v40, -inf  ;;  %v707_v47 = vsel %vm427_vm1, %v1589_v41, -inf  ;;  %v704_v48 = vsel %vm427_vm1, %v1592_v42, -inf }
 0x20a   : > { %663 = vadd.xlane.f32.xlu1 %v662_v13  ;;  %657 = vadd.xlane.f32.xlu0 %v656_v11  ;;  %v712_v13 = vld [vmem:[%s1736_s6 + $0x10] sm:$0xff]  ;;  %v713_v11 = vld [vmem:[%s1736_s6 + $0x18] sm:$0xff] }
 0x20e   : > { %669 = vadd.xlane.f32.xlu1 %v668_v12  ;;  %666 = vadd.xlane.f32.xlu0 %v665_v14  ;;  %v714_v12 = vld [vmem:[%s1736_s6 + $0x20] sm:$0xff]  ;;  %v715_v14 = vld [vmem:[%s1736_s6 + $0x28] sm:$0xff] }
 0x212   : > { %675 = vadd.xlane.f32.xlu1 %v674_v15  ;;  %672 = vadd.xlane.f32.xlu0 %v671_v27  ;;  %v716_v15 = vld [vmem:[%s1736_s6 + $0x30] sm:$0xff]  ;;  %v717_v27 = vld [vmem:[%s1736_s6 + $0x38] sm:$0xff] }
 0x216   : > { %690 = vmax.xlane.f32.xlu1 %v689_v43  ;;  %687 = vmax.xlane.f32.xlu0 %v686_v20  ;;  %v1369_v43 = vmov 0  }
 0x217   : > { %1260 = vset.pattern.permute.xlu1 %v1369_v43  ;;  %1259 = vset.pattern.permute.xlu0 %v1369_v43 }
 0x21a   : > { %696 = vmax.xlane.f32.xlu1 %v695_v19  ;;  %693 = vmax.xlane.f32.xlu0 %v692_v44 }
 0x21e   : > { %702 = vmax.xlane.f32.xlu1 %v701_v45  ;;  %699 = vmax.xlane.f32.xlu0 %v698_v46 }
 0x222   : > { %708 = vmax.xlane.f32.xlu1 %v707_v47  ;;  %705 = vmax.xlane.f32.xlu0 %v704_v48 }
 0x293   : > { %v661_v50 = vpop.xlane.xlu1 %660  ;;  %v655_v51 = vpop.xlane.xlu0 %654 }
 0x294   : > { %v678_v54 = vmul.f32 0.03125, %v655_v51  ;;  %v680_v57 = vmul.f32 0.03125, %v661_v50 }
 0x297   : > { %v664_v52 = vpop.xlane.xlu1 %663  ;;  %v658_v53 = vpop.xlane.xlu0 %657 }
 0x298   : > { %v681_v55 = vmul.f32 0.03125, %v664_v52  ;;  %v679_v56 = vmul.f32 0.03125, %v658_v53 }
 0x29a   : > { %v1182_v58 = vpack.c.bf16 %v679_v56, %v678_v54  ;;  %v1186_v61 = vpack.c.bf16 %v681_v55, %v680_v57 }
 0x29b   : > { %v670_v59 = vpop.xlane.xlu1 %669  ;;  %v667_v60 = vpop.xlane.xlu0 %666 }
 0x29c   : > { %v683_v62 = vmul.f32 0.03125, %v670_v59  ;;  %v682_v63 = vmul.f32 0.03125, %v667_v60  ;;  %1183 = vmatprep.subr.bf16.mxu0 %v1182_v58 }
 0x29d   : > { %1185 = vmatpush3.bf16.msra.mxu0 %v1182_v58 }
 0x29e   : > { %1187 = vmatprep.subr.bf16.mxu0 %v1186_v61  ;;  %v1190_v10 = vpack.c.bf16 %v683_v62, %v682_v63 }
 0x29f   : > { %v676_v0 = vpop.xlane.xlu1 %675  ;;  %v673_v1 = vpop.xlane.xlu0 %672 }
 0x2a0   : > { %v685_v16 = vmul.f32 0.03125, %v676_v0  ;;  %v684_v17 = vmul.f32 0.03125, %v673_v1 }
 0x2a1   : > { %1189 = vmatpush3.bf16.msra.mxu0 %v1186_v61 }
 0x2a2   : > { %1191 = vmatprep.subr.bf16.mxu0 %v1190_v10  ;;  %v1194_v22 = vpack.c.bf16 %v685_v16, %v684_v17 }
 0x2a3   : > { %v691_v18 = vpop.xlane.xlu1 %690  ;;  %v688_v21 = vpop.xlane.xlu0 %687 }
 0x2a4   : > { %v1198_v25 = vpack.c.bf16 %v691_v18, %v688_v21 }
 0x2a5   : > { %1193 = vmatpush3.bf16.msra.mxu0 %v1190_v10 }
 0x2a6   : > { %1195 = vmatprep.subr.bf16.mxu0 %v1194_v22 }
 0x2a7   : > { %v697_v23 = vpop.xlane.xlu1 %696  ;;  %v694_v24 = vpop.xlane.xlu0 %693 }
 0x2a8   : > { %v1202_v29 = vpack.c.bf16 %v697_v23, %v694_v24 }
 0x2a9   : > { %1197 = vmatpush3.bf16.msra.mxu0 %v1194_v22 }
 0x2aa   : > { %1199 = vmatprep.subr.bf16.mxu0 %v1198_v25 }
 0x2ab   : > { %v703_v26 = vpop.xlane.xlu1 %702  ;;  %v700_v28 = vpop.xlane.xlu0 %699 }
 0x2ac   : > { %v1206_v30 = vpack.c.bf16 %v703_v26, %v700_v28 }
 0x2ad   : > { %1201 = vmatpush3.bf16.msra.mxu0 %v1198_v25 }
 0x2ae   : > { %1203 = vmatprep.subr.bf16.mxu0 %v1202_v29 }
 0x2af   : > { %v709_v31 = vpop.xlane.xlu1 %708  ;;  %v706_v32 = vpop.xlane.xlu0 %705 }
 0x2b0   : > { %v1210_v35 = vpack.c.bf16 %v709_v31, %v706_v32 }
 0x2b1   : > { %1205 = vmatpush3.bf16.msra.mxu0 %v1202_v29 }
 0x2b2   : > { %1207 = vmatprep.subr.bf16.mxu0 %v1206_v30 }
 0x2b5   : > { %1209 = vmatpush3.bf16.msra.mxu0 %v1206_v30 }
 0x2b6   : > { %1211 = vmatprep.subr.bf16.mxu0 %v1210_v35 }
 0x2b9   : > { %1213 = vmatpush3.bf16.msra.mxu0 %v1210_v35 }
 0x2bc   : > { %1165 = vmatmul.mubr.f32.vlgmr.msra.gmra.mrb[0].mxu0 %v711_v36  ;;  %v1040_v36 = vld [vmem:[%s1733_s3] ss:$0 sm:$0xff] }
 0x2bd   : > { %1167 = vmatprep.mubr.f32.mxu0 %v712_v13 }
 0x2c0   : > { %1168 = vmatmul.mubr.f32.gmra.mrb[2].mxu0 %v713_v11  ;;  %v400_v11 = vadd.f32 %v1040_v36, %v1548_v5 }
 0x2c1   : > { %1170 = vmatprep.mubr.f32.mxu0 %v714_v12 }
 0x2c4   : > { %1171 = vmatmul.mubr.f32.gmra.mrb[4].mxu0 %v715_v14 }
 0x2c5   : > { %1173 = vmatprep.mubr.f32.mxu0 %v716_v15  ;;  %v397_v15 = vadd.f32 %v1040_v36, %v1544_v3 }
 0x2c8   : > { %1174 = vmatmul.mubr.f32.gmra.mrb[6].mxu0 %v717_v27 }
 0x38f   : > { %v1166_v20 = vpop.f32.mrb[0].mxu0 }
 0x390   : > { %v1055_v19 = vmul.f32 -1.442695, %v1166_v20  ;;  %v784_v44 = vpop.f32.mrb[1].mxu0 }
 0x391   : > { %v1054_v45 = vmul.f32 -1.442695, %v784_v44  ;;  %v408_v44 = vadd.f32 %v1546_v4, %v1040_v36 }
 0x392   : > { %1270 = vpow2.f32 %v1055_v19 }
 0x393   : > { %1272 = vpow2.f32 %v1054_v45  ;;  %v1169_v46 = vpop.f32.mrb[2].mxu0 }
 0x394   : > { %v1057_v47 = vmul.f32 -1.442695, %v1169_v46  ;;  %v794_v48 = vpop.f32.mrb[3].mxu0 }
 0x395   : > { %v1056_v49 = vmul.f32 -1.442695, %v794_v48 }
 0x396   : > { %1274 = vpow2.f32 %v1057_v47 }
 0x397   : > { %1276 = vpow2.f32 %v1056_v49  ;;  %v1172_v50 = vpop.f32.mrb[4].mxu0  ;;  %v416_v49 = vadd.f32 %v1040_v36, %v1556_v9  ;;  %v421_v9 = vadd.f32 %v1550_v6, %v1040_v36 }
 0x398   : > { %v1059_v51 = vmul.f32 -1.442695, %v1172_v50  ;;  %v804_v52 = vpop.f32.mrb[5].mxu0 }
 0x399   : > { %v1058_v53 = vmul.f32 -1.442695, %v804_v52 }
 0x39a   : > { %1278 = vpow2.f32 %v1059_v51 }
 0x39b   : > { %v1175_v54 = vpop.f32.mrb[6].mxu0  ;;  %1280 = vpow2.f32 %v1058_v53 }
 0x39c   : > { %v1271_v55 = vpop.eup %1270  ;;  %v814_v56 = vpop.f32.mrb[7].mxu0  ;;  %v1061_v0 = vmul.f32 -1.442695, %v1175_v54 }
 0x39d   : > { %v1273_v57 = vpop.eup %1272  ;;  %v848_v58 = vadd.f32 1.0, %v1271_v55  ;;  %v1060_v59 = vmul.f32 -1.442695, %v814_v56 }
 0x39e   : > { %v847_v60 = vadd.f32 1.0, %v1273_v57 }
 0x39f   : > { %1282 = vrcp.f32 %v848_v58 }
 0x3a0   : > { %v1275_v61 = vpop.eup %1274  ;;  %1284 = vrcp.f32 %v847_v60 }
 0x3a1   : > { %v1277_v62 = vpop.eup %1276  ;;  %v850_v63 = vadd.f32 1.0, %v1275_v61  ;;  %1286 = vpow2.f32 %v1060_v59  ;;  %v424_v59 = vadd.f32 %v1554_v8, %v1040_v36 }
 0x3a2   : > { %v849_v1 = vadd.f32 1.0, %v1277_v62 }
 0x3a3   : > { %1288 = vrcp.f32 %v850_v63 }
 0x3a4   : > { %v1279_v10 = vpop.eup %1278  ;;  %1290 = vpow2.f32 %v1061_v0 }
 0x3a5   : > { %v852_v16 = vadd.f32 1.0, %v1279_v10  ;;  %1292 = vrcp.f32 %v849_v1  ;;  %v1281_v17 = vpop.eup %1280 }
 0x3a6   : > { %v851_v23 = vadd.f32 1.0, %v1281_v17 }
 0x3a7   : > { %1294 = vrcp.f32 %v852_v16 }
 0x3a8   : > { %1296 = vrcp.f32 %v851_v23 }
 0x3a9   : > { %v1283_v18 = vpop.eup %1282 }
 0x3aa   : > { %v1285_v21 = vpop.eup %1284  ;;  %878 = vperm.xlu1 %1260, %v1283_v18  }
 0x3ab   : > { %v1287_v22 = vpop.eup %1286  ;;  %873 = vperm.xlu0 %1259, %v1285_v21  }
 0x3ac   : > { %v853_v25 = vadd.f32 1.0, %v1287_v22 }
 0x3ad   : > { %v1289_v24 = vpop.eup %1288 }
 0x3ae   : > { %888 = vperm.xlu1 %1260, %v1289_v24   ;;  %v1291_v26 = vpop.eup %1290  ;;  %1298 = vrcp.f32 %v853_v25 }
 0x3af   : > { %v1293_v28 = vpop.eup %1292  ;;  %v854_v30 = vadd.f32 1.0, %v1291_v26 }
 0x3b1   : > { %v1295_v29 = vpop.eup %1294  ;;  %1300 = vrcp.f32 %v854_v30 }
 0x3b2   : > { %883 = vperm.xlu1 %1260, %v1293_v28   ;;  %v1297_v31 = vpop.eup %1296 }
 0x3b6   : > { %898 = vperm.xlu1 %1260, %v1295_v29  }
 0x3b8   : > { %v1299_v32 = vpop.eup %1298 }
 0x3ba   : > { %893 = vperm.xlu1 %1260, %v1297_v31  }
 0x3bb   : > { %v1301_v35 = vpop.eup %1300 }
 0x3be   : > { %903 = vperm.xlu1 %1260, %v1299_v32  }
 0x3c2   : > { %908 = vperm.xlu1 %1260, %v1301_v35  }
 0x429   : > { %v879_v13 = vpop.permute.xlu1 %878 }
 0x42a   : > { %v912_v12 = vmul.f32 %v879_v13, %v1572_v38  ;;  %v874_v14 = vpop.permute.xlu0 %873 }
 0x42b   : > { %v911_v27 = vmul.f32 %v874_v14, %v1562_v34  ;;  %v405_v34 = vadd.f32 %v1542_v2, %v1040_v36  ;;  %v413_v2 = vadd.f32 %v1040_v36, %v1552_v7 }
 0x42c   : > { %v920_v43 = vadd.f32 %v912_v12, %v400_v11 }
 0x42d   : > { %v919_v20 = vadd.f32 %v911_v27, %v397_v15  ;;  %v889_v19 = vpop.permute.xlu1 %888 }
 0x42e   : > { %v928_v45 = vmax.f32 %v920_v43, 0.0  ;;  %v914_v46 = vmul.f32 %v889_v19, %v1569_v37 }
 0x42f   : > { %v927_v47 = vmax.f32 %v919_v20, 0.0 }
 0x430   : > { %936 = vst.msk [vmem:[%s1650_s9 + $0x8] sm:$0xff] %vm427_vm1, %v928_v45  ;;  %v922_v3 = vadd.f32 %v914_v46, %v408_v44 }
 0x431   : > { %935 = vst.msk [vmem:[%s1650_s9] sm:$0xff] %vm427_vm1, %v927_v47  ;;  %v884_v5 = vpop.permute.xlu1 %883 }
 0x432   : > { %v930_v4 = vmax.f32 %v922_v3, 0.0  ;;  %v913_v38 = vmul.f32 %v884_v5, %v1559_v33 }
 0x434   : > { %938 = vst.msk [vmem:[%s1650_s9 + $0x18] sm:$0xff] %vm427_vm1, %v930_v4  ;;  %v921_v37 = vadd.f32 %v913_v38, %v405_v34 }
 0x435   : > { %v899_v48 = vpop.permute.xlu1 %898 }
 0x436   : > { %v929_v50 = vmax.f32 %v921_v37, 0.0  ;;  %v916_v51 = vmul.f32 %v899_v48, %v1579_v39 }
 0x438   : > { %937 = vst.msk [vmem:[%s1650_s9 + $0x10] sm:$0xff] %vm427_vm1, %v929_v50  ;;  %v924_v52 = vadd.f32 %v916_v51, %v416_v49 }
 0x439   : > { %v894_v53 = vpop.permute.xlu1 %893 }
 0x43a   : > { %v932_v54 = vmax.f32 %v924_v52, 0.0  ;;  %v915_v33 = vmul.f32 %v894_v53, %v1582_v40 }
 0x43c   : > { %940 = vst.msk [vmem:[%s1650_s9 + $0x28] sm:$0xff] %vm427_vm1, %v932_v54  ;;  %v923_v55 = vadd.f32 %v915_v33, %v413_v2 }
 0x43d   : > { %v904_v56 = vpop.permute.xlu1 %903 }
 0x43e   : > { %v931_v39 = vmax.f32 %v923_v55, 0.0  ;;  %v917_v57 = vmul.f32 %v904_v56, %v1592_v42 }
 0x440   : > { %939 = vst.msk [vmem:[%s1650_s9 + $0x20] sm:$0xff] %vm427_vm1, %v931_v39  ;;  %v925_v58 = vadd.f32 %v917_v57, %v421_v9 }
 0x441   : > { %v909_v7 = vpop.permute.xlu1 %908 }
 0x442   : > { %v933_v60 = vmax.f32 %v925_v58, 0.0  ;;  %v918_v40 = vmul.f32 %v909_v7, %v1589_v41 }
 0x444   : > { %941 = vst.msk [vmem:[%s1650_s9 + $0x30] sm:$0xff] %vm427_vm1, %v933_v60  ;;  %v926_v6 = vadd.f32 %v918_v40, %v424_v59 }
 0x446   : > { %v934_v42 = vmax.f32 %v926_v6, 0.0 }
 0x448   : > { %942 = vst.msk [vmem:[%s1650_s9 + $0x38] sm:$0xff] %vm427_vm1, %v934_v42 }
 0x449   : > { %1315 = shalt.err (!%p1312_p3)
}
 0x44a   : > { %s1316_s22 = scalar_lea.hbm %s1681_s15, 1024  ;;  %s1320_s8 = scalar_lea.hbm %s1737_s7, 2048 }
 0x44b   : > { %p1317_p4 = scmp.ne.s32.totalorder %s1681_s15, %s1316_s22  ;;  %p1321_p9 = scmp.lt.u32.totalorder %s1681_s15, %s1737_s7 }
 0x44c   : > { %p1322_p10 = scmp.lt.u32.totalorder %s1320_s8, %s1316_s22  ;;  %p1324_p12 = scmp.lt.u32.totalorder %s1316_s22, %s1681_s15 }
 0x44d   : > { %p1318_p7 = pnand %p1317_p4, %p1451_p5 }
 0x44e   : > { %p1323_p11 = por %p1322_p10, %p1321_p9 }
 0x44f   : > { %p1319_p8 = pneg %p1318_p7 }
 0x450   : > { %p1325_p13 = por %p1324_p12, %p1323_p11 }
 0x452   : > { %p1326_p0 = pnand %p1325_p13, %p1319_p8 }
 0x454   : > { %1329 = shalt.err (!%p1326_p0)
}
 0x455   : > { %s1371_s16 = smov 128   ;;  %s1372_s17 = smov 8  }
 0x456   : > { %1214 = dma.vmem_to_hbm [thread:$0]  (%p1451_p5), %s1683_s14, 1024, %s1681_s15, %s1689_s18, %s1371_s16, %s1371_s16, %s1372_s17  }
 0x457 PF: > { %p1220_p1 = scmp.ge.s32.totalorder %s1364_s27, 2  ;;  %s972_s28 = sand.u32 1, %s1352_s24  }
 0x458   : > { %s973_s19 = scalar_lea.sflag [#allocation3], %s972_s28 }
 0x459   : > { %p1217_p2 = pnand %p1220_p1, %p1455_p6 }
 0x45b   : > { %1347 = dma.done.wait (!%p1217_p2), %s973_s19, 1024  }
 0x45c   : > { %1349 = vsyncadd (!%p1217_p2), %s973_s19, 4294966272  ;;  %p17_p3 = scmp.ge.s32.totalorder %s1438_s30, 4   ;;  %s1740_s24 = smov %s1356_s25 }
 0x45d   : > { %s1741_s25 = smov %s1360_s26  ;;  %s1742_s26 = smov %s1449_s10 }
 0x45e   : > { %s1743_s27 = smov %s1438_s30  ;;  %19 = sbr.rel (!%p17_p3) target bundleno = 3 (0x3), region = 86 }
 0x465   :  { %978 = vsyncpa [#allocation3], 1 }
 0x466   :  { %980 = vsyncpa [#allocation3 + $0x1], 1 }

</bundles_post_ra>
